<compile_context>
chip_gen: v7x
topology: tpu7x:2x2x1
jax: 0.10.0
libtpu: 0.0.40
codegen_flags: <defaults>
</compile_context>

<pallas_src>
import jax
import jax.numpy as jnp
from jax import lax
from jax.experimental import pallas as pl
from jax.experimental.pallas import tpu as pltpu  # noqa: F401  (kept for TPU-specific extensions)

# ---------------- scaled-down ViT config ----------------
BATCH = 2
IN_CHANS = 3
IMG = 16
PATCH = 4
EMBED = 32
DEPTH = 2
HEADS = 4
MLP_RATIO = 4
NUM_CLASSES = 10
NPATCH = (IMG // PATCH) ** 2        # 16 patches
SEQ = NPATCH + 1                    # +1 cls token -> 17
SEQ_PAD = ((SEQ + 7) // 8) * 8      # 24 (sublane-aligned)
HEAD_DIM = EMBED // HEADS           # 8
HIDDEN = EMBED * MLP_RATIO          # 128
CPP = IN_CHANS * PATCH * PATCH      # 48
EPS = 1e-6                          # LayerNorm eps (partial(nn.LayerNorm, eps=1e-6))


# ---------------- shared math helpers ----------------
def _layernorm(x, w, b):
    mu = jnp.mean(x, axis=-1, keepdims=True)
    var = jnp.mean((x - mu) ** 2, axis=-1, keepdims=True)
    return (x - mu) * lax.rsqrt(var + EPS) * w + b


def _gelu_tanh(x):
    # tanh-approx GELU (EUP tanh); tiny deviation from exact-erf GELU.
    c = 0.7978845608028654  # sqrt(2/pi)
    return 0.5 * x * (1.0 + jnp.tanh(c * (x + 0.044715 * x * x * x)))


def _gelu_erf(x):
    # exact-erf GELU (used only in the pure-JAX reference)
    return 0.5 * x * (1.0 + lax.erf(x * (2.0 ** -0.5)))


# ---------------- the single fused Pallas kernel ----------------
def vit_kernel(patches_ref, rowadd_ref, patchw_ref, lnp_ref,
               wqkv_ref, bqkv_ref, wproj_ref, bproj_ref,
               wfc1_ref, bfc1_ref, wfc2_ref, bfc2_ref,
               fnorm_ref, headw_ref, headb_ref,
               o_ref):
    R = patches_ref.shape[0]          # B * SEQ_PAD rows
    NB = R // SEQ_PAD                 # batch size (static)
    bf16 = jnp.bfloat16

    # patch embed (Conv2d k=s=P as matmul, bf16 MXU / f32 acc) + cls/pos/bias
    # additive term (f32).
    x = jnp.dot(patches_ref[...], patchw_ref[...],
                preferred_element_type=jnp.float32) + rowadd_ref[...]

    # key-validity mask for the padded sequence positions (hoisted out of loop)
    kidx = lax.broadcasted_iota(jnp.int32, (1, SEQ_PAD, SEQ_PAD), 2)
    kmask = jnp.where(kidx < SEQ, 0.0, -1e30).astype(jnp.float32)

    for d in range(DEPTH):            # static depth loop inside the kernel
        lp = lnp_ref[d]                               # (4, EMBED)
        ln1w, ln1b = lp[0:1, :], lp[1:2, :]
        ln2w, ln2b = lp[2:3, :], lp[3:4, :]

        # ---- multi-head self-attention branch ----
        h = _layernorm(x, ln1w, ln1b)
        # 1/sqrt(HEAD_DIM) is pre-folded into the Q slice of wqkv/bqkv.
        qkv = jnp.dot(h.astype(bf16), wqkv_ref[d],
                      preferred_element_type=jnp.float32) + bqkv_ref[d]
        qkv3 = qkv.reshape(NB, SEQ_PAD, 3 * EMBED)    # tile-aligned reshape
        # ONE transpose of K for all heads; head slices are sublane-aligned.
        kT = jnp.swapaxes(qkv3[:, :, EMBED:2 * EMBED], 1, 2).astype(bf16)  # (NB,E,S)
        qkv3_bf = qkv3.astype(bf16)
        wproj_d = wproj_ref[d]                        # (EMBED, EMBED) bf16

        for hh in range(HEADS):                       # static head loop
            q = qkv3_bf[:, :, hh * HEAD_DIM:(hh + 1) * HEAD_DIM]
            v = qkv3_bf[:, :, 2 * EMBED + hh * HEAD_DIM:
                        2 * EMBED + (hh + 1) * HEAD_DIM]
            kTh = kT[:, hh * HEAD_DIM:(hh + 1) * HEAD_DIM, :]
            att = jnp.einsum('bqd,bdk->bqk', q, kTh,
                             preferred_element_type=jnp.float32) + kmask
            att = att - jnp.max(att, axis=-1, keepdims=True)
            att = jnp.exp(att)
            att = att * pl.reciprocal(jnp.sum(att, axis=-1, keepdims=True),
                                      approx=True)
            oh = jnp.einsum('bqk,bkd->bqd', att.astype(bf16), v,
                            preferred_element_type=jnp.float32)
            # fold output projection into the head loop:
            #   ao @ Wproj == sum_h oh_h @ Wproj[h-slice]
            x = x + jnp.dot(oh.reshape(R, HEAD_DIM).astype(bf16),
                            wproj_d[hh * HEAD_DIM:(hh + 1) * HEAD_DIM, :],
                            preferred_element_type=jnp.float32)
        x = x + bproj_ref[d]

        # ---- MLP branch ----
        h2 = _layernorm(x, ln2w, ln2b)
        h2 = jnp.dot(h2.astype(bf16), wfc1_ref[d],
                     preferred_element_type=jnp.float32) + bfc1_ref[d]
        h2 = _gelu_tanh(h2)
        x = x + jnp.dot(h2.astype(bf16), wfc2_ref[d],
                        preferred_element_type=jnp.float32) + bfc2_ref[d]

    # ---- final norm + head, on cls rows only (LN is row-wise => exact) ----
    cls_x = x.reshape(NB, SEQ_PAD, EMBED)[:, 0, :]                 # (NB, EMBED)
    xf = _layernorm(cls_x, fnorm_ref[0:1, :], fnorm_ref[1:2, :])
    logits = jnp.dot(xf.astype(bf16), headw_ref[...],
                     preferred_element_type=jnp.float32) + headb_ref[...]
    o_ref[...] = logits                                            # one store


# ---------------- glue (plain JAX) ----------------
def extract_patches(x):
    # NCHW -> (B, N, C*P*P), row-major spatial grid, channel-major per patch
    # (matches Conv2d(kernel=stride=P) weight flattening).
    B, C, H, W = x.shape
    hn, wn = H // PATCH, W // PATCH
    p = x.reshape(B, C, hn, PATCH, wn, PATCH)
    p = p.transpose(0, 2, 4, 1, 3, 5)
    return p.reshape(B, hn * wn, C * PATCH * PATCH)


def vit_forward(x, params):
    B = x.shape[0]
    bf16 = jnp.bfloat16

    # Row-padded patch matrix: per batch element the row layout is
    # [cls-slot(0), 16 patch rows, 7 zero pad rows].
    patches = extract_patches(x)                                   # (B,16,48)
    patches_pad = jnp.zeros((B, SEQ_PAD, CPP), jnp.float32)
    patches_pad = patches_pad.at[:, 1:1 + NPATCH, :].set(patches)
    patches_pad = patches_pad.reshape(B * SEQ_PAD, CPP).astype(bf16)

    # Per-row additive term: cls row gets cls_token+pos[0]; patch rows get
    # conv bias + pos[1:]; pad rows get 0.
    row_add = jnp.zeros((SEQ_PAD, EMBED), jnp.float32)
    row_add = row_add.at[0].set(params['cls_token'][0, 0] + params['pos_embed'][0, 0])
    row_add = row_add.at[1:SEQ].set(params['patch_b'][0] + params['pos_embed'][0, 1:SEQ])
    row_add = jnp.tile(row_add, (B, 1))                            # (B*SEQ_PAD, E)

    fnorm = jnp.concatenate([params['norm_w'], params['norm_b']], axis=0)  # (2,E)

    # Fold the 1/sqrt(HEAD_DIM) attention scale into the Q slice of QKV.
    scale = HEAD_DIM ** -0.5
    wqkv = params['wqkv'].at[:, :, :EMBED].multiply(scale)
    bqkv = params['bqkv'].at[:, :, :EMBED].multiply(scale)

    return pl.pallas_call(
        vit_kernel,
        out_shape=jax.ShapeDtypeStruct((B, NUM_CLASSES), jnp.float32),
    )(patches_pad, row_add, params['patch_w'].astype(bf16), params['lnp'],
      wqkv.astype(bf16), bqkv,
      params['wproj'].astype(bf16), params['bproj'],
      params['wfc1'].astype(bf16), params['bfc1'],
      params['wfc2'].astype(bf16), params['bfc2'],
      fnorm, params['head_w'].astype(bf16), params['head_b'])


# ---------------- deterministic parameter init ----------------
def init_params(key):
    def nrm(k, shape, std=0.02):
        return jax.random.normal(k, shape, jnp.float32) * std

    keys = jax.random.split(key, 4)
    p = {
        # conv weight (D,C,P,P) pre-flattened / transposed to (C*P*P, D)
        'patch_w': nrm(keys[0], (CPP, EMBED)),
        'patch_b': jnp.zeros((1, EMBED), jnp.float32),
        'cls_token': nrm(keys[1], (1, 1, EMBED)),
        'pos_embed': nrm(keys[2], (1, SEQ, EMBED)),
        'norm_w': jnp.ones((1, EMBED), jnp.float32),
        'norm_b': jnp.zeros((1, EMBED), jnp.float32),
        'head_w': nrm(keys[3], (EMBED, NUM_CLASSES)),
        'head_b': jnp.zeros((1, NUM_CLASSES), jnp.float32),
    }
    wqkv, wproj, wfc1, wfc2 = [], [], [], []
    for d in range(DEPTH):
        bk = jax.random.split(jax.random.fold_in(key, 100 + d), 4)
        wqkv.append(nrm(bk[0], (EMBED, 3 * EMBED)))   # qkv_bias=True
        wproj.append(nrm(bk[1], (EMBED, EMBED)))
        wfc1.append(nrm(bk[2], (EMBED, HIDDEN)))
        wfc2.append(nrm(bk[3], (HIDDEN, EMBED)))
    p['wqkv'] = jnp.stack(wqkv)                       # (DEPTH, E, 3E)
    p['wproj'] = jnp.stack(wproj)                     # (DEPTH, E, E)
    p['wfc1'] = jnp.stack(wfc1)                       # (DEPTH, E, H)
    p['wfc2'] = jnp.stack(wfc2)                       # (DEPTH, H, E)
    p['bqkv'] = jnp.zeros((DEPTH, 1, 3 * EMBED), jnp.float32)
    p['bproj'] = jnp.zeros((DEPTH, 1, EMBED), jnp.float32)
    p['bfc1'] = jnp.zeros((DEPTH, 1, HIDDEN), jnp.float32)
    p['bfc2'] = jnp.zeros((DEPTH, 1, EMBED), jnp.float32)
    # LayerNorm params packed per block: [ln1_w, ln1_b, ln2_w, ln2_b]
    one_block = jnp.stack([jnp.ones((EMBED,)), jnp.zeros((EMBED,)),
                           jnp.ones((EMBED,)), jnp.zeros((EMBED,))])
    p['lnp'] = jnp.broadcast_to(one_block, (DEPTH, 4, EMBED)).astype(jnp.float32)
    return p


# ---------------- pure-JAX reference (f32, exact erf GELU / exact softmax) ---
def reference_forward(x, p):
    B = x.shape[0]
    patches = extract_patches(x)
    tokens = patches @ p['patch_w'] + p['patch_b'][0]
    cls = jnp.broadcast_to(p['cls_token'], (B, 1, EMBED))
    h = jnp.concatenate([cls, tokens], axis=1) + p['pos_embed']
    for d in range(DEPTH):
        ln1w, ln1b = p['lnp'][d, 0], p['lnp'][d, 1]
        ln2w, ln2b = p['lnp'][d, 2], p['lnp'][d, 3]
        y = _layernorm(h, ln1w, ln1b)
        qkv = y @ p['wqkv'][d] + p['bqkv'][d, 0]
        q = qkv[..., 0:EMBED].reshape(B, SEQ, HEADS, HEAD_DIM).transpose(0, 2, 1, 3)
        k = qkv[..., EMBED:2 * EMBED].reshape(B, SEQ, HEADS, HEAD_DIM).transpose(0, 2, 1, 3)
        v = qkv[..., 2 * EMBED:].reshape(B, SEQ, HEADS, HEAD_DIM).transpose(0, 2, 1, 3)
        att = jnp.einsum('bhqd,bhkd->bhqk', q, k) * (HEAD_DIM ** -0.5)
        att = jax.nn.softmax(att, axis=-1)
        ao = jnp.einsum('bhqk,bhkd->bhqd', att, v).transpose(0, 2, 1, 3).reshape(B, SEQ, EMBED)
        h = h + (ao @ p['wproj'][d] + p['bproj'][d, 0])
        y2 = _layernorm(h, ln2w, ln2b)
        y2 = _gelu_erf(y2 @ p['wfc1'][d] + p['bfc1'][d, 0])
        h = h + (y2 @ p['wfc2'][d] + p['bfc2'][d, 0])
    cls_out = _layernorm(h[:, 0, :], p['norm_w'][0], p['norm_b'][0])
    return cls_out @ p['head_w'] + p['head_b'][0]


if __name__ == "__main__":
    key = jax.random.PRNGKey(0)
    kx, kp = jax.random.split(key)
    x = jax.random.normal(kx, (BATCH, IN_CHANS, IMG, IMG), jnp.float32)
    params = init_params(kp)

    fwd = jax.jit(vit_forward)
    out = jax.block_until_ready(fwd(x, params))

    assert out.shape == (BATCH, NUM_CLASSES)
    assert bool(jnp.all(jnp.isfinite(out)))
    ref = reference_forward(x, params)
    assert bool(jnp.allclose(out, ref, atol=2e-2, rtol=2e-2))

    print("KERNEL_OK")
</pallas_src>

<mosaic_0001>
module attributes {stable_mosaic.version = 11 : i64} {
  func.func @vit_kernel(%arg0: memref<48x48xbf16, #tpu.memory_space<vmem>>, %arg1: memref<48x32xf32, #tpu.memory_space<vmem>>, %arg2: memref<48x32xbf16, #tpu.memory_space<vmem>>, %arg3: memref<2x4x32xf32, #tpu.memory_space<vmem>>, %arg4: memref<2x32x96xbf16, #tpu.memory_space<vmem>>, %arg5: memref<2x1x96xf32, #tpu.memory_space<vmem>>, %arg6: memref<2x32x32xbf16, #tpu.memory_space<vmem>>, %arg7: memref<2x1x32xf32, #tpu.memory_space<vmem>>, %arg8: memref<2x32x128xbf16, #tpu.memory_space<vmem>>, %arg9: memref<2x1x128xf32, #tpu.memory_space<vmem>>, %arg10: memref<2x128x32xbf16, #tpu.memory_space<vmem>>, %arg11: memref<2x1x32xf32, #tpu.memory_space<vmem>>, %arg12: memref<2x32xf32, #tpu.memory_space<vmem>>, %arg13: memref<32x10xbf16, #tpu.memory_space<vmem>>, %arg14: memref<1x10xf32, #tpu.memory_space<vmem>>, %arg15: memref<2x10xf32, #tpu.memory_space<vmem>>) attributes {dimension_semantics = [], scalar_prefetch = 0 : i64, scratch_operands = 0 : i64, tpu.core_type = #tpu.core_type<tc>} {
    %c0 = arith.constant 0 : index
    %c0_0 = arith.constant 0 : index
    %0 = vector.load %arg0[%c0, %c0_0] : memref<48x48xbf16, #tpu.memory_space<vmem>>, vector<48x48xbf16>
    %c0_1 = arith.constant 0 : index
    %c0_2 = arith.constant 0 : index
    %1 = vector.load %arg2[%c0_1, %c0_2] : memref<48x32xbf16, #tpu.memory_space<vmem>>, vector<48x32xbf16>
    %cst = arith.constant dense<0.000000e+00> : vector<48x32xf32>
    %2 = tpu.matmul %0, %1, %cst {dimension_numbers = #tpu.dot_dimension_numbers<[1], [0], [0], [1], [0, 0, 1, 1], [], []>} : vector<48x48xbf16>, vector<48x32xbf16>, vector<48x32xf32> -> vector<48x32xf32>
    %c0_3 = arith.constant 0 : index
    %c0_4 = arith.constant 0 : index
    %3 = vector.load %arg1[%c0_3, %c0_4] : memref<48x32xf32, #tpu.memory_space<vmem>>, vector<48x32xf32>
    %4 = arith.addf %2, %3 : vector<48x32xf32>
    %5 = tpu.iota {dimensions = array<i32: 2>} : vector<1x24x24xi32>
    %c17_i32 = arith.constant 17 : i32
    %6 = vector.broadcast %c17_i32 : i32 to vector<1x24x24xi32>
    %7 = arith.cmpi slt, %5, %6 : vector<1x24x24xi32>
    %cst_5 = arith.constant 0.000000e+00 : f32
    %cst_6 = arith.constant -1.000000e+30 : f32
    %8 = vector.broadcast %cst_5 : f32 to vector<1x24x24xf32>
    %9 = vector.broadcast %cst_6 : f32 to vector<1x24x24xf32>
    %10 = arith.select %7, %8, %9 : vector<1x24x24xi1>, vector<1x24x24xf32>
    %c0_7 = arith.constant 0 : index
    %c0_8 = arith.constant 0 : index
    %c0_9 = arith.constant 0 : index
    %11 = vector.load %arg3[%c0_7, %c0_8, %c0_9] : memref<2x4x32xf32, #tpu.memory_space<vmem>>, vector<1x4x32xf32>
    %12 = vector.shape_cast %11 : vector<1x4x32xf32> to vector<4x32xf32>
    %13 = vector.extract_strided_slice %12 {offsets = [0, 0], sizes = [1, 32], strides = [1, 1]} : vector<4x32xf32> to vector<1x32xf32>
    %14 = vector.extract_strided_slice %12 {offsets = [1, 0], sizes = [1, 32], strides = [1, 1]} : vector<4x32xf32> to vector<1x32xf32>
    %15 = vector.extract_strided_slice %12 {offsets = [2, 0], sizes = [1, 32], strides = [1, 1]} : vector<4x32xf32> to vector<1x32xf32>
    %16 = vector.extract_strided_slice %12 {offsets = [3, 0], sizes = [1, 32], strides = [1, 1]} : vector<4x32xf32> to vector<1x32xf32>
    %cst_10 = arith.constant dense<0.000000e+00> : vector<48xf32>
    %17 = vector.multi_reduction <add>, %4, %cst_10 [1] : vector<48x32xf32> to vector<48xf32>
    %18 = vector.shape_cast %17 : vector<48xf32> to vector<48x1xf32>
    %cst_11 = arith.constant 3.200000e+01 : f32
    %19 = vector.broadcast %cst_11 : f32 to vector<48x1xf32>
    %20 = arith.divf %18, %19 : vector<48x1xf32>
    %21 = vector.broadcast %20 : vector<48x1xf32> to vector<48x32xf32>
    %22 = arith.subf %4, %21 : vector<48x32xf32>
    %23 = arith.mulf %22, %22 : vector<48x32xf32>
    %cst_12 = arith.constant dense<0.000000e+00> : vector<48xf32>
    %24 = vector.multi_reduction <add>, %23, %cst_12 [1] : vector<48x32xf32> to vector<48xf32>
    %25 = vector.shape_cast %24 : vector<48xf32> to vector<48x1xf32>
    %cst_13 = arith.constant 3.200000e+01 : f32
    %26 = vector.broadcast %cst_13 : f32 to vector<48x1xf32>
    %27 = arith.divf %25, %26 : vector<48x1xf32>
    %28 = vector.broadcast %20 : vector<48x1xf32> to vector<48x32xf32>
    %29 = arith.subf %4, %28 : vector<48x32xf32>
    %cst_14 = arith.constant 9.99999997E-7 : f32
    %30 = vector.broadcast %cst_14 : f32 to vector<48x1xf32>
    %31 = arith.addf %27, %30 : vector<48x1xf32>
    %32 = math.rsqrt %31 : vector<48x1xf32>
    %33 = vector.broadcast %32 : vector<48x1xf32> to vector<48x32xf32>
    %34 = arith.mulf %29, %33 : vector<48x32xf32>
    %35 = vector.broadcast %13 : vector<1x32xf32> to vector<48x32xf32>
    %36 = arith.mulf %34, %35 : vector<48x32xf32>
    %37 = vector.broadcast %14 : vector<1x32xf32> to vector<48x32xf32>
    %38 = arith.addf %36, %37 : vector<48x32xf32>
    %39 = arith.truncf %38 : vector<48x32xf32> to vector<48x32xbf16>
    %c0_15 = arith.constant 0 : index
    %c0_16 = arith.constant 0 : index
    %c0_17 = arith.constant 0 : index
    %40 = vector.load %arg4[%c0_15, %c0_16, %c0_17] : memref<2x32x96xbf16, #tpu.memory_space<vmem>>, vector<1x32x96xbf16>
    %41 = vector.shape_cast %40 : vector<1x32x96xbf16> to vector<32x96xbf16>
    %cst_18 = arith.constant dense<0.000000e+00> : vector<48x96xf32>
    %42 = tpu.matmul %39, %41, %cst_18 {dimension_numbers = #tpu.dot_dimension_numbers<[1], [0], [0], [1], [0, 0, 1, 1], [], []>} : vector<48x32xbf16>, vector<32x96xbf16>, vector<48x96xf32> -> vector<48x96xf32>
    %c0_19 = arith.constant 0 : index
    %c0_20 = arith.constant 0 : index
    %c0_21 = arith.constant 0 : index
    %43 = vector.load %arg5[%c0_19, %c0_20, %c0_21] : memref<2x1x96xf32, #tpu.memory_space<vmem>>, vector<1x1x96xf32>
    %44 = vector.shape_cast %43 : vector<1x1x96xf32> to vector<1x96xf32>
    %45 = vector.broadcast %44 : vector<1x96xf32> to vector<48x96xf32>
    %46 = arith.addf %42, %45 : vector<48x96xf32>
    %47 = vector.shape_cast %46 : vector<48x96xf32> to vector<2x24x96xf32>
    %48 = vector.extract_strided_slice %47 {offsets = [0, 0, 32], sizes = [2, 24, 32], strides = [1, 1, 1]} : vector<2x24x96xf32> to vector<2x24x32xf32>
    %49 = tpu.transpose %48, [0, 2, 1] : vector<2x24x32xf32> -> vector<2x32x24xf32>
    %50 = arith.truncf %49 : vector<2x32x24xf32> to vector<2x32x24xbf16>
    %51 = arith.truncf %47 : vector<2x24x96xf32> to vector<2x24x96xbf16>
    %c0_22 = arith.constant 0 : index
    %c0_23 = arith.constant 0 : index
    %c0_24 = arith.constant 0 : index
    %52 = vector.load %arg6[%c0_22, %c0_23, %c0_24] : memref<2x32x32xbf16, #tpu.memory_space<vmem>>, vector<1x32x32xbf16>
    %53 = vector.shape_cast %52 : vector<1x32x32xbf16> to vector<32x32xbf16>
    %54 = vector.extract_strided_slice %51 {offsets = [0, 0, 0], sizes = [2, 24, 8], strides = [1, 1, 1]} : vector<2x24x96xbf16> to vector<2x24x8xbf16>
    %55 = vector.extract_strided_slice %51 {offsets = [0, 0, 64], sizes = [2, 24, 8], strides = [1, 1, 1]} : vector<2x24x96xbf16> to vector<2x24x8xbf16>
    %56 = vector.extract_strided_slice %50 {offsets = [0, 0, 0], sizes = [2, 8, 24], strides = [1, 1, 1]} : vector<2x32x24xbf16> to vector<2x8x24xbf16>
    "tpu.trace_start"() <{level = 10 : i32, message = "bqd,bdk->bqk"}> : () -> ()
    %cst_25 = arith.constant dense<0.000000e+00> : vector<2x24x24xf32>
    %57 = tpu.matmul %54, %56, %cst_25 {dimension_numbers = #tpu.dot_dimension_numbers<[2], [1], [1], [2], [0, 0, 0, 1, 1, 2], [0], [0]>} : vector<2x24x8xbf16>, vector<2x8x24xbf16>, vector<2x24x24xf32> -> vector<2x24x24xf32>
    "tpu.trace_stop"() : () -> ()
    %58 = vector.broadcast %10 : vector<1x24x24xf32> to vector<2x24x24xf32>
    %59 = arith.addf %57, %58 : vector<2x24x24xf32>
    %cst_26 = arith.constant dense<0xFF800000> : vector<2x24xf32>
    %60 = vector.multi_reduction <maximumf>, %59, %cst_26 [2] : vector<2x24x24xf32> to vector<2x24xf32>
    %61 = vector.shape_cast %60 : vector<2x24xf32> to vector<2x24x1xf32>
    %62 = vector.broadcast %61 : vector<2x24x1xf32> to vector<2x24x24xf32>
    %63 = arith.subf %59, %62 : vector<2x24x24xf32>
    %64 = math.exp %63 : vector<2x24x24xf32>
    %cst_27 = arith.constant dense<0.000000e+00> : vector<2x24xf32>
    %65 = vector.multi_reduction <add>, %64, %cst_27 [2] : vector<2x24x24xf32> to vector<2x24xf32>
    %66 = vector.shape_cast %65 : vector<2x24xf32> to vector<2x24x1xf32>
    %67 = tpu.reciprocal %66 {approx = true} : vector<2x24x1xf32> -> vector<2x24x1xf32>
    %68 = vector.broadcast %67 : vector<2x24x1xf32> to vector<2x24x24xf32>
    %69 = arith.mulf %64, %68 : vector<2x24x24xf32>
    %70 = arith.truncf %69 : vector<2x24x24xf32> to vector<2x24x24xbf16>
    "tpu.trace_start"() <{level = 10 : i32, message = "bqk,bkd->bqd"}> : () -> ()
    %cst_28 = arith.constant dense<0.000000e+00> : vector<2x24x8xf32>
    %71 = tpu.matmul %70, %55, %cst_28 {dimension_numbers = #tpu.dot_dimension_numbers<[2], [1], [1], [2], [0, 0, 0, 1, 1, 2], [0], [0]>} : vector<2x24x24xbf16>, vector<2x24x8xbf16>, vector<2x24x8xf32> -> vector<2x24x8xf32>
    "tpu.trace_stop"() : () -> ()
    %72 = vector.shape_cast %71 : vector<2x24x8xf32> to vector<48x8xf32>
    %73 = arith.truncf %72 : vector<48x8xf32> to vector<48x8xbf16>
    %74 = vector.extract_strided_slice %53 {offsets = [0, 0], sizes = [8, 32], strides = [1, 1]} : vector<32x32xbf16> to vector<8x32xbf16>
    %cst_29 = arith.constant dense<0.000000e+00> : vector<48x32xf32>
    %75 = tpu.matmul %73, %74, %cst_29 {dimension_numbers = #tpu.dot_dimension_numbers<[1], [0], [0], [1], [0, 0, 1, 1], [], []>} : vector<48x8xbf16>, vector<8x32xbf16>, vector<48x32xf32> -> vector<48x32xf32>
    %76 = arith.addf %4, %75 : vector<48x32xf32>
    %77 = vector.extract_strided_slice %51 {offsets = [0, 0, 8], sizes = [2, 24, 8], strides = [1, 1, 1]} : vector<2x24x96xbf16> to vector<2x24x8xbf16>
    %78 = vector.extract_strided_slice %51 {offsets = [0, 0, 72], sizes = [2, 24, 8], strides = [1, 1, 1]} : vector<2x24x96xbf16> to vector<2x24x8xbf16>
    %79 = vector.extract_strided_slice %50 {offsets = [0, 8, 0], sizes = [2, 8, 24], strides = [1, 1, 1]} : vector<2x32x24xbf16> to vector<2x8x24xbf16>
    "tpu.trace_start"() <{level = 10 : i32, message = "bqd,bdk->bqk"}> : () -> ()
    %cst_30 = arith.constant dense<0.000000e+00> : vector<2x24x24xf32>
    %80 = tpu.matmul %77, %79, %cst_30 {dimension_numbers = #tpu.dot_dimension_numbers<[2], [1], [1], [2], [0, 0, 0, 1, 1, 2], [0], [0]>} : vector<2x24x8xbf16>, vector<2x8x24xbf16>, vector<2x24x24xf32> -> vector<2x24x24xf32>
    "tpu.trace_stop"() : () -> ()
    %81 = vector.broadcast %10 : vector<1x24x24xf32> to vector<2x24x24xf32>
    %82 = arith.addf %80, %81 : vector<2x24x24xf32>
    %cst_31 = arith.constant dense<0xFF800000> : vector<2x24xf32>
    %83 = vector.multi_reduction <maximumf>, %82, %cst_31 [2] : vector<2x24x24xf32> to vector<2x24xf32>
    %84 = vector.shape_cast %83 : vector<2x24xf32> to vector<2x24x1xf32>
    %85 = vector.broadcast %84 : vector<2x24x1xf32> to vector<2x24x24xf32>
    %86 = arith.subf %82, %85 : vector<2x24x24xf32>
    %87 = math.exp %86 : vector<2x24x24xf32>
    %cst_32 = arith.constant dense<0.000000e+00> : vector<2x24xf32>
    %88 = vector.multi_reduction <add>, %87, %cst_32 [2] : vector<2x24x24xf32> to vector<2x24xf32>
    %89 = vector.shape_cast %88 : vector<2x24xf32> to vector<2x24x1xf32>
    %90 = tpu.reciprocal %89 {approx = true} : vector<2x24x1xf32> -> vector<2x24x1xf32>
    %91 = vector.broadcast %90 : vector<2x24x1xf32> to vector<2x24x24xf32>
    %92 = arith.mulf %87, %91 : vector<2x24x24xf32>
    %93 = arith.truncf %92 : vector<2x24x24xf32> to vector<2x24x24xbf16>
    "tpu.trace_start"() <{level = 10 : i32, message = "bqk,bkd->bqd"}> : () -> ()
    %cst_33 = arith.constant dense<0.000000e+00> : vector<2x24x8xf32>
    %94 = tpu.matmul %93, %78, %cst_33 {dimension_numbers = #tpu.dot_dimension_numbers<[2], [1], [1], [2], [0, 0, 0, 1, 1, 2], [0], [0]>} : vector<2x24x24xbf16>, vector<2x24x8xbf16>, vector<2x24x8xf32> -> vector<2x24x8xf32>
    "tpu.trace_stop"() : () -> ()
    %95 = vector.shape_cast %94 : vector<2x24x8xf32> to vector<48x8xf32>
    %96 = arith.truncf %95 : vector<48x8xf32> to vector<48x8xbf16>
    %97 = vector.extract_strided_slice %53 {offsets = [8, 0], sizes = [8, 32], strides = [1, 1]} : vector<32x32xbf16> to vector<8x32xbf16>
    %cst_34 = arith.constant dense<0.000000e+00> : vector<48x32xf32>
    %98 = tpu.matmul %96, %97, %cst_34 {dimension_numbers = #tpu.dot_dimension_numbers<[1], [0], [0], [1], [0, 0, 1, 1], [], []>} : vector<48x8xbf16>, vector<8x32xbf16>, vector<48x32xf32> -> vector<48x32xf32>
    %99 = arith.addf %76, %98 : vector<48x32xf32>
    %100 = vector.extract_strided_slice %51 {offsets = [0, 0, 16], sizes = [2, 24, 8], strides = [1, 1, 1]} : vector<2x24x96xbf16> to vector<2x24x8xbf16>
    %101 = vector.extract_strided_slice %51 {offsets = [0, 0, 80], sizes = [2, 24, 8], strides = [1, 1, 1]} : vector<2x24x96xbf16> to vector<2x24x8xbf16>
    %102 = vector.extract_strided_slice %50 {offsets = [0, 16, 0], sizes = [2, 8, 24], strides = [1, 1, 1]} : vector<2x32x24xbf16> to vector<2x8x24xbf16>
    "tpu.trace_start"() <{level = 10 : i32, message = "bqd,bdk->bqk"}> : () -> ()
    %cst_35 = arith.constant dense<0.000000e+00> : vector<2x24x24xf32>
    %103 = tpu.matmul %100, %102, %cst_35 {dimension_numbers = #tpu.dot_dimension_numbers<[2], [1], [1], [2], [0, 0, 0, 1, 1, 2], [0], [0]>} : vector<2x24x8xbf16>, vector<2x8x24xbf16>, vector<2x24x24xf32> -> vector<2x24x24xf32>
    "tpu.trace_stop"() : () -> ()
    %104 = vector.broadcast %10 : vector<1x24x24xf32> to vector<2x24x24xf32>
    %105 = arith.addf %103, %104 : vector<2x24x24xf32>
    %cst_36 = arith.constant dense<0xFF800000> : vector<2x24xf32>
    %106 = vector.multi_reduction <maximumf>, %105, %cst_36 [2] : vector<2x24x24xf32> to vector<2x24xf32>
    %107 = vector.shape_cast %106 : vector<2x24xf32> to vector<2x24x1xf32>
    %108 = vector.broadcast %107 : vector<2x24x1xf32> to vector<2x24x24xf32>
    %109 = arith.subf %105, %108 : vector<2x24x24xf32>
    %110 = math.exp %109 : vector<2x24x24xf32>
    %cst_37 = arith.constant dense<0.000000e+00> : vector<2x24xf32>
    %111 = vector.multi_reduction <add>, %110, %cst_37 [2] : vector<2x24x24xf32> to vector<2x24xf32>
    %112 = vector.shape_cast %111 : vector<2x24xf32> to vector<2x24x1xf32>
    %113 = tpu.reciprocal %112 {approx = true} : vector<2x24x1xf32> -> vector<2x24x1xf32>
    %114 = vector.broadcast %113 : vector<2x24x1xf32> to vector<2x24x24xf32>
    %115 = arith.mulf %110, %114 : vector<2x24x24xf32>
    %116 = arith.truncf %115 : vector<2x24x24xf32> to vector<2x24x24xbf16>
    "tpu.trace_start"() <{level = 10 : i32, message = "bqk,bkd->bqd"}> : () -> ()
    %cst_38 = arith.constant dense<0.000000e+00> : vector<2x24x8xf32>
    %117 = tpu.matmul %116, %101, %cst_38 {dimension_numbers = #tpu.dot_dimension_numbers<[2], [1], [1], [2], [0, 0, 0, 1, 1, 2], [0], [0]>} : vector<2x24x24xbf16>, vector<2x24x8xbf16>, vector<2x24x8xf32> -> vector<2x24x8xf32>
    "tpu.trace_stop"() : () -> ()
    %118 = vector.shape_cast %117 : vector<2x24x8xf32> to vector<48x8xf32>
    %119 = arith.truncf %118 : vector<48x8xf32> to vector<48x8xbf16>
    %120 = vector.extract_strided_slice %53 {offsets = [16, 0], sizes = [8, 32], strides = [1, 1]} : vector<32x32xbf16> to vector<8x32xbf16>
    %cst_39 = arith.constant dense<0.000000e+00> : vector<48x32xf32>
    %121 = tpu.matmul %119, %120, %cst_39 {dimension_numbers = #tpu.dot_dimension_numbers<[1], [0], [0], [1], [0, 0, 1, 1], [], []>} : vector<48x8xbf16>, vector<8x32xbf16>, vector<48x32xf32> -> vector<48x32xf32>
    %122 = arith.addf %99, %121 : vector<48x32xf32>
    %123 = vector.extract_strided_slice %51 {offsets = [0, 0, 24], sizes = [2, 24, 8], strides = [1, 1, 1]} : vector<2x24x96xbf16> to vector<2x24x8xbf16>
    %124 = vector.extract_strided_slice %51 {offsets = [0, 0, 88], sizes = [2, 24, 8], strides = [1, 1, 1]} : vector<2x24x96xbf16> to vector<2x24x8xbf16>
    %125 = vector.extract_strided_slice %50 {offsets = [0, 24, 0], sizes = [2, 8, 24], strides = [1, 1, 1]} : vector<2x32x24xbf16> to vector<2x8x24xbf16>
    "tpu.trace_start"() <{level = 10 : i32, message = "bqd,bdk->bqk"}> : () -> ()
    %cst_40 = arith.constant dense<0.000000e+00> : vector<2x24x24xf32>
    %126 = tpu.matmul %123, %125, %cst_40 {dimension_numbers = #tpu.dot_dimension_numbers<[2], [1], [1], [2], [0, 0, 0, 1, 1, 2], [0], [0]>} : vector<2x24x8xbf16>, vector<2x8x24xbf16>, vector<2x24x24xf32> -> vector<2x24x24xf32>
    "tpu.trace_stop"() : () -> ()
    %127 = vector.broadcast %10 : vector<1x24x24xf32> to vector<2x24x24xf32>
    %128 = arith.addf %126, %127 : vector<2x24x24xf32>
    %cst_41 = arith.constant dense<0xFF800000> : vector<2x24xf32>
    %129 = vector.multi_reduction <maximumf>, %128, %cst_41 [2] : vector<2x24x24xf32> to vector<2x24xf32>
    %130 = vector.shape_cast %129 : vector<2x24xf32> to vector<2x24x1xf32>
    %131 = vector.broadcast %130 : vector<2x24x1xf32> to vector<2x24x24xf32>
    %132 = arith.subf %128, %131 : vector<2x24x24xf32>
    %133 = math.exp %132 : vector<2x24x24xf32>
    %cst_42 = arith.constant dense<0.000000e+00> : vector<2x24xf32>
    %134 = vector.multi_reduction <add>, %133, %cst_42 [2] : vector<2x24x24xf32> to vector<2x24xf32>
    %135 = vector.shape_cast %134 : vector<2x24xf32> to vector<2x24x1xf32>
    %136 = tpu.reciprocal %135 {approx = true} : vector<2x24x1xf32> -> vector<2x24x1xf32>
    %137 = vector.broadcast %136 : vector<2x24x1xf32> to vector<2x24x24xf32>
    %138 = arith.mulf %133, %137 : vector<2x24x24xf32>
    %139 = arith.truncf %138 : vector<2x24x24xf32> to vector<2x24x24xbf16>
    "tpu.trace_start"() <{level = 10 : i32, message = "bqk,bkd->bqd"}> : () -> ()
    %cst_43 = arith.constant dense<0.000000e+00> : vector<2x24x8xf32>
    %140 = tpu.matmul %139, %124, %cst_43 {dimension_numbers = #tpu.dot_dimension_numbers<[2], [1], [1], [2], [0, 0, 0, 1, 1, 2], [0], [0]>} : vector<2x24x24xbf16>, vector<2x24x8xbf16>, vector<2x24x8xf32> -> vector<2x24x8xf32>
    "tpu.trace_stop"() : () -> ()
    %141 = vector.shape_cast %140 : vector<2x24x8xf32> to vector<48x8xf32>
    %142 = arith.truncf %141 : vector<48x8xf32> to vector<48x8xbf16>
    %143 = vector.extract_strided_slice %53 {offsets = [24, 0], sizes = [8, 32], strides = [1, 1]} : vector<32x32xbf16> to vector<8x32xbf16>
    %cst_44 = arith.constant dense<0.000000e+00> : vector<48x32xf32>
    %144 = tpu.matmul %142, %143, %cst_44 {dimension_numbers = #tpu.dot_dimension_numbers<[1], [0], [0], [1], [0, 0, 1, 1], [], []>} : vector<48x8xbf16>, vector<8x32xbf16>, vector<48x32xf32> -> vector<48x32xf32>
    %145 = arith.addf %122, %144 : vector<48x32xf32>
    %c0_45 = arith.constant 0 : index
    %c0_46 = arith.constant 0 : index
    %c0_47 = arith.constant 0 : index
    %146 = vector.load %arg7[%c0_45, %c0_46, %c0_47] : memref<2x1x32xf32, #tpu.memory_space<vmem>>, vector<1x1x32xf32>
    %147 = vector.shape_cast %146 : vector<1x1x32xf32> to vector<1x32xf32>
    %148 = vector.broadcast %147 : vector<1x32xf32> to vector<48x32xf32>
    %149 = arith.addf %145, %148 : vector<48x32xf32>
    %cst_48 = arith.constant dense<0.000000e+00> : vector<48xf32>
    %150 = vector.multi_reduction <add>, %149, %cst_48 [1] : vector<48x32xf32> to vector<48xf32>
    %151 = vector.shape_cast %150 : vector<48xf32> to vector<48x1xf32>
    %cst_49 = arith.constant 3.200000e+01 : f32
    %152 = vector.broadcast %cst_49 : f32 to vector<48x1xf32>
    %153 = arith.divf %151, %152 : vector<48x1xf32>
    %154 = vector.broadcast %153 : vector<48x1xf32> to vector<48x32xf32>
    %155 = arith.subf %149, %154 : vector<48x32xf32>
    %156 = arith.mulf %155, %155 : vector<48x32xf32>
    %cst_50 = arith.constant dense<0.000000e+00> : vector<48xf32>
    %157 = vector.multi_reduction <add>, %156, %cst_50 [1] : vector<48x32xf32> to vector<48xf32>
    %158 = vector.shape_cast %157 : vector<48xf32> to vector<48x1xf32>
    %cst_51 = arith.constant 3.200000e+01 : f32
    %159 = vector.broadcast %cst_51 : f32 to vector<48x1xf32>
    %160 = arith.divf %158, %159 : vector<48x1xf32>
    %161 = vector.broadcast %153 : vector<48x1xf32> to vector<48x32xf32>
    %162 = arith.subf %149, %161 : vector<48x32xf32>
    %cst_52 = arith.constant 9.99999997E-7 : f32
    %163 = vector.broadcast %cst_52 : f32 to vector<48x1xf32>
    %164 = arith.addf %160, %163 : vector<48x1xf32>
    %165 = math.rsqrt %164 : vector<48x1xf32>
    %166 = vector.broadcast %165 : vector<48x1xf32> to vector<48x32xf32>
    %167 = arith.mulf %162, %166 : vector<48x32xf32>
    %168 = vector.broadcast %15 : vector<1x32xf32> to vector<48x32xf32>
    %169 = arith.mulf %167, %168 : vector<48x32xf32>
    %170 = vector.broadcast %16 : vector<1x32xf32> to vector<48x32xf32>
    %171 = arith.addf %169, %170 : vector<48x32xf32>
    %172 = arith.truncf %171 : vector<48x32xf32> to vector<48x32xbf16>
    %c0_53 = arith.constant 0 : index
    %c0_54 = arith.constant 0 : index
    %c0_55 = arith.constant 0 : index
    %173 = vector.load %arg8[%c0_53, %c0_54, %c0_55] : memref<2x32x128xbf16, #tpu.memory_space<vmem>>, vector<1x32x128xbf16>
    %174 = vector.shape_cast %173 : vector<1x32x128xbf16> to vector<32x128xbf16>
    %cst_56 = arith.constant dense<0.000000e+00> : vector<48x128xf32>
    %175 = tpu.matmul %172, %174, %cst_56 {dimension_numbers = #tpu.dot_dimension_numbers<[1], [0], [0], [1], [0, 0, 1, 1], [], []>} : vector<48x32xbf16>, vector<32x128xbf16>, vector<48x128xf32> -> vector<48x128xf32>
    %c0_57 = arith.constant 0 : index
    %c0_58 = arith.constant 0 : index
    %c0_59 = arith.constant 0 : index
    %176 = vector.load %arg9[%c0_57, %c0_58, %c0_59] : memref<2x1x128xf32, #tpu.memory_space<vmem>>, vector<1x1x128xf32>
    %177 = vector.shape_cast %176 : vector<1x1x128xf32> to vector<1x128xf32>
    %178 = vector.broadcast %177 : vector<1x128xf32> to vector<48x128xf32>
    %179 = arith.addf %175, %178 : vector<48x128xf32>
    %cst_60 = arith.constant 5.000000e-01 : f32
    %180 = vector.broadcast %cst_60 : f32 to vector<48x128xf32>
    %181 = arith.mulf %180, %179 : vector<48x128xf32>
    %cst_61 = arith.constant 4.471500e-02 : f32
    %182 = vector.broadcast %cst_61 : f32 to vector<48x128xf32>
    %183 = arith.mulf %182, %179 : vector<48x128xf32>
    %184 = arith.mulf %183, %179 : vector<48x128xf32>
    %185 = arith.mulf %184, %179 : vector<48x128xf32>
    %186 = arith.addf %179, %185 : vector<48x128xf32>
    %cst_62 = arith.constant 0.797884583 : f32
    %187 = vector.broadcast %cst_62 : f32 to vector<48x128xf32>
    %188 = arith.mulf %187, %186 : vector<48x128xf32>
    %189 = math.tanh %188 : vector<48x128xf32>
    %cst_63 = arith.constant 1.000000e+00 : f32
    %190 = vector.broadcast %cst_63 : f32 to vector<48x128xf32>
    %191 = arith.addf %190, %189 : vector<48x128xf32>
    %192 = arith.mulf %181, %191 : vector<48x128xf32>
    %193 = arith.truncf %192 : vector<48x128xf32> to vector<48x128xbf16>
    %c0_64 = arith.constant 0 : index
    %c0_65 = arith.constant 0 : index
    %c0_66 = arith.constant 0 : index
    %194 = vector.load %arg10[%c0_64, %c0_65, %c0_66] : memref<2x128x32xbf16, #tpu.memory_space<vmem>>, vector<1x128x32xbf16>
    %195 = vector.shape_cast %194 : vector<1x128x32xbf16> to vector<128x32xbf16>
    %cst_67 = arith.constant dense<0.000000e+00> : vector<48x32xf32>
    %196 = tpu.matmul %193, %195, %cst_67 {dimension_numbers = #tpu.dot_dimension_numbers<[1], [0], [0], [1], [0, 0, 1, 1], [], []>} : vector<48x128xbf16>, vector<128x32xbf16>, vector<48x32xf32> -> vector<48x32xf32>
    %197 = arith.addf %149, %196 : vector<48x32xf32>
    %c0_68 = arith.constant 0 : index
    %c0_69 = arith.constant 0 : index
    %c0_70 = arith.constant 0 : index
    %198 = vector.load %arg11[%c0_68, %c0_69, %c0_70] : memref<2x1x32xf32, #tpu.memory_space<vmem>>, vector<1x1x32xf32>
    %199 = vector.shape_cast %198 : vector<1x1x32xf32> to vector<1x32xf32>
    %200 = vector.broadcast %199 : vector<1x32xf32> to vector<48x32xf32>
    %201 = arith.addf %197, %200 : vector<48x32xf32>
    %c1 = arith.constant 1 : index
    %c0_71 = arith.constant 0 : index
    %c0_72 = arith.constant 0 : index
    %202 = vector.load %arg3[%c1, %c0_71, %c0_72] : memref<2x4x32xf32, #tpu.memory_space<vmem>>, vector<1x4x32xf32>
    %203 = vector.shape_cast %202 : vector<1x4x32xf32> to vector<4x32xf32>
    %204 = vector.extract_strided_slice %203 {offsets = [0, 0], sizes = [1, 32], strides = [1, 1]} : vector<4x32xf32> to vector<1x32xf32>
    %205 = vector.extract_strided_slice %203 {offsets = [1, 0], sizes = [1, 32], strides = [1, 1]} : vector<4x32xf32> to vector<1x32xf32>
    %206 = vector.extract_strided_slice %203 {offsets = [2, 0], sizes = [1, 32], strides = [1, 1]} : vector<4x32xf32> to vector<1x32xf32>
    %207 = vector.extract_strided_slice %203 {offsets = [3, 0], sizes = [1, 32], strides = [1, 1]} : vector<4x32xf32> to vector<1x32xf32>
    %cst_73 = arith.constant dense<0.000000e+00> : vector<48xf32>
    %208 = vector.multi_reduction <add>, %201, %cst_73 [1] : vector<48x32xf32> to vector<48xf32>
    %209 = vector.shape_cast %208 : vector<48xf32> to vector<48x1xf32>
    %cst_74 = arith.constant 3.200000e+01 : f32
    %210 = vector.broadcast %cst_74 : f32 to vector<48x1xf32>
    %211 = arith.divf %209, %210 : vector<48x1xf32>
    %212 = vector.broadcast %211 : vector<48x1xf32> to vector<48x32xf32>
    %213 = arith.subf %201, %212 : vector<48x32xf32>
    %214 = arith.mulf %213, %213 : vector<48x32xf32>
    %cst_75 = arith.constant dense<0.000000e+00> : vector<48xf32>
    %215 = vector.multi_reduction <add>, %214, %cst_75 [1] : vector<48x32xf32> to vector<48xf32>
    %216 = vector.shape_cast %215 : vector<48xf32> to vector<48x1xf32>
    %cst_76 = arith.constant 3.200000e+01 : f32
    %217 = vector.broadcast %cst_76 : f32 to vector<48x1xf32>
    %218 = arith.divf %216, %217 : vector<48x1xf32>
    %219 = vector.broadcast %211 : vector<48x1xf32> to vector<48x32xf32>
    %220 = arith.subf %201, %219 : vector<48x32xf32>
    %cst_77 = arith.constant 9.99999997E-7 : f32
    %221 = vector.broadcast %cst_77 : f32 to vector<48x1xf32>
    %222 = arith.addf %218, %221 : vector<48x1xf32>
    %223 = math.rsqrt %222 : vector<48x1xf32>
    %224 = vector.broadcast %223 : vector<48x1xf32> to vector<48x32xf32>
    %225 = arith.mulf %220, %224 : vector<48x32xf32>
    %226 = vector.broadcast %204 : vector<1x32xf32> to vector<48x32xf32>
    %227 = arith.mulf %225, %226 : vector<48x32xf32>
    %228 = vector.broadcast %205 : vector<1x32xf32> to vector<48x32xf32>
    %229 = arith.addf %227, %228 : vector<48x32xf32>
    %230 = arith.truncf %229 : vector<48x32xf32> to vector<48x32xbf16>
    %c1_78 = arith.constant 1 : index
    %c0_79 = arith.constant 0 : index
    %c0_80 = arith.constant 0 : index
    %231 = vector.load %arg4[%c1_78, %c0_79, %c0_80] : memref<2x32x96xbf16, #tpu.memory_space<vmem>>, vector<1x32x96xbf16>
    %232 = vector.shape_cast %231 : vector<1x32x96xbf16> to vector<32x96xbf16>
    %cst_81 = arith.constant dense<0.000000e+00> : vector<48x96xf32>
    %233 = tpu.matmul %230, %232, %cst_81 {dimension_numbers = #tpu.dot_dimension_numbers<[1], [0], [0], [1], [0, 0, 1, 1], [], []>} : vector<48x32xbf16>, vector<32x96xbf16>, vector<48x96xf32> -> vector<48x96xf32>
    %c1_82 = arith.constant 1 : index
    %c0_83 = arith.constant 0 : index
    %c0_84 = arith.constant 0 : index
    %234 = vector.load %arg5[%c1_82, %c0_83, %c0_84] : memref<2x1x96xf32, #tpu.memory_space<vmem>>, vector<1x1x96xf32>
    %235 = vector.shape_cast %234 : vector<1x1x96xf32> to vector<1x96xf32>
    %236 = vector.broadcast %235 : vector<1x96xf32> to vector<48x96xf32>
    %237 = arith.addf %233, %236 : vector<48x96xf32>
    %238 = vector.shape_cast %237 : vector<48x96xf32> to vector<2x24x96xf32>
    %239 = vector.extract_strided_slice %238 {offsets = [0, 0, 32], sizes = [2, 24, 32], strides = [1, 1, 1]} : vector<2x24x96xf32> to vector<2x24x32xf32>
    %240 = tpu.transpose %239, [0, 2, 1] : vector<2x24x32xf32> -> vector<2x32x24xf32>
    %241 = arith.truncf %240 : vector<2x32x24xf32> to vector<2x32x24xbf16>
    %242 = arith.truncf %238 : vector<2x24x96xf32> to vector<2x24x96xbf16>
    %c1_85 = arith.constant 1 : index
    %c0_86 = arith.constant 0 : index
    %c0_87 = arith.constant 0 : index
    %243 = vector.load %arg6[%c1_85, %c0_86, %c0_87] : memref<2x32x32xbf16, #tpu.memory_space<vmem>>, vector<1x32x32xbf16>
    %244 = vector.shape_cast %243 : vector<1x32x32xbf16> to vector<32x32xbf16>
    %245 = vector.extract_strided_slice %242 {offsets = [0, 0, 0], sizes = [2, 24, 8], strides = [1, 1, 1]} : vector<2x24x96xbf16> to vector<2x24x8xbf16>
    %246 = vector.extract_strided_slice %242 {offsets = [0, 0, 64], sizes = [2, 24, 8], strides = [1, 1, 1]} : vector<2x24x96xbf16> to vector<2x24x8xbf16>
    %247 = vector.extract_strided_slice %241 {offsets = [0, 0, 0], sizes = [2, 8, 24], strides = [1, 1, 1]} : vector<2x32x24xbf16> to vector<2x8x24xbf16>
    "tpu.trace_start"() <{level = 10 : i32, message = "bqd,bdk->bqk"}> : () -> ()
    %cst_88 = arith.constant dense<0.000000e+00> : vector<2x24x24xf32>
    %248 = tpu.matmul %245, %247, %cst_88 {dimension_numbers = #tpu.dot_dimension_numbers<[2], [1], [1], [2], [0, 0, 0, 1, 1, 2], [0], [0]>} : vector<2x24x8xbf16>, vector<2x8x24xbf16>, vector<2x24x24xf32> -> vector<2x24x24xf32>
    "tpu.trace_stop"() : () -> ()
    %249 = vector.broadcast %10 : vector<1x24x24xf32> to vector<2x24x24xf32>
    %250 = arith.addf %248, %249 : vector<2x24x24xf32>
    %cst_89 = arith.constant dense<0xFF800000> : vector<2x24xf32>
    %251 = vector.multi_reduction <maximumf>, %250, %cst_89 [2] : vector<2x24x24xf32> to vector<2x24xf32>
    %252 = vector.shape_cast %251 : vector<2x24xf32> to vector<2x24x1xf32>
    %253 = vector.broadcast %252 : vector<2x24x1xf32> to vector<2x24x24xf32>
    %254 = arith.subf %250, %253 : vector<2x24x24xf32>
    %255 = math.exp %254 : vector<2x24x24xf32>
    %cst_90 = arith.constant dense<0.000000e+00> : vector<2x24xf32>
    %256 = vector.multi_reduction <add>, %255, %cst_90 [2] : vector<2x24x24xf32> to vector<2x24xf32>
    %257 = vector.shape_cast %256 : vector<2x24xf32> to vector<2x24x1xf32>
    %258 = tpu.reciprocal %257 {approx = true} : vector<2x24x1xf32> -> vector<2x24x1xf32>
    %259 = vector.broadcast %258 : vector<2x24x1xf32> to vector<2x24x24xf32>
    %260 = arith.mulf %255, %259 : vector<2x24x24xf32>
    %261 = arith.truncf %260 : vector<2x24x24xf32> to vector<2x24x24xbf16>
    "tpu.trace_start"() <{level = 10 : i32, message = "bqk,bkd->bqd"}> : () -> ()
    %cst_91 = arith.constant dense<0.000000e+00> : vector<2x24x8xf32>
    %262 = tpu.matmul %261, %246, %cst_91 {dimension_numbers = #tpu.dot_dimension_numbers<[2], [1], [1], [2], [0, 0, 0, 1, 1, 2], [0], [0]>} : vector<2x24x24xbf16>, vector<2x24x8xbf16>, vector<2x24x8xf32> -> vector<2x24x8xf32>
    "tpu.trace_stop"() : () -> ()
    %263 = vector.shape_cast %262 : vector<2x24x8xf32> to vector<48x8xf32>
    %264 = arith.truncf %263 : vector<48x8xf32> to vector<48x8xbf16>
    %265 = vector.extract_strided_slice %244 {offsets = [0, 0], sizes = [8, 32], strides = [1, 1]} : vector<32x32xbf16> to vector<8x32xbf16>
    %cst_92 = arith.constant dense<0.000000e+00> : vector<48x32xf32>
    %266 = tpu.matmul %264, %265, %cst_92 {dimension_numbers = #tpu.dot_dimension_numbers<[1], [0], [0], [1], [0, 0, 1, 1], [], []>} : vector<48x8xbf16>, vector<8x32xbf16>, vector<48x32xf32> -> vector<48x32xf32>
    %267 = arith.addf %201, %266 : vector<48x32xf32>
    %268 = vector.extract_strided_slice %242 {offsets = [0, 0, 8], sizes = [2, 24, 8], strides = [1, 1, 1]} : vector<2x24x96xbf16> to vector<2x24x8xbf16>
    %269 = vector.extract_strided_slice %242 {offsets = [0, 0, 72], sizes = [2, 24, 8], strides = [1, 1, 1]} : vector<2x24x96xbf16> to vector<2x24x8xbf16>
    %270 = vector.extract_strided_slice %241 {offsets = [0, 8, 0], sizes = [2, 8, 24], strides = [1, 1, 1]} : vector<2x32x24xbf16> to vector<2x8x24xbf16>
    "tpu.trace_start"() <{level = 10 : i32, message = "bqd,bdk->bqk"}> : () -> ()
    %cst_93 = arith.constant dense<0.000000e+00> : vector<2x24x24xf32>
    %271 = tpu.matmul %268, %270, %cst_93 {dimension_numbers = #tpu.dot_dimension_numbers<[2], [1], [1], [2], [0, 0, 0, 1, 1, 2], [0], [0]>} : vector<2x24x8xbf16>, vector<2x8x24xbf16>, vector<2x24x24xf32> -> vector<2x24x24xf32>
    "tpu.trace_stop"() : () -> ()
    %272 = vector.broadcast %10 : vector<1x24x24xf32> to vector<2x24x24xf32>
    %273 = arith.addf %271, %272 : vector<2x24x24xf32>
    %cst_94 = arith.constant dense<0xFF800000> : vector<2x24xf32>
    %274 = vector.multi_reduction <maximumf>, %273, %cst_94 [2] : vector<2x24x24xf32> to vector<2x24xf32>
    %275 = vector.shape_cast %274 : vector<2x24xf32> to vector<2x24x1xf32>
    %276 = vector.broadcast %275 : vector<2x24x1xf32> to vector<2x24x24xf32>
    %277 = arith.subf %273, %276 : vector<2x24x24xf32>
    %278 = math.exp %277 : vector<2x24x24xf32>
    %cst_95 = arith.constant dense<0.000000e+00> : vector<2x24xf32>
    %279 = vector.multi_reduction <add>, %278, %cst_95 [2] : vector<2x24x24xf32> to vector<2x24xf32>
    %280 = vector.shape_cast %279 : vector<2x24xf32> to vector<2x24x1xf32>
    %281 = tpu.reciprocal %280 {approx = true} : vector<2x24x1xf32> -> vector<2x24x1xf32>
    %282 = vector.broadcast %281 : vector<2x24x1xf32> to vector<2x24x24xf32>
    %283 = arith.mulf %278, %282 : vector<2x24x24xf32>
    %284 = arith.truncf %283 : vector<2x24x24xf32> to vector<2x24x24xbf16>
    "tpu.trace_start"() <{level = 10 : i32, message = "bqk,bkd->bqd"}> : () -> ()
    %cst_96 = arith.constant dense<0.000000e+00> : vector<2x24x8xf32>
    %285 = tpu.matmul %284, %269, %cst_96 {dimension_numbers = #tpu.dot_dimension_numbers<[2], [1], [1], [2], [0, 0, 0, 1, 1, 2], [0], [0]>} : vector<2x24x24xbf16>, vector<2x24x8xbf16>, vector<2x24x8xf32> -> vector<2x24x8xf32>
    "tpu.trace_stop"() : () -> ()
    %286 = vector.shape_cast %285 : vector<2x24x8xf32> to vector<48x8xf32>
    %287 = arith.truncf %286 : vector<48x8xf32> to vector<48x8xbf16>
    %288 = vector.extract_strided_slice %244 {offsets = [8, 0], sizes = [8, 32], strides = [1, 1]} : vector<32x32xbf16> to vector<8x32xbf16>
    %cst_97 = arith.constant dense<0.000000e+00> : vector<48x32xf32>
    %289 = tpu.matmul %287, %288, %cst_97 {dimension_numbers = #tpu.dot_dimension_numbers<[1], [0], [0], [1], [0, 0, 1, 1], [], []>} : vector<48x8xbf16>, vector<8x32xbf16>, vector<48x32xf32> -> vector<48x32xf32>
    %290 = arith.addf %267, %289 : vector<48x32xf32>
    %291 = vector.extract_strided_slice %242 {offsets = [0, 0, 16], sizes = [2, 24, 8], strides = [1, 1, 1]} : vector<2x24x96xbf16> to vector<2x24x8xbf16>
    %292 = vector.extract_strided_slice %242 {offsets = [0, 0, 80], sizes = [2, 24, 8], strides = [1, 1, 1]} : vector<2x24x96xbf16> to vector<2x24x8xbf16>
    %293 = vector.extract_strided_slice %241 {offsets = [0, 16, 0], sizes = [2, 8, 24], strides = [1, 1, 1]} : vector<2x32x24xbf16> to vector<2x8x24xbf16>
    "tpu.trace_start"() <{level = 10 : i32, message = "bqd,bdk->bqk"}> : () -> ()
    %cst_98 = arith.constant dense<0.000000e+00> : vector<2x24x24xf32>
    %294 = tpu.matmul %291, %293, %cst_98 {dimension_numbers = #tpu.dot_dimension_numbers<[2], [1], [1], [2], [0, 0, 0, 1, 1, 2], [0], [0]>} : vector<2x24x8xbf16>, vector<2x8x24xbf16>, vector<2x24x24xf32> -> vector<2x24x24xf32>
    "tpu.trace_stop"() : () -> ()
    %295 = vector.broadcast %10 : vector<1x24x24xf32> to vector<2x24x24xf32>
    %296 = arith.addf %294, %295 : vector<2x24x24xf32>
    %cst_99 = arith.constant dense<0xFF800000> : vector<2x24xf32>
    %297 = vector.multi_reduction <maximumf>, %296, %cst_99 [2] : vector<2x24x24xf32> to vector<2x24xf32>
    %298 = vector.shape_cast %297 : vector<2x24xf32> to vector<2x24x1xf32>
    %299 = vector.broadcast %298 : vector<2x24x1xf32> to vector<2x24x24xf32>
    %300 = arith.subf %296, %299 : vector<2x24x24xf32>
    %301 = math.exp %300 : vector<2x24x24xf32>
    %cst_100 = arith.constant dense<0.000000e+00> : vector<2x24xf32>
    %302 = vector.multi_reduction <add>, %301, %cst_100 [2] : vector<2x24x24xf32> to vector<2x24xf32>
    %303 = vector.shape_cast %302 : vector<2x24xf32> to vector<2x24x1xf32>
    %304 = tpu.reciprocal %303 {approx = true} : vector<2x24x1xf32> -> vector<2x24x1xf32>
    %305 = vector.broadcast %304 : vector<2x24x1xf32> to vector<2x24x24xf32>
    %306 = arith.mulf %301, %305 : vector<2x24x24xf32>
    %307 = arith.truncf %306 : vector<2x24x24xf32> to vector<2x24x24xbf16>
    "tpu.trace_start"() <{level = 10 : i32, message = "bqk,bkd->bqd"}> : () -> ()
    %cst_101 = arith.constant dense<0.000000e+00> : vector<2x24x8xf32>
    %308 = tpu.matmul %307, %292, %cst_101 {dimension_numbers = #tpu.dot_dimension_numbers<[2], [1], [1], [2], [0, 0, 0, 1, 1, 2], [0], [0]>} : vector<2x24x24xbf16>, vector<2x24x8xbf16>, vector<2x24x8xf32> -> vector<2x24x8xf32>
    "tpu.trace_stop"() : () -> ()
    %309 = vector.shape_cast %308 : vector<2x24x8xf32> to vector<48x8xf32>
    %310 = arith.truncf %309 : vector<48x8xf32> to vector<48x8xbf16>
    %311 = vector.extract_strided_slice %244 {offsets = [16, 0], sizes = [8, 32], strides = [1, 1]} : vector<32x32xbf16> to vector<8x32xbf16>
    %cst_102 = arith.constant dense<0.000000e+00> : vector<48x32xf32>
    %312 = tpu.matmul %310, %311, %cst_102 {dimension_numbers = #tpu.dot_dimension_numbers<[1], [0], [0], [1], [0, 0, 1, 1], [], []>} : vector<48x8xbf16>, vector<8x32xbf16>, vector<48x32xf32> -> vector<48x32xf32>
    %313 = arith.addf %290, %312 : vector<48x32xf32>
    %314 = vector.extract_strided_slice %242 {offsets = [0, 0, 24], sizes = [2, 24, 8], strides = [1, 1, 1]} : vector<2x24x96xbf16> to vector<2x24x8xbf16>
    %315 = vector.extract_strided_slice %242 {offsets = [0, 0, 88], sizes = [2, 24, 8], strides = [1, 1, 1]} : vector<2x24x96xbf16> to vector<2x24x8xbf16>
    %316 = vector.extract_strided_slice %241 {offsets = [0, 24, 0], sizes = [2, 8, 24], strides = [1, 1, 1]} : vector<2x32x24xbf16> to vector<2x8x24xbf16>
    "tpu.trace_start"() <{level = 10 : i32, message = "bqd,bdk->bqk"}> : () -> ()
    %cst_103 = arith.constant dense<0.000000e+00> : vector<2x24x24xf32>
    %317 = tpu.matmul %314, %316, %cst_103 {dimension_numbers = #tpu.dot_dimension_numbers<[2], [1], [1], [2], [0, 0, 0, 1, 1, 2], [0], [0]>} : vector<2x24x8xbf16>, vector<2x8x24xbf16>, vector<2x24x24xf32> -> vector<2x24x24xf32>
    "tpu.trace_stop"() : () -> ()
    %318 = vector.broadcast %10 : vector<1x24x24xf32> to vector<2x24x24xf32>
    %319 = arith.addf %317, %318 : vector<2x24x24xf32>
    %cst_104 = arith.constant dense<0xFF800000> : vector<2x24xf32>
    %320 = vector.multi_reduction <maximumf>, %319, %cst_104 [2] : vector<2x24x24xf32> to vector<2x24xf32>
    %321 = vector.shape_cast %320 : vector<2x24xf32> to vector<2x24x1xf32>
    %322 = vector.broadcast %321 : vector<2x24x1xf32> to vector<2x24x24xf32>
    %323 = arith.subf %319, %322 : vector<2x24x24xf32>
    %324 = math.exp %323 : vector<2x24x24xf32>
    %cst_105 = arith.constant dense<0.000000e+00> : vector<2x24xf32>
    %325 = vector.multi_reduction <add>, %324, %cst_105 [2] : vector<2x24x24xf32> to vector<2x24xf32>
    %326 = vector.shape_cast %325 : vector<2x24xf32> to vector<2x24x1xf32>
    %327 = tpu.reciprocal %326 {approx = true} : vector<2x24x1xf32> -> vector<2x24x1xf32>
    %328 = vector.broadcast %327 : vector<2x24x1xf32> to vector<2x24x24xf32>
    %329 = arith.mulf %324, %328 : vector<2x24x24xf32>
    %330 = arith.truncf %329 : vector<2x24x24xf32> to vector<2x24x24xbf16>
    "tpu.trace_start"() <{level = 10 : i32, message = "bqk,bkd->bqd"}> : () -> ()
    %cst_106 = arith.constant dense<0.000000e+00> : vector<2x24x8xf32>
    %331 = tpu.matmul %330, %315, %cst_106 {dimension_numbers = #tpu.dot_dimension_numbers<[2], [1], [1], [2], [0, 0, 0, 1, 1, 2], [0], [0]>} : vector<2x24x24xbf16>, vector<2x24x8xbf16>, vector<2x24x8xf32> -> vector<2x24x8xf32>
    "tpu.trace_stop"() : () -> ()
    %332 = vector.shape_cast %331 : vector<2x24x8xf32> to vector<48x8xf32>
    %333 = arith.truncf %332 : vector<48x8xf32> to vector<48x8xbf16>
    %334 = vector.extract_strided_slice %244 {offsets = [24, 0], sizes = [8, 32], strides = [1, 1]} : vector<32x32xbf16> to vector<8x32xbf16>
    %cst_107 = arith.constant dense<0.000000e+00> : vector<48x32xf32>
    %335 = tpu.matmul %333, %334, %cst_107 {dimension_numbers = #tpu.dot_dimension_numbers<[1], [0], [0], [1], [0, 0, 1, 1], [], []>} : vector<48x8xbf16>, vector<8x32xbf16>, vector<48x32xf32> -> vector<48x32xf32>
    %336 = arith.addf %313, %335 : vector<48x32xf32>
    %c1_108 = arith.constant 1 : index
    %c0_109 = arith.constant 0 : index
    %c0_110 = arith.constant 0 : index
    %337 = vector.load %arg7[%c1_108, %c0_109, %c0_110] : memref<2x1x32xf32, #tpu.memory_space<vmem>>, vector<1x1x32xf32>
    %338 = vector.shape_cast %337 : vector<1x1x32xf32> to vector<1x32xf32>
    %339 = vector.broadcast %338 : vector<1x32xf32> to vector<48x32xf32>
    %340 = arith.addf %336, %339 : vector<48x32xf32>
    %cst_111 = arith.constant dense<0.000000e+00> : vector<48xf32>
    %341 = vector.multi_reduction <add>, %340, %cst_111 [1] : vector<48x32xf32> to vector<48xf32>
    %342 = vector.shape_cast %341 : vector<48xf32> to vector<48x1xf32>
    %cst_112 = arith.constant 3.200000e+01 : f32
    %343 = vector.broadcast %cst_112 : f32 to vector<48x1xf32>
    %344 = arith.divf %342, %343 : vector<48x1xf32>
    %345 = vector.broadcast %344 : vector<48x1xf32> to vector<48x32xf32>
    %346 = arith.subf %340, %345 : vector<48x32xf32>
    %347 = arith.mulf %346, %346 : vector<48x32xf32>
    %cst_113 = arith.constant dense<0.000000e+00> : vector<48xf32>
    %348 = vector.multi_reduction <add>, %347, %cst_113 [1] : vector<48x32xf32> to vector<48xf32>
    %349 = vector.shape_cast %348 : vector<48xf32> to vector<48x1xf32>
    %cst_114 = arith.constant 3.200000e+01 : f32
    %350 = vector.broadcast %cst_114 : f32 to vector<48x1xf32>
    %351 = arith.divf %349, %350 : vector<48x1xf32>
    %352 = vector.broadcast %344 : vector<48x1xf32> to vector<48x32xf32>
    %353 = arith.subf %340, %352 : vector<48x32xf32>
    %cst_115 = arith.constant 9.99999997E-7 : f32
    %354 = vector.broadcast %cst_115 : f32 to vector<48x1xf32>
    %355 = arith.addf %351, %354 : vector<48x1xf32>
    %356 = math.rsqrt %355 : vector<48x1xf32>
    %357 = vector.broadcast %356 : vector<48x1xf32> to vector<48x32xf32>
    %358 = arith.mulf %353, %357 : vector<48x32xf32>
    %359 = vector.broadcast %206 : vector<1x32xf32> to vector<48x32xf32>
    %360 = arith.mulf %358, %359 : vector<48x32xf32>
    %361 = vector.broadcast %207 : vector<1x32xf32> to vector<48x32xf32>
    %362 = arith.addf %360, %361 : vector<48x32xf32>
    %363 = arith.truncf %362 : vector<48x32xf32> to vector<48x32xbf16>
    %c1_116 = arith.constant 1 : index
    %c0_117 = arith.constant 0 : index
    %c0_118 = arith.constant 0 : index
    %364 = vector.load %arg8[%c1_116, %c0_117, %c0_118] : memref<2x32x128xbf16, #tpu.memory_space<vmem>>, vector<1x32x128xbf16>
    %365 = vector.shape_cast %364 : vector<1x32x128xbf16> to vector<32x128xbf16>
    %cst_119 = arith.constant dense<0.000000e+00> : vector<48x128xf32>
    %366 = tpu.matmul %363, %365, %cst_119 {dimension_numbers = #tpu.dot_dimension_numbers<[1], [0], [0], [1], [0, 0, 1, 1], [], []>} : vector<48x32xbf16>, vector<32x128xbf16>, vector<48x128xf32> -> vector<48x128xf32>
    %c1_120 = arith.constant 1 : index
    %c0_121 = arith.constant 0 : index
    %c0_122 = arith.constant 0 : index
    %367 = vector.load %arg9[%c1_120, %c0_121, %c0_122] : memref<2x1x128xf32, #tpu.memory_space<vmem>>, vector<1x1x128xf32>
    %368 = vector.shape_cast %367 : vector<1x1x128xf32> to vector<1x128xf32>
    %369 = vector.broadcast %368 : vector<1x128xf32> to vector<48x128xf32>
    %370 = arith.addf %366, %369 : vector<48x128xf32>
    %cst_123 = arith.constant 5.000000e-01 : f32
    %371 = vector.broadcast %cst_123 : f32 to vector<48x128xf32>
    %372 = arith.mulf %371, %370 : vector<48x128xf32>
    %cst_124 = arith.constant 4.471500e-02 : f32
    %373 = vector.broadcast %cst_124 : f32 to vector<48x128xf32>
    %374 = arith.mulf %373, %370 : vector<48x128xf32>
    %375 = arith.mulf %374, %370 : vector<48x128xf32>
    %376 = arith.mulf %375, %370 : vector<48x128xf32>
    %377 = arith.addf %370, %376 : vector<48x128xf32>
    %cst_125 = arith.constant 0.797884583 : f32
    %378 = vector.broadcast %cst_125 : f32 to vector<48x128xf32>
    %379 = arith.mulf %378, %377 : vector<48x128xf32>
    %380 = math.tanh %379 : vector<48x128xf32>
    %cst_126 = arith.constant 1.000000e+00 : f32
    %381 = vector.broadcast %cst_126 : f32 to vector<48x128xf32>
    %382 = arith.addf %381, %380 : vector<48x128xf32>
    %383 = arith.mulf %372, %382 : vector<48x128xf32>
    %384 = arith.truncf %383 : vector<48x128xf32> to vector<48x128xbf16>
    %c1_127 = arith.constant 1 : index
    %c0_128 = arith.constant 0 : index
    %c0_129 = arith.constant 0 : index
    %385 = vector.load %arg10[%c1_127, %c0_128, %c0_129] : memref<2x128x32xbf16, #tpu.memory_space<vmem>>, vector<1x128x32xbf16>
    %386 = vector.shape_cast %385 : vector<1x128x32xbf16> to vector<128x32xbf16>
    %cst_130 = arith.constant dense<0.000000e+00> : vector<48x32xf32>
    %387 = tpu.matmul %384, %386, %cst_130 {dimension_numbers = #tpu.dot_dimension_numbers<[1], [0], [0], [1], [0, 0, 1, 1], [], []>} : vector<48x128xbf16>, vector<128x32xbf16>, vector<48x32xf32> -> vector<48x32xf32>
    %388 = arith.addf %340, %387 : vector<48x32xf32>
    %c1_131 = arith.constant 1 : index
    %c0_132 = arith.constant 0 : index
    %c0_133 = arith.constant 0 : index
    %389 = vector.load %arg11[%c1_131, %c0_132, %c0_133] : memref<2x1x32xf32, #tpu.memory_space<vmem>>, vector<1x1x32xf32>
    %390 = vector.shape_cast %389 : vector<1x1x32xf32> to vector<1x32xf32>
    %391 = vector.broadcast %390 : vector<1x32xf32> to vector<48x32xf32>
    %392 = arith.addf %388, %391 : vector<48x32xf32>
    %393 = vector.shape_cast %392 : vector<48x32xf32> to vector<2x24x32xf32>
    %394 = vector.extract_strided_slice %393 {offsets = [0, 0, 0], sizes = [2, 1, 32], strides = [1, 1, 1]} : vector<2x24x32xf32> to vector<2x1x32xf32>
    %395 = vector.shape_cast %394 : vector<2x1x32xf32> to vector<2x32xf32>
    %c0_134 = arith.constant 0 : index
    %c0_135 = arith.constant 0 : index
    %396 = vector.load %arg12[%c0_134, %c0_135] : memref<2x32xf32, #tpu.memory_space<vmem>>, vector<1x32xf32>
    %c1_136 = arith.constant 1 : index
    %c0_137 = arith.constant 0 : index
    %397 = vector.load %arg12[%c1_136, %c0_137] : memref<2x32xf32, #tpu.memory_space<vmem>>, vector<1x32xf32>
    %cst_138 = arith.constant dense<0.000000e+00> : vector<2xf32>
    %398 = vector.multi_reduction <add>, %395, %cst_138 [1] : vector<2x32xf32> to vector<2xf32>
    %399 = vector.shape_cast %398 : vector<2xf32> to vector<2x1xf32>
    %cst_139 = arith.constant 3.200000e+01 : f32
    %400 = vector.broadcast %cst_139 : f32 to vector<2x1xf32>
    %401 = arith.divf %399, %400 : vector<2x1xf32>
    %402 = vector.broadcast %401 : vector<2x1xf32> to vector<2x32xf32>
    %403 = arith.subf %395, %402 : vector<2x32xf32>
    %404 = arith.mulf %403, %403 : vector<2x32xf32>
    %cst_140 = arith.constant dense<0.000000e+00> : vector<2xf32>
    %405 = vector.multi_reduction <add>, %404, %cst_140 [1] : vector<2x32xf32> to vector<2xf32>
    %406 = vector.shape_cast %405 : vector<2xf32> to vector<2x1xf32>
    %cst_141 = arith.constant 3.200000e+01 : f32
    %407 = vector.broadcast %cst_141 : f32 to vector<2x1xf32>
    %408 = arith.divf %406, %407 : vector<2x1xf32>
    %409 = vector.broadcast %401 : vector<2x1xf32> to vector<2x32xf32>
    %410 = arith.subf %395, %409 : vector<2x32xf32>
    %cst_142 = arith.constant 9.99999997E-7 : f32
    %411 = vector.broadcast %cst_142 : f32 to vector<2x1xf32>
    %412 = arith.addf %408, %411 : vector<2x1xf32>
    %413 = math.rsqrt %412 : vector<2x1xf32>
    %414 = vector.broadcast %413 : vector<2x1xf32> to vector<2x32xf32>
    %415 = arith.mulf %410, %414 : vector<2x32xf32>
    %416 = vector.broadcast %396 : vector<1x32xf32> to vector<2x32xf32>
    %417 = arith.mulf %415, %416 : vector<2x32xf32>
    %418 = vector.broadcast %397 : vector<1x32xf32> to vector<2x32xf32>
    %419 = arith.addf %417, %418 : vector<2x32xf32>
    %420 = arith.truncf %419 : vector<2x32xf32> to vector<2x32xbf16>
    %c0_143 = arith.constant 0 : index
    %c0_144 = arith.constant 0 : index
    %421 = vector.load %arg13[%c0_143, %c0_144] : memref<32x10xbf16, #tpu.memory_space<vmem>>, vector<32x10xbf16>
    %cst_145 = arith.constant dense<0.000000e+00> : vector<2x10xf32>
    %422 = tpu.matmul %420, %421, %cst_145 {dimension_numbers = #tpu.dot_dimension_numbers<[1], [0], [0], [1], [0, 0, 1, 1], [], []>} : vector<2x32xbf16>, vector<32x10xbf16>, vector<2x10xf32> -> vector<2x10xf32>
    %c0_146 = arith.constant 0 : index
    %c0_147 = arith.constant 0 : index
    %423 = vector.load %arg14[%c0_146, %c0_147] : memref<1x10xf32, #tpu.memory_space<vmem>>, vector<1x10xf32>
    %424 = vector.broadcast %423 : vector<1x10xf32> to vector<2x10xf32>
    %425 = arith.addf %422, %424 : vector<2x10xf32>
    %c0_148 = arith.constant 0 : index
    %c0_149 = arith.constant 0 : index
    %426 = vector.load %arg15[%c0_148, %c0_149] : memref<2x10xf32, #tpu.memory_space<vmem>>, vector<2x10xf32>
    tpu.vector_store %arg15[%c0_148, %c0_149], %425 {strides = array<i32>} : memref<2x10xf32, #tpu.memory_space<vmem>>, vector<2x10xf32>,
    return
  }
}

</mosaic_0001>

<bundles_post_ra>
// kernel: vit_forward.1
= control target key start
LH: loop header
LB: loop body
LE: loop exit
PB: predicated region body
PF: predicated region fallthrough
CT: control target
= control target key end

     0   :  { %v6090_v1 = vmov 0.0   ;;  %vm6091_vm0 = vmmov 0   ;;  %vm103_vm1 = vcmask 392192   ;;  %s7477_s0 = inlined_call_operand.vmem [shape: bf16[48,48], index: 0, kind: input, shape index: {}]   ;;  %s7478_s1 = inlined_call_operand.vmem [shape: f32[48,32], index: 1, kind: input, shape index: {}]   ;;  %s7479_s2 = inlined_call_operand.vmem [shape: bf16[48,32], index: 2, kind: input, shape index: {}]   ;;  %s7480_s3 = inlined_call_operand.vmem [shape: f32[2,4,32], index: 3, kind: input, shape index: {}]   ;;  %s7481_s4 = inlined_call_operand.vmem [shape: bf16[2,32,96], index: 4, kind: input, shape index: {}]   ;;  %s7482_s5 = inlined_call_operand.vmem [shape: f32[2,1,96], index: 5, kind: input, shape index: {}]   ;;  %s7483_s6 = inlined_call_operand.vmem [shape: bf16[2,32,32], index: 6, kind: input, shape index: {}]   ;;  %s7484_s7 = inlined_call_operand.vmem [shape: f32[2,1,32], index: 7, kind: input, shape index: {}]   ;;  %s7485_s8 = inlined_call_operand.vmem [shape: bf16[2,32,128], index: 8, kind: input, shape index: {}]   ;;  %s7486_s9 = inlined_call_operand.vmem [shape: f32[2,1,128], index: 9, kind: input, shape index: {}]   ;;  %s7487_s10 = inlined_call_operand.vmem [shape: bf16[2,128,32], index: 10, kind: input, shape index: {}]   ;;  %s7488_s11 = inlined_call_operand.vmem [shape: f32[2,1,32], index: 11, kind: input, shape index: {}]   ;;  %s7489_s12 = inlined_call_operand.vmem [shape: f32[2,32], index: 12, kind: input, shape index: {}]   ;;  %s7490_s13 = inlined_call_operand.vmem [shape: bf16[32,10], index: 13, kind: input, shape index: {}]   ;;  %s7491_s14 = inlined_call_operand.vmem [shape: f32[1,10], index: 14, kind: input, shape index: {}]   ;;  %s7492_s15 = inlined_call_operand.hbm [shape: f32[2,10], index: 15, kind: output, shape index: {}]  }
   0x1   :  { %v5766_v0 = vld [vmem:[%s7479_s2] sm:$0xff]   ;;  %5234 = vmatprep.subr.bf16.mxu0 %v6090_v1  ;;  %5716 = vmatprep.subr.bf16.mxu1 %v6090_v1  ;;  %v5767_v2 = vld [vmem:[%s7479_s2 + $0x8] sm:$0xff]   ;;  %v5768_v3 = vld [vmem:[%s7479_s2 + $0x10] sm:$0xff]  }
   0x2   :  { %5235 = vmatpush3.bf16.msra.mxu0 %v5766_v0  ;;  %5719 = vmatpush3.bf16.msra.mxu1 %v5766_v0  ;;  %v5769_v4 = vld [vmem:[%s7477_s0] sm:$0xff]   ;;  %v5771_v5 = vld [vmem:[%s7477_s0 + $0x10] sm:$0xff]   ;;  %v5770_v6 = vld [vmem:[%s7477_s0 + $0x8] sm:$0xff]  }
   0x3   :  { %5236 = vmatprep.subr.bf16.mxu0 %v6090_v1  ;;  %5240 = vmatprep.mubr.msk.bf16.mxu0 %vm6091_vm0, %v6090_v1 }
   0x4   :  { %5717 = vmatprep.subr.bf16.mxu1 %v6090_v1  ;;  %5248 = vmatprep.mubr.msk.bf16.mxu1 %vm6091_vm0, %v6090_v1 }
   0x6   :  { %5237 = vmatpush3.bf16.msra.mxu0 %v5767_v2  ;;  %5720 = vmatpush3.bf16.msra.mxu1 %v5767_v2 }
   0x7   :  { %5238 = vmatprep.subr.bf16.mxu0 %v6090_v1  ;;  %5718 = vmatprep.subr.bf16.mxu1 %v6090_v1 }
   0xa   :  { %5239 = vmatpush3.bf16.msra.mxu0 %v5768_v3  ;;  %5721 = vmatpush3.bf16.msra.mxu1 %v5768_v3 }
   0xb   :  { %5252 = vmatprep.subr.bf16.mxu1 %v6090_v1 }
   0xd   :  { %5241 = vmatmul.mubr.msk.bf16.vlgmr.msra.gmra.mrb[0].mxu0 %vm103_vm1, %v5769_v4  ;;  %5249 = vmatmul.mubr.msk.bf16.vlgmr.msra.gmra.mrb[0].mxu1 %vm103_vm1, %v5771_v5 }
   0xe   :  { %5244 = vmatprep.mubr.msk.bf16.mxu0 %vm6091_vm0, %v6090_v1  ;;  %5256 = vmatprep.mubr.msk.bf16.mxu1 %vm6091_vm0, %v6090_v1 }
  0x15   :  { %5245 = vmatmul.mubr.msk.bf16.gmra.mrb[4].mxu0 %vm103_vm1, %v5770_v6 }
  0x16   :  { %20 = vsyncpa [#allocation3], 0  ;;  %v64_v7 = vld [vmem:[%s7478_s1] sm:$0xff]  ;;  %v65_v9 = vld [vmem:[%s7478_s1 + $0x8] sm:$0xff]  ;;  %vm175_vm2 = vcmask 261120   ;;  %vm467_vm3 = vcmask 64512  }
  0x17   :  { %v68_v15 = vld [vmem:[%s7478_s1 + $0x20] sm:$0xff]  ;;  %v66_v22 = vld [vmem:[%s7478_s1 + $0x10] sm:$0xff]  ;;  %v67_v25 = vld [vmem:[%s7478_s1 + $0x18] sm:$0xff]  ;;  %s6092_s16 = smov 96   ;;  %vm474_vm4 = vcmask 1043456   ;;  %vm583_vm6 = vcmask 195584  }
  0x18   :  { %v69_v30 = vld [vmem:[%s7478_s1 + $0x28] sm:$0xff]  ;;  %v5772_v4 = vld [vmem:[%s7481_s4] sm:$0xff]   ;;  %s6094_s17 = smov 64   ;;  %s6095_s18 = smov 120   ;;  %vm4723_vm7 = vcmask 1041409   ;;  %vm4726_vm8 = vcmask 254976  }
  0x19   :  { %5253 = vmatpush3.bf16.msra.mxu1 %v5772_v4  ;;  %v5773_v5 = vld [vmem:[%s7481_s4 + $0x8] sm:$0xff]   ;;  %s6096_s20 = smov 56   ;;  %s6097_s21 = smov 112   ;;  %vm4843_vm9 = vcmask 74752  }
  0x1a   :  { %5254 = vmatprep.subr.bf16.mxu1 %v6090_v1  ;;  %s6098_s24 = smov 48   ;;  %s6099_s1 = smov 104  }
  0x1b   :  { %s6100_s27 = smov 40  }
  0x1d   :  { %5255 = vmatpush3.bf16.msra.mxu1 %v5773_v5 }
  0xe0   :  { %v147_v8 = vpop.f32.mrb[0].mxu0  ;;  %v163_v10 = vpop.f32.mrb[0].mxu1 }
  0xe1   :  { %v6221_v11 = vadd.f32 %v147_v8, %v64_v7  ;;  %v5242_v12 = vpop.f32.mrb[1].mxu0  ;;  %v5250_v13 = vpop.f32.mrb[1].mxu1  ;;  %v6230_v21 = vadd.f32 %v163_v10, %v68_v15 }
  0xe2   :  { %v150_v14 = vpop.f32.mrb[2].mxu0  ;;  %v166_v16 = vpop.f32.mrb[2].mxu1 }
  0xe3   :  { %v6226_v17 = vadd.f32 %v150_v14, %v65_v9  ;;  %v5243_v18 = vpop.f32.mrb[3].mxu0  ;;  %v176_v19 = vsel %vm175_vm2, %v6221_v11, 0.0  ;;  %v5251_v20 = vpop.f32.mrb[3].mxu1  ;;  %v188_v28 = vsel %vm175_vm2, %v6230_v21, 0.0  ;;  %v6251_v34 = vadd.f32 %v166_v16, %v69_v30 }
  0xe4   :  { %177 = vadd.xlane.f32.xlu0 %v176_v19  ;;  %v170_v9 = vlaneseq }
  0xe5   :  { %v179_v23 = vsel %vm175_vm2, %v6226_v17, 0.0  ;;  %v191_v36 = vsel %vm175_vm2, %v6251_v34, 0.0 }
  0xe6   :  { %v6297_v14 = vshrl.u32 %v170_v9, 7 }
  0xe8   :  { %180 = vadd.xlane.f32.xlu0 %v179_v23  ;;  %v155_v24 = vpop.f32.mrb[4].mxu0  ;;  %v257_v19 = vsub.s32 0, %v6297_v14  ;;  %v174_v23 = vld [vmem:[%s7480_s3] sm:$0xf] }
  0xe9   :  { %v6240_v26 = vadd.f32 %v155_v24, %v66_v22  ;;  %v5246_v27 = vpop.f32.mrb[5].mxu0 }
  0xea   :  { %v158_v29 = vpop.f32.mrb[6].mxu0 }
  0xeb   :  { %v6247_v31 = vadd.f32 %v158_v29, %v67_v25  ;;  %v5247_v32 = vpop.f32.mrb[7].mxu0  ;;  %v182_v33 = vsel %vm175_vm2, %v6240_v26, 0.0  ;;  %v258_v29 = vrot.slane %v174_v23, %v257_v19 }
  0xec   :  { %189 = vadd.xlane.f32.xlu0 %v188_v28  ;;  %183 = vadd.xlane.f32.xlu1 %v182_v33 }
  0xed   :  { %v185_v35 = vsel %vm175_vm2, %v6247_v31, 0.0 }
  0xf0   :  { %186 = vadd.xlane.f32.xlu1 %v185_v35  ;;  %v267_v35 = vsub.s32 1, %v6297_v14 }
  0xf4   :  { %192 = vadd.xlane.f32.xlu1 %v191_v36 }
 0x171   :  { %v178_v37 = vpop.xlane.xlu0 %177 }
 0x172   :  { %v195_v38 = vmul.f32 0.03125, %v178_v37 }
 0x174   :  { %v201_v39 = vsub.f32 %v6221_v11, %v195_v38 }
 0x175   :  { %v181_v40 = vpop.xlane.xlu0 %180 }
 0x176   :  { %v196_v41 = vmul.f32 0.03125, %v181_v40  ;;  %v207_v42 = vmul.f32 %v201_v39, %v201_v39 }
 0x178   :  { %v6259_v43 = vsub.f32 %v6226_v17, %v196_v41  ;;  %v213_v44 = vsel %vm175_vm2, %v207_v42, 0.0  ;;  %v268_v42 = vrot.slane %v174_v23, %v267_v35 }
 0x179   :  { %214 = vadd.xlane.f32.xlu0 %v213_v44  ;;  %v190_v45 = vpop.xlane.xlu0 %189  ;;  %v184_v46 = vpop.xlane.xlu1 %183 }
 0x17a   :  { %v199_v47 = vmul.f32 0.03125, %v190_v45  ;;  %v197_v48 = vmul.f32 0.03125, %v184_v46  ;;  %v208_v49 = vmul.f32 %v6259_v43, %v6259_v43 }
 0x17c   :  { %v6265_v50 = vsub.f32 %v6230_v21, %v199_v47  ;;  %v6268_v51 = vsub.f32 %v6240_v26, %v197_v48  ;;  %v216_v52 = vsel %vm175_vm2, %v208_v49, 0.0 }
 0x17d   :  { %217 = vadd.xlane.f32.xlu1 %v216_v52  ;;  %v187_v53 = vpop.xlane.xlu1 %186 }
 0x17e   :  { %v198_v54 = vmul.f32 0.03125, %v187_v53  ;;  %v209_v55 = vmul.f32 %v6268_v51, %v6268_v51  ;;  %v211_v58 = vmul.f32 %v6265_v50, %v6265_v50 }
 0x180   :  { %v6274_v56 = vsub.f32 %v6247_v31, %v198_v54  ;;  %v219_v57 = vsel %vm175_vm2, %v209_v55, 0.0  ;;  %v225_v63 = vsel %vm175_vm2, %v211_v58, 0.0 }
 0x181   :  { %220 = vadd.xlane.f32.xlu0 %v219_v57  ;;  %v193_v59 = vpop.xlane.xlu1 %192 }
 0x182   :  { %v200_v60 = vmul.f32 0.03125, %v193_v59  ;;  %v210_v61 = vmul.f32 %v6274_v56, %v6274_v56 }
 0x184   :  { %v6282_v62 = vsub.f32 %v6251_v34, %v200_v60  ;;  %v222_v0 = vsel %vm175_vm2, %v210_v61, 0.0 }
 0x185   :  { %226 = vadd.xlane.f32.xlu0 %v225_v63  ;;  %223 = vadd.xlane.f32.xlu1 %v222_v0 }
 0x186   :  { %v212_v2 = vmul.f32 %v6282_v62, %v6282_v62 }
 0x188   :  { %v228_v3 = vsel %vm175_vm2, %v212_v2, 0.0 }
 0x189   :  { %229 = vadd.xlane.f32.xlu1 %v228_v3 }
 0x206   :  { %v215_v6 = vpop.xlane.xlu0 %214 }
 0x207   :  { %v231_v7 = vmul.f32 0.03125, %v215_v6 }
 0x209   :  { %v237_v8 = vadd.f32 1e-06, %v231_v7 }
 0x20a   :  { %v218_v10 = vpop.xlane.xlu1 %217 }
 0x20b   :  { %5798 = vrsqrt.f32 %v237_v8  ;;  %v232_v12 = vmul.f32 0.03125, %v218_v10 }
 0x20d   :  { %v238_v13 = vadd.f32 1e-06, %v232_v12 }
 0x20e   :  { %v221_v15 = vpop.xlane.xlu0 %220 }
 0x20f   :  { %5800 = vrsqrt.f32 %v238_v13  ;;  %v233_v16 = vmul.f32 0.03125, %v221_v15 }
 0x211   :  { %v239_v18 = vadd.f32 1e-06, %v233_v16 }
 0x212   :  { %v227_v20 = vpop.xlane.xlu0 %226  ;;  %v224_v22 = vpop.xlane.xlu1 %223 }
 0x213   :  { %5802 = vrsqrt.f32 %v239_v18  ;;  %v235_v24 = vmul.f32 0.03125, %v227_v20  ;;  %v234_v25 = vmul.f32 0.03125, %v224_v22 }
 0x215   :  { %v5799_v27 = vpop.eup %5798  ;;  %v240_v28 = vadd.f32 1e-06, %v234_v25  ;;  %v241_v32 = vadd.f32 1e-06, %v235_v24 }
 0x216   :  { %v249_v30 = vmul.f32 %v5799_v27, %v201_v39  ;;  %v230_v33 = vpop.xlane.xlu1 %229 }
 0x217   :  { %v236_v36 = vmul.f32 0.03125, %v230_v33  ;;  %5804 = vrsqrt.f32 %v240_v28 }
 0x218   :  { %v259_v40 = vmul.f32 %v258_v29, %v249_v30  ;;  %5806 = vrsqrt.f32 %v241_v32 }
 0x219   :  { %v5801_v37 = vpop.eup %5800  ;;  %v242_v38 = vadd.f32 1e-06, %v236_v36 }
 0x21a   :  { %v250_v41 = vmul.f32 %v5801_v37, %v6259_v43  ;;  %v269_v46 = vadd.f32 %v268_v42, %v259_v40 }
 0x21b   :  { %5808 = vrsqrt.f32 %v242_v38 }
 0x21c   :  { %v260_v44 = vmul.f32 %v258_v29, %v250_v41 }
 0x21d   :  { %v5803_v45 = vpop.eup %5802 }
 0x21e   :  { %v270_v39 = vadd.f32 %v268_v42, %v260_v44  ;;  %v251_v47 = vmul.f32 %v5803_v45, %v6268_v51 }
 0x220   :  { %v275_v48 = vpack.c.bf16 %v270_v39, %v269_v46  ;;  %v261_v52 = vmul.f32 %v258_v29, %v251_v47 }
 0x221   :  { %v5805_v49 = vpop.eup %5804 }
 0x222   :  { %5257 = vmatmul.mubr.msk.bf16.vlgmr.msra.gmra.mrb[4].mxu1 %vm175_vm2, %v275_v48  ;;  %v252_v43 = vmul.f32 %v5805_v49, %v6274_v56  ;;  %v5807_v53 = vpop.eup %5806  ;;  %v271_v58 = vadd.f32 %v268_v42, %v261_v52  ;;  %v171_v49 = vand.u32 127, %v170_v9 }
 0x223   :  { %5260 = vmatprep.mubr.msk.bf16.mxu1 %vm6091_vm0, %v6090_v1  ;;  %v253_v60 = vmul.f32 %v5807_v53, %v6265_v50 }
 0x224   :  { %v262_v55 = vmul.f32 %v258_v29, %v252_v43  ;;  %vm172_vm5 = vcmp.lt.s32.totalorder %v171_v49, 17  ;;  %v6093_v43 = vmov -1e+30  }
 0x225   :  { %v5809_v54 = vpop.eup %5808  ;;  %v263_v63 = vmul.f32 %v258_v29, %v253_v60  ;;  %v6358_v52 = vsel %vm172_vm5, 0.0, %v6093_v43 }
 0x226   :  { %v254_v57 = vmul.f32 %v5809_v54, %v6282_v62  ;;  %v272_v59 = vadd.f32 %v268_v42, %v262_v55  ;;  %v4868_v62 = vld [vmem:[%s7482_s5] ss:$0 sm:$0xff] }
 0x227   :  { %v273_v56 = vadd.f32 %v268_v42, %v263_v63 }
 0x228   :  { %v276_v51 = vpack.c.bf16 %v272_v59, %v271_v58  ;;  %v264_v61 = vmul.f32 %v258_v29, %v254_v57 }
 0x22a   :  { %5261 = vmatmul.mubr.msk.bf16.gmra.mrb[8].mxu1 %vm175_vm2, %v276_v51  ;;  %v274_v0 = vadd.f32 %v268_v42, %v264_v61 }
 0x22b   :  { %5264 = vmatprep.mubr.msk.bf16.mxu1 %vm6091_vm0, %v6090_v1 }
 0x22c   :  { %v277_v2 = vpack.c.bf16 %v274_v0, %v273_v56 }
 0x232   :  { %5265 = vmatmul.mubr.msk.bf16.gmra.mrb[12].mxu1 %vm175_vm2, %v277_v2 }
 0x2f5   :  { %v344_v3 = vpop.f32.mrb[4].mxu1 }
 0x2f6   :  { %v5258_v4 = vpop.f32.mrb[5].mxu1  ;;  %v345_v5 = vadd.f32 %v4868_v62, %v344_v3 }
 0x2f7   :  { %v347_v50 = vpop.f32.mrb[6].mxu1 }
 0x2f8   :  { %v348_v6 = vadd.f32 %v4868_v62, %v347_v50  ;;  %v5259_v7 = vpop.f32.mrb[7].mxu1 }
 0x2fa   :  { %v6323_v8 = vpack.c.bf16 %v348_v6, %v345_v5 }
 0x2fc   :  { %5270 = vmatprep.mubr.msk.bf16.mxu1 %vm467_vm3, %v6323_v8 }
 0x2fd   :  { %v352_v10 = vpop.f32.mrb[8].mxu1 }
 0x2fe   :  { %v5262_v12 = vpop.f32.mrb[9].mxu1  ;;  %v353_v28 = vadd.f32 %v4868_v62, %v352_v10 }
 0x2ff   :  { %v355_v13 = vpop.f32.mrb[10].mxu1 }
 0x300   :  { %v356_v15 = vadd.f32 %v4868_v62, %v355_v13  ;;  %v5263_v16 = vpop.f32.mrb[11].mxu1  ;;  %v6351_v48 = vpack.c.bf16 %v353_v28, %v353_v28 }
 0x302   :  { %379 = vrot.lane.b32.xlu0 %v356_v15, %s6092_s16 }
 0x305   :  { %v360_v18 = vpop.f32.mrb[12].mxu1 }
 0x306   :  { %v361_v20 = vadd.f32 %v4868_v62, %v360_v18  ;;  %373 = vrot.lane.b32.xlu0 %v345_v5, %s6092_s16  ;;  %v5266_v22 = vpop.f32.mrb[13].mxu1 }
 0x307   :  { %v363_v23 = vpop.f32.mrb[14].mxu1 }
 0x308   :  { %v6329_v24 = vpack.c.bf16 %v361_v20, %v356_v15  ;;  %381 = vrot.lane.b32.xlu1 %v361_v20, %s6092_s16  ;;  %v5267_v25 = vpop.f32.mrb[15].mxu1  ;;  %v364_v27 = vadd.f32 %v4868_v62, %v363_v23 }
 0x30a   :  { %375 = vrot.lane.b32.xlu0 %v348_v6, %s6092_s16  ;;  %5276 = vmatprep.mubr.msk.bf16.mxu0 %vm467_vm3, %v6329_v24  ;;  %v6345_v39 = vpack.c.bf16 %v364_v27, %v364_v27 }
 0x30c   :  { %383 = vrot.lane.b32.xlu1 %v364_v27, %s6092_s16 }
 0x30e   :  { %377 = vrot.lane.b32.xlu0 %v353_v28, %s6092_s16 }
 0x374   :  { %v380_v29 = vpop.permute.xlu0 %379 }
 0x375   :  { %423 = vxpose.xlu1.b32.start [1/3] (short) (narrow) %v380_v29, 32 }
 0x378   :  { %v374_v30 = vpop.permute.xlu0 %373 }
 0x379   :  { %391 = vxpose.xlu0.b32.start [1/3] (short) (narrow) %v374_v30, 32 }
 0x37a   :  { %v382_v32 = vpop.permute.xlu1 %381 }
 0x37b   :  { %424 = vxpose.xlu1.b32.cont [2/3] (short) (narrow) %v382_v32, 32 }
 0x37c   :  { %v376_v33 = vpop.permute.xlu0 %375 }
 0x37d   :  { %392 = vxpose.xlu0.b32.cont [2/3] (short) (narrow) %v376_v33, 32 }
 0x37e   :  { %v384_v36 = vpop.permute.xlu1 %383 }
 0x37f   :  { %425 = vxpose.xlu1.b32.end [3/3] (short) (narrow) %v384_v36, 32 }
 0x380   :  { %v378_v37 = vpop.permute.xlu0 %377 }
 0x381   :  { %393 = vxpose.xlu0.b32.end [3/3] (short) (narrow) %v378_v37, 32 }
 0x3f7   :  { %v439_v38 = vpop.trf.xlu1 }
 0x3f9   :  { %v407_v40 = vpop.trf.xlu0 }
 0x3fb   :  { %v440_v41 = vpop.trf.xlu1 }
 0x3fc   :  { %v6337_v42 = vpack.c.bf16 %v440_v41, %v439_v38 }
 0x3fd   :  { %v408_v44 = vpop.trf.xlu0 }
 0x3fe   :  { %v6339_v45 = vpack.c.bf16 %v408_v44, %v407_v40  ;;  %5723 = vmatprep.subr.msk.bf16.mxu0 %vm474_vm4, %v6337_v42  ;;  %v533_v46 = vsel %vm474_vm4, %v6337_v42, 0 }
 0x3ff   :  { %5275 = vmatpush3.bf16.msra.mxu0 %v533_v46  ;;  %v6366_v62 = vpop.trf.xlu1 }
 0x400   :  { %5722 = vmatprep.subr.msk.bf16.mxu1 %vm474_vm4, %v6339_v45  ;;  %v476_v47 = vsel %vm474_vm4, %v6339_v45, 0 }
 0x401   :  { %5269 = vmatpush3.bf16.msra.mxu1 %v476_v47  ;;  %v6368_v3 = vpop.trf.xlu0  ;;  %v865_v47 = vrot.slane %v6339_v45, 4 }
 0x402   :  { %5277 = vmatmul.mubr.msk.bf16.vlgmr.msra.gmra.mrb[8].mxu0 %vm467_vm3, %v6345_v39 }
 0x403   :  { %v6370_v4 = vpop.trf.xlu1 }
 0x404   :  { %5271 = vmatmul.mubr.msk.bf16.vlgmr.msra.gmra.mrb[16].mxu1 %vm467_vm3, %v6351_v48 }
 0x405   :  { %v6372_v50 = vpop.trf.xlu0 }
 0x4d5   :  { %v5278_v53 = vpop.f32.mrb[8].mxu0 }
 0x4d6   :  { %v569_v54 = vpop.f32.mrb[9].mxu0  ;;  %v578_v51 = vadd.f32 %v5278_v53, %v6358_v52 }
 0x4d7   :  { %v570_v55 = vadd.f32 %v569_v54, %v6358_v52  ;;  %v5272_v57 = vpop.f32.mrb[16].mxu1  ;;  %v5279_v58 = vpop.f32.mrb[10].mxu0 }
 0x4d8   :  { %v512_v59 = vpop.f32.mrb[17].mxu1  ;;  %v572_v60 = vpop.f32.mrb[11].mxu0  ;;  %v599_v2 = vsel %vm583_vm6, %v578_v51, -inf  ;;  %v521_v30 = vadd.f32 %v5272_v57, %v6358_v52 }
 0x4d9   :  { %v573_v61 = vadd.f32 %v572_v60, %v6358_v52  ;;  %v5273_v63 = vpop.f32.mrb[18].mxu1  ;;  %v593_v9 = vsel %vm583_vm6, %v570_v55, -inf  ;;  %v513_v29 = vadd.f32 %v512_v59, %v6358_v52 }
 0x4da   :  { %v515_v0 = vpop.f32.mrb[19].mxu1  ;;  %594 = vmax.xlane.f32.xlu1 %v593_v9  ;;  %v590_v33 = vsel %vm583_vm6, %v521_v30, -inf }
 0x4db   :  { %v596_v56 = vsel %vm583_vm6, %v573_v61, -inf  ;;  %v584_v32 = vsel %vm583_vm6, %v513_v29, -inf  ;;  %v516_v36 = vadd.f32 %v515_v0, %v6358_v52 }
 0x4dc   :  { %597 = vmax.xlane.f32.xlu0 %v596_v56 }
 0x4dd   :  { %v587_v37 = vsel %vm583_vm6, %v516_v36, -inf }
 0x4de   :  { %600 = vmax.xlane.f32.xlu1 %v599_v2 }
 0x567   :  { %v595_v5 = vpop.xlane.xlu1 %594 }
 0x568   :  { %v605_v7 = vsub.f32 %v570_v55, %v595_v5 }
 0x569   :  { %v598_v6 = vpop.xlane.xlu0 %597 }
 0x56a   :  { %v606_v10 = vsub.f32 %v573_v61, %v598_v6  ;;  %v614_v16 = vmul.f32 1.442695, %v605_v7  ;;  %v873_v61 = vsel %vm474_vm4, %v865_v47, 0 }
 0x56b   :  { %v601_v12 = vpop.xlane.xlu1 %600 }
 0x56c   :  { %v616_v13 = vmul.f32 1.442695, %v606_v10  ;;  %v607_v15 = vsub.f32 %v578_v51, %v601_v12  ;;  %v928_v51 = vrot.slane %v6337_v42, 4 }
 0x56e   :  { %5810 = vpow2.f32 %v616_v13  ;;  %v618_v18 = vmul.f32 1.442695, %v607_v15  ;;  %v936_v0 = vsel %vm474_vm4, %v928_v51, 0 }
 0x570   :  { %5812 = vpow2.f32 %v618_v18 }
 0x571   :  { %5814 = vpow2.f32 %v614_v16 }
 0x578   :  { %v5811_v20 = vpop.eup %5810 }
 0x579   :  { %v632_v22 = vsel %vm583_vm6, %v5811_v20, 0.0 }
 0x57a   :  { %v5813_v23 = vpop.eup %5812  ;;  %633 = vadd.xlane.f32.xlu0 %v632_v22 }
 0x57b   :  { %v635_v25 = vsel %vm583_vm6, %v5813_v23, 0.0  ;;  %v5815_v27 = vpop.eup %5814 }
 0x57c   :  { %636 = vadd.xlane.f32.xlu1 %v635_v25  ;;  %v629_v28 = vsel %vm583_vm6, %v5815_v27, 0.0 }
 0x580   :  { %630 = vadd.xlane.f32.xlu1 %v629_v28 }
 0x590   :  { %720 = vrot.lane.b32.xlu0 %v6329_v24, %s6094_s17 }
 0x591   :  { %722 = vrot.lane.b32.xlu1 %v6345_v39, %s6094_s17 }
 0x594   :  { %923 = vrot.lane.b32.xlu0 %v6329_v24, %s6095_s18 }
 0x595   :  { %860 = vrot.lane.b32.xlu1 %v6323_v8, %s6095_s18 }
 0x599   :  { %862 = vrot.lane.b32.xlu1 %v6351_v48, %s6095_s18 }
 0x59d   :  { %925 = vrot.lane.b32.xlu1 %v6345_v39, %s6095_s18 }
 0x5b3   :  { %585 = vmax.xlane.f32.xlu0 %v584_v32 }
 0x5b7   :  { %591 = vmax.xlane.f32.xlu0 %v590_v33 }
 0x5c1   :  { %588 = vmax.xlane.f32.xlu1 %v587_v37 }
 0x607   :  { %v634_v38 = vpop.xlane.xlu0 %633 }
 0x609   :  { %v637_v40 = vpop.xlane.xlu1 %636 }
 0x60a   :  { %5816 = vrcp.f32 %v637_v40 }
 0x60b   :  { %v721_v41 = vpop.permute.xlu0 %720  ;;  %5818 = vrcp.f32 %v634_v38 }
 0x60c   :  { %5288 = vmatprep.subr.bf16.mxu0 %v721_v41 }
 0x60d   :  { %5289 = vmatpush3.bf16.msra.mxu0 %v721_v41  ;;  %v631_v44 = vpop.xlane.xlu1 %630 }
 0x60e   :  { %5820 = vrcp.f32 %v631_v44 }
 0x60f   :  { %v924_v9 = vpop.permute.xlu0 %923 }
 0x611   :  { %v723_v46 = vpop.permute.xlu1 %722 }
 0x612   :  { %v732_v49 = vsel %vm474_vm4, %v723_v46, 0  ;;  %5725 = vmatprep.subr.msk.bf16.mxu0 %vm474_vm4, %v723_v46 }
 0x613   :  { %5291 = vmatpush3.bf16.msra.mxu0 %v732_v49 }
 0x614   :  { %5726 = vmatprep.subr.msk.bf16.mxu0 %vm474_vm4, %v865_v47  ;;  %v5817_v43 = vpop.eup %5816 }
 0x615   :  { %v5819_v53 = vpop.eup %5818  ;;  %v649_v55 = vmul.f32 %v5817_v43, %v5813_v23  ;;  %v861_v45 = vpop.permute.xlu1 %860 }
 0x616   :  { %v648_v58 = vmul.f32 %v5819_v53, %v5811_v20 }
 0x617   :  { %v653_v60 = vpack.c.bf16 %v649_v55, %v649_v55 }
 0x618   :  { %v5821_v54 = vpop.eup %5820 }
 0x619   :  { %v647_v57 = vmul.f32 %v5821_v54, %v5815_v27  ;;  %v863_v63 = vpop.permute.xlu1 %862 }
 0x61b   :  { %v652_v59 = vpack.c.bf16 %v648_v58, %v647_v57 }
 0x61d   :  { %5292 = vmatprep.mubr.msk.bf16.mxu0 %vm583_vm6, %v652_v59  ;;  %v926_v42 = vpop.permute.xlu1 %925 }
 0x61e   :  { %5293 = vmatmul.mubr.msk.bf16.vlgmr.msra.gmra.mrb[12].mxu0 %vm583_vm6, %v653_v60 }
 0x61f   :  { %5311 = vmatpush3.bf16.msra.mxu0 %v873_v61  ;;  %5312 = vmatprep.mubr.msk.bf16.mxu0 %vm467_vm3, %v861_v45 }
 0x620   :  { %5727 = vmatprep.subr.msk.bf16.mxu0 %vm474_vm4, %v928_v51 }
 0x626   :  { %5313 = vmatmul.mubr.msk.bf16.vlgmr.msra.gmra.mrb[16].mxu0 %vm467_vm3, %v863_v63 }
 0x627   :  { %5317 = vmatpush3.bf16.msra.mxu0 %v936_v0  ;;  %5318 = vmatprep.mubr.msk.bf16.mxu0 %vm467_vm3, %v924_v9 }
 0x62e   :  { %5319 = vmatmul.mubr.msk.bf16.vlgmr.msra.gmra.mrb[20].mxu0 %vm467_vm3, %v926_v42 }
 0x640   :  { %v586_v56 = vpop.xlane.xlu0 %585 }
 0x641   :  { %v602_v2 = vsub.f32 %v513_v29, %v586_v56 }
 0x643   :  { %v608_v5 = vmul.f32 1.442695, %v602_v2 }
 0x644   :  { %v592_v6 = vpop.xlane.xlu0 %591 }
 0x645   :  { %5822 = vpow2.f32 %v608_v5  ;;  %v604_v7 = vsub.f32 %v521_v30, %v592_v6  ;;  %v463_v6 = vld [vmem:[%s7483_s6] sm:$0xf] }
 0x647   :  { %v612_v10 = vmul.f32 1.442695, %v604_v7  ;;  %v795_v7 = vsel %vm474_vm4, %v463_v6, 0 }
 0x649   :  { %5824 = vpow2.f32 %v612_v10 }
 0x64e   :  { %v589_v12 = vpop.xlane.xlu1 %588 }
 0x64f   :  { %v5823_v13 = vpop.eup %5822  ;;  %v603_v15 = vsub.f32 %v516_v36, %v589_v12 }
 0x650   :  { %v620_v16 = vsel %vm583_vm6, %v5823_v13, 0.0 }
 0x651   :  { %v610_v18 = vmul.f32 1.442695, %v603_v15  ;;  %621 = vadd.xlane.f32.xlu0 %v620_v16 }
 0x653   :  { %v5825_v20 = vpop.eup %5824  ;;  %5826 = vpow2.f32 %v610_v18 }
 0x654   :  { %v626_v22 = vsel %vm583_vm6, %v5825_v20, 0.0 }
 0x655   :  { %627 = vadd.xlane.f32.xlu1 %v626_v22 }
 0x65d   :  { %v5827_v23 = vpop.eup %5826 }
 0x65e   :  { %v623_v25 = vsel %vm583_vm6, %v5827_v23, 0.0 }
 0x65f   :  { %624 = vadd.xlane.f32.xlu0 %v623_v25 }
 0x666   :  { %658 = vrot.lane.b32.xlu1 %v6351_v48, %s6094_s17 }
 0x675   :  { %656 = vrot.lane.b32.xlu0 %v6323_v8, %s6094_s17 }
 0x6de   :  { %v622_v28 = vpop.xlane.xlu0 %621 }
 0x6e2   :  { %v628_v27 = vpop.xlane.xlu1 %627 }
 0x6e3   :  { %5828 = vrcp.f32 %v628_v27 }
 0x6e4   :  { %5830 = vrcp.f32 %v622_v28 }
 0x6e6   :  { %v659_v33 = vpop.permute.xlu1 %658 }
 0x6e7   :  { %v668_v46 = vsel %vm474_vm4, %v659_v33, 0 }
 0x6ec   :  { %v625_v29 = vpop.xlane.xlu0 %624 }
 0x6ed   :  { %5832 = vrcp.f32 %v625_v29  ;;  %v5829_v38 = vpop.eup %5828 }
 0x6ee   :  { %v5831_v41 = vpop.eup %5830  ;;  %v646_v49 = vmul.f32 %v5829_v38, %v5825_v20 }
 0x6ef   :  { %v644_v43 = vmul.f32 %v5831_v41, %v5823_v13 }
 0x6f0   :  { %v657_v30 = vpop.permute.xlu0 %656  ;;  %v651_v59 = vpack.c.bf16 %v646_v49, %v646_v49 }
 0x6f1   :  { %5280 = vmatprep.subr.bf16.mxu1 %v657_v30  ;;  %v6416_v32 = vpop.f32.mrb[12].mxu0 }
 0x6f2   :  { %5281 = vmatpush3.bf16.msra.mxu1 %v657_v30  ;;  %v6418_v36 = vpop.f32.mrb[13].mxu0 }
 0x6f3   :  { %5724 = vmatprep.subr.msk.bf16.mxu1 %vm474_vm4, %v659_v33  ;;  %v5295_v37 = vpop.f32.mrb[14].mxu0 }
 0x6f4   :  { %v6421_v40 = vpop.f32.mrb[15].mxu0 }
 0x6f5   :  { %v784_v44 = vpack.c.bf16 %v6416_v32, %v6421_v40  ;;  %v6481_v32 = vpack.c.bf16 %v6372_v50, %v6368_v3  ;;  %v6490_v3 = vpack.c.bf16 %v6370_v4, %v6366_v62 }
 0x6f6   :  { %5283 = vmatpush3.bf16.msra.mxu1 %v668_v46 }
 0x6f7   :  { %v5833_v47 = vpop.eup %5832  ;;  %5296 = vmatprep.subr.bf16.mxu1 %v6090_v1  ;;  %v1330_v62 = vsel %vm474_vm4, %v6490_v3, 0 }
 0x6f8   :  { %v645_v53 = vmul.f32 %v5833_v47, %v5827_v23 }
 0x6f9   :  { %v6427_v54 = vpop.f32.mrb[16].mxu0 }
 0x6fa   :  { %v909_v55 = vpop.f32.mrb[17].mxu0  ;;  %v650_v57 = vpack.c.bf16 %v645_v53, %v644_v43  ;;  %v918_v53 = vadd.f32 %v6427_v54, %v6358_v52 }
 0x6fb   :  { %v5315_v58 = vpop.f32.mrb[18].mxu0  ;;  %v910_v43 = vadd.f32 %v909_v55, %v6358_v52 }
 0x6fc   :  { %5284 = vmatprep.mubr.msk.bf16.mxu1 %vm583_vm6, %v650_v57  ;;  %v6430_v60 = vpop.f32.mrb[19].mxu0 }
 0x6fd   :  { %5285 = vmatmul.mubr.msk.bf16.vlgmr.msra.gmra.mrb[20].mxu1 %vm583_vm6, %v651_v59  ;;  %v986_v57 = vsel %vm583_vm6, %v910_v43, -inf  ;;  %v913_v55 = vadd.f32 %v6430_v60, %v6358_v52 }
 0x6fe   :  { %5298 = vmatprep.mubr.msk.bf16.mxu1 %vm6091_vm0, %v6090_v1  ;;  %5297 = vmatpush3.bf16.msra.mxu1 %v795_v7 }
 0x6ff   :  { %v989_v54 = vsel %vm583_vm6, %v913_v55, -inf }
 0x701   :  { %v5320_v51 = vpop.f32.mrb[20].mxu0 }
 0x702   :  { %v972_v45 = vpop.f32.mrb[21].mxu0  ;;  %v981_v56 = vadd.f32 %v5320_v51, %v6358_v52 }
 0x703   :  { %v973_v61 = vadd.f32 %v972_v45, %v6358_v52  ;;  %v5321_v63 = vpop.f32.mrb[22].mxu0 }
 0x704   :  { %v975_v9 = vpop.f32.mrb[23].mxu0  ;;  %v1001_v5 = vsel %vm583_vm6, %v981_v56, -inf }
 0x705   :  { %v976_v0 = vadd.f32 %v975_v9, %v6358_v52  ;;  %v995_v42 = vsel %vm583_vm6, %v973_v61, -inf }
 0x706   :  { %996 = vmax.xlane.f32.xlu1 %v995_v42 }
 0x707   :  { %v998_v2 = vsel %vm583_vm6, %v976_v0, -inf }
 0x708   :  { %999 = vmax.xlane.f32.xlu0 %v998_v2 }
 0x70c   :  { %1002 = vmax.xlane.f32.xlu0 %v1001_v5  ;;  %v1269_v5 = vsel %vm474_vm4, %v6481_v32, 0 }
 0x793   :  { %v997_v10 = vpop.xlane.xlu1 %996 }
 0x794   :  { %v1007_v15 = vsub.f32 %v973_v61, %v997_v10 }
 0x795   :  { %v1000_v12 = vpop.xlane.xlu0 %999 }
 0x796   :  { %v1008_v13 = vsub.f32 %v976_v0, %v1000_v12  ;;  %v1016_v22 = vmul.f32 1.442695, %v1007_v15 }
 0x798   :  { %v1018_v16 = vmul.f32 1.442695, %v1008_v13 }
 0x799   :  { %v1003_v18 = vpop.xlane.xlu0 %1002 }
 0x79a   :  { %5834 = vpow2.f32 %v1018_v16  ;;  %v1009_v20 = vsub.f32 %v981_v56, %v1003_v18 }
 0x79c   :  { %v1020_v23 = vmul.f32 1.442695, %v1009_v20 }
 0x79e   :  { %5836 = vpow2.f32 %v1020_v23 }
 0x79f   :  { %5838 = vpow2.f32 %v1016_v22 }
 0x7a4   :  { %v5835_v25 = vpop.eup %5834 }
 0x7a5   :  { %v1034_v27 = vsel %vm583_vm6, %v5835_v25, 0.0 }
 0x7a6   :  { %1035 = vadd.xlane.f32.xlu0 %v1034_v27 }
 0x7a8   :  { %v5837_v28 = vpop.eup %5836 }
 0x7a9   :  { %v1037_v29 = vsel %vm583_vm6, %v5837_v28, 0.0  ;;  %v5839_v30 = vpop.eup %5838 }
 0x7aa   :  { %1038 = vadd.xlane.f32.xlu1 %v1037_v29  ;;  %v1031_v33 = vsel %vm583_vm6, %v5839_v30, 0.0 }
 0x7ae   :  { %1032 = vadd.xlane.f32.xlu1 %v1031_v33 }
 0x7bc   :  { %1118 = vrot.lane.b32.xlu0 %v6329_v24, %s6096_s20 }
 0x7bf   :  { %1120 = vrot.lane.b32.xlu1 %v6345_v39, %s6096_s20 }
 0x7c0   :  { %1319 = vrot.lane.b32.xlu0 %v6329_v24, %s6097_s21 }
 0x7c3   :  { %1258 = vrot.lane.b32.xlu1 %v6323_v8, %s6097_s21 }
 0x7c7   :  { %1260 = vrot.lane.b32.xlu1 %v6351_v48, %s6097_s21 }
 0x7cb   :  { %1321 = vrot.lane.b32.xlu1 %v6345_v39, %s6097_s21 }
 0x7d0   :  { %v5286_v37 = vpop.f32.mrb[20].mxu1 }
 0x7d1   :  { %v783_v38 = vpack.c.bf16 %v6418_v36, %v5286_v37  ;;  %v704_v41 = vpop.f32.mrb[21].mxu1  ;;  %v992_v36 = vsel %vm583_vm6, %v918_v53, -inf }
 0x7d2   :  { %v5287_v46 = vpop.f32.mrb[22].mxu1 }
 0x7d3   :  { %v707_v47 = vpop.f32.mrb[23].mxu1 }
 0x7d4   :  { %v782_v49 = vpack.c.bf16 %v707_v47, %v704_v41 }
 0x7d6   :  { %5299 = vmatmul.mubr.msk.bf16.vlgmr.msra.gmra.mrb[24].mxu1 %vm467_vm3, %v782_v49 }
 0x7d7   :  { %5302 = vmatprep.mubr.msk.bf16.mxu1 %vm6091_vm0, %v6090_v1 }
 0x7de   :  { %5303 = vmatmul.mubr.msk.bf16.gmra.mrb[28].mxu1 %vm467_vm3, %v783_v38 }
 0x7df   :  { %987 = vmax.xlane.f32.xlu0 %v986_v57  ;;  %5306 = vmatprep.mubr.msk.bf16.mxu1 %vm6091_vm0, %v6090_v1 }
 0x7e3   :  { %993 = vmax.xlane.f32.xlu0 %v992_v36 }
 0x7e6   :  { %5307 = vmatmul.mubr.msk.bf16.gmra.mrb[32].mxu1 %vm467_vm3, %v784_v44 }
 0x7ef   :  { %990 = vmax.xlane.f32.xlu1 %v989_v54 }
 0x833   :  { %v1036_v58 = vpop.xlane.xlu0 %1035 }
 0x837   :  { %v1119_v59 = vpop.permute.xlu0 %1118  ;;  %v1039_v51 = vpop.xlane.xlu1 %1038 }
 0x838   :  { %5330 = vmatprep.subr.bf16.mxu1 %v1119_v59  ;;  %5840 = vrcp.f32 %v1039_v51 }
 0x839   :  { %5331 = vmatpush3.bf16.msra.mxu1 %v1119_v59  ;;  %5842 = vrcp.f32 %v1036_v58 }
 0x83b   :  { %v1033_v45 = vpop.xlane.xlu1 %1032  ;;  %v1320_v7 = vpop.permute.xlu0 %1319 }
 0x83c   :  { %5844 = vrcp.f32 %v1033_v45 }
 0x83f   :  { %v1121_v61 = vpop.permute.xlu1 %1120 }
 0x840   :  { %5729 = vmatprep.subr.msk.bf16.mxu1 %vm474_vm4, %v1121_v61  ;;  %v1130_v40 = vsel %vm474_vm4, %v1121_v61, 0 }
 0x841   :  { %5333 = vmatpush3.bf16.msra.mxu1 %v1130_v40 }
 0x842   :  { %5730 = vmatprep.subr.msk.bf16.mxu1 %vm474_vm4, %v6481_v32  ;;  %v5841_v44 = vpop.eup %5840 }
 0x843   :  { %v5843_v60 = vpop.eup %5842  ;;  %v1051_v9 = vmul.f32 %v5841_v44, %v5837_v28  ;;  %v1259_v50 = vpop.permute.xlu1 %1258 }
 0x844   :  { %v1050_v42 = vmul.f32 %v5843_v60, %v5835_v25 }
 0x845   :  { %v1055_v2 = vpack.c.bf16 %v1051_v9, %v1051_v9 }
 0x846   :  { %v5845_v63 = vpop.eup %5844 }
 0x847   :  { %v1049_v0 = vmul.f32 %v5845_v63, %v5839_v30  ;;  %v1261_v6 = vpop.permute.xlu1 %1260 }
 0x849   :  { %v1054_v56 = vpack.c.bf16 %v1050_v42, %v1049_v0 }
 0x84b   :  { %5334 = vmatprep.mubr.msk.bf16.mxu1 %vm583_vm6, %v1054_v56  ;;  %v1322_v4 = vpop.permute.xlu1 %1321 }
 0x84c   :  { %5335 = vmatmul.mubr.msk.bf16.vlgmr.msra.gmra.mrb[36].mxu1 %vm583_vm6, %v1055_v2 }
 0x84d   :  { %5353 = vmatpush3.bf16.msra.mxu1 %v1269_v5  ;;  %5354 = vmatprep.mubr.msk.bf16.mxu1 %vm467_vm3, %v1259_v50 }
 0x84e   :  { %5731 = vmatprep.subr.msk.bf16.mxu1 %vm474_vm4, %v6490_v3 }
 0x854   :  { %5355 = vmatmul.mubr.msk.bf16.vlgmr.msra.gmra.mrb[40].mxu1 %vm467_vm3, %v1261_v6 }
 0x855   :  { %5359 = vmatpush3.bf16.msra.mxu1 %v1330_v62  ;;  %5360 = vmatprep.mubr.msk.bf16.mxu1 %vm467_vm3, %v1320_v7 }
 0x85c   :  { %5361 = vmatmul.mubr.msk.bf16.vlgmr.msra.gmra.mrb[44].mxu1 %vm467_vm3, %v1322_v4 }
 0x86c   :  { %v988_v10 = vpop.xlane.xlu0 %987 }
 0x86d   :  { %v1004_v12 = vsub.f32 %v910_v43, %v988_v10 }
 0x86f   :  { %v1010_v13 = vmul.f32 1.442695, %v1004_v12 }
 0x870   :  { %v994_v15 = vpop.xlane.xlu0 %993 }
 0x871   :  { %5846 = vpow2.f32 %v1010_v13  ;;  %v1006_v16 = vsub.f32 %v918_v53, %v994_v15 }
 0x873   :  { %v1014_v18 = vmul.f32 1.442695, %v1006_v16 }
 0x875   :  { %5848 = vpow2.f32 %v1014_v18 }
 0x87b   :  { %v5847_v20 = vpop.eup %5846 }
 0x87c   :  { %v991_v22 = vpop.xlane.xlu1 %990  ;;  %v1022_v23 = vsel %vm583_vm6, %v5847_v20, 0.0 }
 0x87d   :  { %v1005_v25 = vsub.f32 %v913_v55, %v991_v22  ;;  %1023 = vadd.xlane.f32.xlu0 %v1022_v23 }
 0x87f   :  { %v5849_v27 = vpop.eup %5848  ;;  %v1012_v28 = vmul.f32 1.442695, %v1005_v25 }
 0x880   :  { %v1028_v29 = vsel %vm583_vm6, %v5849_v27, 0.0 }
 0x881   :  { %5850 = vpow2.f32 %v1012_v28  ;;  %1029 = vadd.xlane.f32.xlu1 %v1028_v29 }
 0x88b   :  { %v5851_v30 = vpop.eup %5850 }
 0x88c   :  { %v1025_v33 = vsel %vm583_vm6, %v5851_v30, 0.0 }
 0x88d   :  { %1026 = vadd.xlane.f32.xlu0 %v1025_v33 }
 0x892   :  { %1058 = vrot.lane.b32.xlu1 %v6351_v48, %s6096_s20 }
 0x8a3   :  { %1056 = vrot.lane.b32.xlu0 %v6323_v8, %s6096_s20 }
 0x8a9   :  { %v6510_v37 = vpop.f32.mrb[24].mxu1 }
 0x8aa   :  { %v5300_v38 = vpop.f32.mrb[25].mxu1 }
 0x8ab   :  { %v6512_v41 = vpop.f32.mrb[26].mxu1 }
 0x8ac   :  { %v5301_v46 = vpop.f32.mrb[27].mxu1 }
 0x8b1   :  { %v6514_v47 = vpop.f32.mrb[28].mxu1 }
 0x8b2   :  { %v5304_v49 = vpop.f32.mrb[29].mxu1 }
 0x8b3   :  { %v6516_v43 = vpop.f32.mrb[30].mxu1 }
 0x8b4   :  { %v5305_v53 = vpop.f32.mrb[31].mxu1 }
 0x8b9   :  { %v6518_v57 = vpop.f32.mrb[32].mxu1 }
 0x8ba   :  { %v5308_v36 = vpop.f32.mrb[33].mxu1 }
 0x8bb   :  { %v6520_v55 = vpop.f32.mrb[34].mxu1 }
 0x8bc   :  { %v5309_v54 = vpop.f32.mrb[35].mxu1 }
 0x90a   :  { %v1024_v59 = vpop.xlane.xlu0 %1023 }
 0x90e   :  { %v1030_v58 = vpop.xlane.xlu1 %1029 }
 0x90f   :  { %5852 = vrcp.f32 %v1030_v58 }
 0x910   :  { %5854 = vrcp.f32 %v1024_v59 }
 0x912   :  { %v1059_v40 = vpop.permute.xlu1 %1058 }
 0x913   :  { %v1068_v56 = vsel %vm474_vm4, %v1059_v40, 0 }
 0x919   :  { %v5853_v63 = vpop.eup %5852 }
 0x91a   :  { %v1027_v51 = vpop.xlane.xlu0 %1026  ;;  %v5855_v0 = vpop.eup %5854  ;;  %v1048_v50 = vmul.f32 %v5853_v63, %v5849_v27 }
 0x91b   :  { %5856 = vrcp.f32 %v1027_v51  ;;  %v1046_v5 = vmul.f32 %v5855_v0, %v5847_v20 }
 0x91c   :  { %v1053_v12 = vpack.c.bf16 %v1048_v50, %v1048_v50 }
 0x91e   :  { %v1057_v45 = vpop.permute.xlu0 %1056 }
 0x91f   :  { %5322 = vmatprep.subr.bf16.mxu0 %v1057_v45  ;;  %v6522_v61 = vpop.f32.mrb[36].mxu1 }
 0x920   :  { %5323 = vmatpush3.bf16.msra.mxu0 %v1057_v45  ;;  %v6524_v44 = vpop.f32.mrb[37].mxu1 }
 0x921   :  { %5728 = vmatprep.subr.msk.bf16.mxu0 %vm474_vm4, %v1059_v40  ;;  %v5337_v60 = vpop.f32.mrb[38].mxu1 }
 0x922   :  { %v6527_v9 = vpop.f32.mrb[39].mxu1 }
 0x923   :  { %v1182_v42 = vpack.c.bf16 %v6522_v61, %v6527_v9  ;;  %v1657_v61 = vrot.slane %v6481_v32, 4 }
 0x924   :  { %5325 = vmatpush3.bf16.msra.mxu0 %v1068_v56 }
 0x925   :  { %v5857_v2 = vpop.eup %5856  ;;  %5338 = vmatprep.subr.bf16.mxu0 %v6090_v1 }
 0x926   :  { %v1047_v6 = vmul.f32 %v5857_v2, %v5851_v30  ;;  %v464_v30 = vld [vmem:[%s7483_s6 + $0x4] sm:$0xf] }
 0x927   :  { %v6533_v7 = vpop.f32.mrb[40].mxu1  ;;  %v1193_v33 = vsel %vm474_vm4, %v464_v30, 0 }
 0x928   :  { %v1305_v62 = vpop.f32.mrb[41].mxu1  ;;  %v1052_v4 = vpack.c.bf16 %v1047_v6, %v1046_v5 }
 0x929   :  { %v5357_v10 = vpop.f32.mrb[42].mxu1 }
 0x92a   :  { %5326 = vmatprep.mubr.msk.bf16.mxu0 %vm583_vm6, %v1052_v4  ;;  %v6536_v13 = vpop.f32.mrb[43].mxu1 }
 0x92b   :  { %5327 = vmatmul.mubr.msk.bf16.vlgmr.msra.gmra.mrb[24].mxu0 %vm583_vm6, %v1053_v12  ;;  %v1306_v12 = vadd.f32 %v1305_v62, %v6358_v52  ;;  %v1309_v62 = vadd.f32 %v6536_v13, %v6358_v52 }
 0x92c   :  { %5340 = vmatprep.mubr.msk.bf16.mxu0 %vm6091_vm0, %v6090_v1  ;;  %5339 = vmatpush3.bf16.msra.mxu0 %v1193_v33 }
 0x92f   :  { %v5362_v15 = vpop.f32.mrb[44].mxu1 }
 0x930   :  { %v1366_v16 = vpop.f32.mrb[45].mxu1  ;;  %v1375_v27 = vadd.f32 %v5362_v15, %v6358_v52  ;;  %v1314_v15 = vadd.f32 %v6533_v7, %v6358_v52  ;;  %v1383_v7 = vsel %vm583_vm6, %v1309_v62, -inf }
 0x931   :  { %v1367_v18 = vadd.f32 %v1366_v16, %v6358_v52  ;;  %v5363_v20 = vpop.f32.mrb[46].mxu1  ;;  %v1380_v16 = vsel %vm583_vm6, %v1306_v12, -inf }
 0x932   :  { %v1369_v22 = vpop.f32.mrb[47].mxu1  ;;  %v1395_v29 = vsel %vm583_vm6, %v1375_v27, -inf }
 0x933   :  { %v1370_v23 = vadd.f32 %v1369_v22, %v6358_v52  ;;  %v1389_v25 = vsel %vm583_vm6, %v1367_v18, -inf }
 0x934   :  { %1390 = vmax.xlane.f32.xlu1 %v1389_v25 }
 0x935   :  { %v1392_v28 = vsel %vm583_vm6, %v1370_v23, -inf }
 0x936   :  { %1393 = vmax.xlane.f32.xlu0 %v1392_v28 }
 0x93a   :  { %1396 = vmax.xlane.f32.xlu0 %v1395_v29 }
 0x9c1   :  { %v1391_v38 = vpop.xlane.xlu1 %1390 }
 0x9c2   :  { %v1401_v53 = vsub.f32 %v1367_v18, %v1391_v38 }
 0x9c3   :  { %v1394_v46 = vpop.xlane.xlu0 %1393 }
 0x9c4   :  { %v1402_v49 = vsub.f32 %v1370_v23, %v1394_v46  ;;  %v1410_v59 = vmul.f32 1.442695, %v1401_v53  ;;  %v1720_v46 = vrot.slane %v6490_v3, 4 }
 0x9c6   :  { %v1412_v36 = vmul.f32 1.442695, %v1402_v49  ;;  %v1665_v49 = vsel %vm474_vm4, %v1657_v61, 0 }
 0x9c7   :  { %v1397_v54 = vpop.xlane.xlu0 %1396 }
 0x9c8   :  { %5858 = vpow2.f32 %v1412_v36  ;;  %v1403_v58 = vsub.f32 %v1375_v27, %v1397_v54  ;;  %v1728_v54 = vsel %vm474_vm4, %v1720_v46, 0 }
 0x9ca   :  { %v1414_v51 = vmul.f32 1.442695, %v1403_v58 }
 0x9cc   :  { %5860 = vpow2.f32 %v1414_v51 }
 0x9cd   :  { %5862 = vpow2.f32 %v1410_v59 }
 0x9d2   :  { %v5859_v45 = vpop.eup %5858 }
 0x9d3   :  { %v1428_v40 = vsel %vm583_vm6, %v5859_v45, 0.0 }
 0x9d4   :  { %1429 = vadd.xlane.f32.xlu0 %v1428_v40 }
 0x9d6   :  { %v5861_v60 = vpop.eup %5860 }
 0x9d7   :  { %v1431_v63 = vsel %vm583_vm6, %v5861_v60, 0.0  ;;  %v5863_v0 = vpop.eup %5862 }
 0x9d8   :  { %1432 = vadd.xlane.f32.xlu1 %v1431_v63  ;;  %v1425_v56 = vsel %vm583_vm6, %v5863_v0, 0.0 }
 0x9dc   :  { %1426 = vadd.xlane.f32.xlu1 %v1425_v56 }
 0x9ea   :  { %1512 = vrot.lane.b32.xlu0 %v6329_v24, %s6098_s24 }
 0x9ed   :  { %1514 = vrot.lane.b32.xlu1 %v6345_v39, %s6098_s24 }
 0x9ee   :  { %1715 = vrot.lane.b32.xlu0 %v6329_v24, %s6099_s1 }
 0x9f1   :  { %1652 = vrot.lane.b32.xlu1 %v6323_v8, %s6099_s1 }
 0x9f5   :  { %1654 = vrot.lane.b32.xlu1 %v6351_v48, %s6099_s1 }
 0x9f9   :  { %1717 = vrot.lane.b32.xlu1 %v6345_v39, %s6099_s1 }
 0x9fe   :  { %v5328_v2 = vpop.f32.mrb[24].mxu0 }
 0x9ff   :  { %v1181_v50 = vpack.c.bf16 %v6524_v44, %v5328_v2  ;;  %v1104_v5 = vpop.f32.mrb[25].mxu0  ;;  %v1386_v44 = vsel %vm583_vm6, %v1314_v15, -inf }
 0xa00   :  { %v5329_v6 = vpop.f32.mrb[26].mxu0 }
 0xa01   :  { %v1107_v4 = vpop.f32.mrb[27].mxu0 }
 0xa02   :  { %v1180_v10 = vpack.c.bf16 %v1107_v4, %v1104_v5 }
 0xa04   :  { %5341 = vmatmul.mubr.msk.bf16.vlgmr.msra.gmra.mrb[28].mxu0 %vm467_vm3, %v1180_v10 }
 0xa05   :  { %5344 = vmatprep.mubr.msk.bf16.mxu0 %vm6091_vm0, %v6090_v1 }
 0xa0c   :  { %5345 = vmatmul.mubr.msk.bf16.gmra.mrb[32].mxu0 %vm467_vm3, %v1181_v50 }
 0xa0d   :  { %1381 = vmax.xlane.f32.xlu0 %v1380_v16  ;;  %5348 = vmatprep.mubr.msk.bf16.mxu0 %vm6091_vm0, %v6090_v1  ;;  %v855_v16 = vadd.f32 %v6512_v41, %v6226_v17  ;;  %v858_v41 = vadd.f32 %v6518_v57, %v6230_v21 }
 0xa11   :  { %1387 = vmax.xlane.f32.xlu0 %v1386_v44 }
 0xa14   :  { %5349 = vmatmul.mubr.msk.bf16.gmra.mrb[36].mxu0 %vm467_vm3, %v1182_v42 }
 0xa1d   :  { %1384 = vmax.xlane.f32.xlu1 %v1383_v7 }
 0xa61   :  { %v1430_v18 = vpop.xlane.xlu0 %1429 }
 0xa65   :  { %v1513_v20 = vpop.permute.xlu0 %1512  ;;  %v1433_v22 = vpop.xlane.xlu1 %1432 }
 0xa66   :  { %5372 = vmatprep.subr.bf16.mxu0 %v1513_v20  ;;  %5864 = vrcp.f32 %v1433_v22  ;;  %v856_v22 = vadd.f32 %v6514_v47, %v6240_v26 }
 0xa67   :  { %5373 = vmatpush3.bf16.msra.mxu0 %v1513_v20  ;;  %5866 = vrcp.f32 %v1430_v18 }
 0xa69   :  { %v1427_v23 = vpop.xlane.xlu1 %1426  ;;  %v1716_v36 = vpop.permute.xlu0 %1715 }
 0xa6a   :  { %5868 = vrcp.f32 %v1427_v23 }
 0xa6d   :  { %v1515_v25 = vpop.permute.xlu1 %1514 }
 0xa6e   :  { %5733 = vmatprep.subr.msk.bf16.mxu0 %vm474_vm4, %v1515_v25  ;;  %v1524_v9 = vsel %vm474_vm4, %v1515_v25, 0  ;;  %v857_v25 = vadd.f32 %v6516_v43, %v6247_v31 }
 0xa6f   :  { %5375 = vmatpush3.bf16.msra.mxu0 %v1524_v9 }
 0xa70   :  { %5734 = vmatprep.subr.msk.bf16.mxu0 %vm474_vm4, %v1657_v61  ;;  %v5865_v42 = vpop.eup %5864 }
 0xa71   :  { %v5867_v13 = vpop.eup %5866  ;;  %v1445_v28 = vmul.f32 %v5865_v42, %v5861_v60  ;;  %v1653_v32 = vpop.permute.xlu1 %1652 }
 0xa72   :  { %v1444_v30 = vmul.f32 %v5867_v13, %v5859_v45  ;;  %v859_v13 = vadd.f32 %v6520_v55, %v6251_v34 }
 0xa73   :  { %v1449_v38 = vpack.c.bf16 %v1445_v28, %v1445_v28 }
 0xa74   :  { %v5869_v27 = vpop.eup %5868 }
 0xa75   :  { %v1443_v29 = vmul.f32 %v5869_v27, %v5863_v0  ;;  %v1655_v53 = vpop.permute.xlu1 %1654 }
 0xa77   :  { %v1448_v33 = vpack.c.bf16 %v1444_v30, %v1443_v29 }
 0xa79   :  { %5376 = vmatprep.mubr.msk.bf16.mxu0 %vm583_vm6, %v1448_v33  ;;  %v1718_v3 = vpop.permute.xlu1 %1717 }
 0xa7a   :  { %5377 = vmatmul.mubr.msk.bf16.vlgmr.msra.gmra.mrb[40].mxu0 %vm583_vm6, %v1449_v38 }
 0xa7b   :  { %5395 = vmatpush3.bf16.msra.mxu0 %v1665_v49  ;;  %5396 = vmatprep.mubr.msk.bf16.mxu0 %vm467_vm3, %v1653_v32 }
 0xa7c   :  { %5735 = vmatprep.subr.msk.bf16.mxu0 %vm474_vm4, %v1720_v46 }
 0xa82   :  { %5397 = vmatmul.mubr.msk.bf16.vlgmr.msra.gmra.mrb[44].mxu0 %vm467_vm3, %v1655_v53 }
 0xa83   :  { %5401 = vmatpush3.bf16.msra.mxu0 %v1728_v54  ;;  %5402 = vmatprep.mubr.msk.bf16.mxu0 %vm467_vm3, %v1716_v36 }
 0xa8a   :  { %5403 = vmatmul.mubr.msk.bf16.vlgmr.msra.gmra.mrb[48].mxu0 %vm467_vm3, %v1718_v3 }
 0xa9a   :  { %v1382_v58 = vpop.xlane.xlu0 %1381 }
 0xa9b   :  { %v1398_v59 = vsub.f32 %v1306_v12, %v1382_v58  ;;  %v854_v12 = vadd.f32 %v6510_v37, %v6221_v11 }
 0xa9d   :  { %v1404_v51 = vmul.f32 1.442695, %v1398_v59 }
 0xa9e   :  { %v1388_v45 = vpop.xlane.xlu0 %1387 }
 0xa9f   :  { %5870 = vpow2.f32 %v1404_v51  ;;  %v1400_v40 = vsub.f32 %v1314_v15, %v1388_v45 }
 0xaa1   :  { %v1408_v60 = vmul.f32 1.442695, %v1400_v40 }
 0xaa3   :  { %5872 = vpow2.f32 %v1408_v60 }
 0xaa9   :  { %v5871_v63 = vpop.eup %5870 }
 0xaaa   :  { %v1385_v0 = vpop.xlane.xlu1 %1384  ;;  %v1416_v56 = vsel %vm583_vm6, %v5871_v63, 0.0 }
 0xaab   :  { %v1399_v2 = vsub.f32 %v1309_v62, %v1385_v0  ;;  %1417 = vadd.xlane.f32.xlu0 %v1416_v56 }
 0xaad   :  { %v5873_v50 = vpop.eup %5872  ;;  %v1406_v5 = vmul.f32 1.442695, %v1399_v2 }
 0xaae   :  { %v1422_v6 = vsel %vm583_vm6, %v5873_v50, 0.0 }
 0xaaf   :  { %5874 = vpow2.f32 %v1406_v5  ;;  %1423 = vadd.xlane.f32.xlu1 %v1422_v6 }
 0xab9   :  { %v5875_v4 = vpop.eup %5874 }
 0xaba   :  { %v1419_v10 = vsel %vm583_vm6, %v5875_v4, 0.0 }
 0xabb   :  { %1420 = vadd.xlane.f32.xlu0 %v1419_v10 }
 0xac0   :  { %1452 = vrot.lane.b32.xlu1 %v6351_v48, %s6098_s24 }
 0xad1   :  { %1450 = vrot.lane.b32.xlu0 %v6323_v8, %s6098_s24 }
 0xad7   :  { %v1229_v15 = vpop.f32.mrb[28].mxu0 }
 0xad8   :  { %v6610_v44 = vadd.f32 %v1229_v15, %v854_v12  ;;  %v5342_v62 = vpop.f32.mrb[29].mxu0 }
 0xad9   :  { %v1232_v7 = vpop.f32.mrb[30].mxu0 }
 0xada   :  { %v6612_v18 = vadd.f32 %v1232_v7, %v855_v16  ;;  %v5343_v20 = vpop.f32.mrb[31].mxu0 }
 0xadf   :  { %v1237_v23 = vpop.f32.mrb[32].mxu0 }
 0xae0   :  { %v6618_v61 = vadd.f32 %v1237_v23, %v856_v22  ;;  %v5346_v11 = vpop.f32.mrb[33].mxu0 }
 0xae1   :  { %v1240_v37 = vpop.f32.mrb[34].mxu0 }
 0xae2   :  { %v6620_v9 = vadd.f32 %v1240_v37, %v857_v25  ;;  %v5347_v17 = vpop.f32.mrb[35].mxu0  ;;  %v465_v25 = vld [vmem:[%s7483_s6 + $0x8] sm:$0xf] }
 0xae3   :  { %v1587_v11 = vsel %vm474_vm4, %v465_v25, 0 }
 0xae7   :  { %v1245_v42 = vpop.f32.mrb[36].mxu0 }
 0xae8   :  { %v6626_v27 = vadd.f32 %v1245_v42, %v858_v41  ;;  %v5350_v26 = vpop.f32.mrb[37].mxu0 }
 0xae9   :  { %v1248_v47 = vpop.f32.mrb[38].mxu0 }
 0xaea   :  { %v6628_v28 = vadd.f32 %v1248_v47, %v859_v13  ;;  %v5351_v31 = vpop.f32.mrb[39].mxu0 }
 0xb38   :  { %v1418_v29 = vpop.xlane.xlu0 %1417 }
 0xb3c   :  { %v1424_v43 = vpop.xlane.xlu1 %1423 }
 0xb3d   :  { %5876 = vrcp.f32 %v1424_v43 }
 0xb3e   :  { %5878 = vrcp.f32 %v1418_v29 }
 0xb40   :  { %v1453_v57 = vpop.permute.xlu1 %1452 }
 0xb41   :  { %v1462_v53 = vsel %vm474_vm4, %v1453_v57, 0 }
 0xb47   :  { %v5877_v38 = vpop.eup %5876 }
 0xb48   :  { %v1421_v30 = vpop.xlane.xlu0 %1420  ;;  %v5879_v32 = vpop.eup %5878  ;;  %v1442_v54 = vmul.f32 %v5877_v38, %v5873_v50 }
 0xb49   :  { %5880 = vrcp.f32 %v1421_v30  ;;  %v1440_v3 = vmul.f32 %v5879_v32, %v5871_v63 }
 0xb4a   :  { %v1447_v0 = vpack.c.bf16 %v1442_v54, %v1442_v54 }
 0xb4c   :  { %v1451_v33 = vpop.permute.xlu0 %1450 }
 0xb4d   :  { %5364 = vmatprep.subr.bf16.mxu1 %v1451_v33  ;;  %v6630_v21 = vpop.f32.mrb[40].mxu0 }
 0xb4e   :  { %5365 = vmatpush3.bf16.msra.mxu1 %v1451_v33  ;;  %v6632_v34 = vpop.f32.mrb[41].mxu0 }
 0xb4f   :  { %5732 = vmatprep.subr.msk.bf16.mxu1 %vm474_vm4, %v1453_v57  ;;  %v5379_v55 = vpop.f32.mrb[42].mxu0 }
 0xb50   :  { %v6635_v46 = vpop.f32.mrb[43].mxu0 }
 0xb51   :  { %v1576_v49 = vpack.c.bf16 %v6630_v21, %v6635_v46 }
 0xb52   :  { %5367 = vmatpush3.bf16.msra.mxu1 %v1462_v53 }
 0xb53   :  { %v5881_v36 = vpop.eup %5880  ;;  %5380 = vmatprep.subr.bf16.mxu1 %v6090_v1 }
 0xb54   :  { %v1441_v58 = vmul.f32 %v5881_v36, %v5875_v4 }
 0xb55   :  { %v5398_v59 = vpop.f32.mrb[44].mxu0 }
 0xb56   :  { %v1701_v51 = vpop.f32.mrb[45].mxu0  ;;  %v1446_v45 = vpack.c.bf16 %v1441_v58, %v1440_v3  ;;  %v1710_v63 = vadd.f32 %v5398_v59, %v6358_v52 }
 0xb57   :  { %v1702_v40 = vadd.f32 %v1701_v51, %v6358_v52  ;;  %v5399_v60 = vpop.f32.mrb[46].mxu0 }
 0xb58   :  { %5368 = vmatprep.mubr.msk.bf16.mxu1 %vm583_vm6, %v1446_v45  ;;  %v1704_v56 = vpop.f32.mrb[47].mxu0  ;;  %v1784_v15 = vsel %vm583_vm6, %v1710_v63, -inf }
 0xb59   :  { %v1705_v2 = vadd.f32 %v1704_v56, %v6358_v52  ;;  %5369 = vmatmul.mubr.msk.bf16.vlgmr.msra.gmra.mrb[48].mxu1 %vm583_vm6, %v1447_v0  ;;  %v1778_v50 = vsel %vm583_vm6, %v1702_v40, -inf }
 0xb5a   :  { %1779 = vmax.xlane.f32.xlu1 %v1778_v50  ;;  %5382 = vmatprep.mubr.msk.bf16.mxu1 %vm6091_vm0, %v6090_v1 }
 0xb5b   :  { %v1781_v5 = vsel %vm583_vm6, %v1705_v2, -inf  ;;  %5381 = vmatpush3.bf16.msra.mxu1 %v1587_v11 }
 0xb5c   :  { %1782 = vmax.xlane.f32.xlu0 %v1781_v5 }
 0xb5d   :  { %v5404_v6 = vpop.f32.mrb[48].mxu0 }
 0xb5e   :  { %v1764_v4 = vpop.f32.mrb[49].mxu0  ;;  %v1773_v62 = vadd.f32 %v5404_v6, %v6358_v52 }
 0xb5f   :  { %v1765_v10 = vadd.f32 %v1764_v4, %v6358_v52  ;;  %v5405_v12 = vpop.f32.mrb[50].mxu0 }
 0xb60   :  { %v1767_v16 = vpop.f32.mrb[51].mxu0  ;;  %1785 = vmax.xlane.f32.xlu0 %v1784_v15  ;;  %v1793_v23 = vsel %vm583_vm6, %v1773_v62, -inf }
 0xb61   :  { %v1768_v7 = vadd.f32 %v1767_v16, %v6358_v52  ;;  %v1787_v20 = vsel %vm583_vm6, %v1765_v10, -inf }
 0xb62   :  { %1788 = vmax.xlane.f32.xlu1 %v1787_v20 }
 0xb63   :  { %v1790_v22 = vsel %vm583_vm6, %v1768_v7, -inf }
 0xb64   :  { %1791 = vmax.xlane.f32.xlu0 %v1790_v22 }
 0xb66   :  { %1794 = vmax.xlane.f32.xlu1 %v1793_v23 }
 0xbe7   :  { %v1780_v37 = vpop.xlane.xlu1 %1779 }
 0xbe8   :  { %v1796_v42 = vsub.f32 %v1702_v40, %v1780_v37 }
 0xbe9   :  { %v1783_v17 = vpop.xlane.xlu0 %1782 }
 0xbea   :  { %v1797_v41 = vsub.f32 %v1705_v2, %v1783_v17  ;;  %v1802_v43 = vmul.f32 1.442695, %v1796_v42 }
 0xbec   :  { %v1804_v13 = vmul.f32 1.442695, %v1797_v41 }
 0xbed   :  { %v1786_v26 = vpop.xlane.xlu0 %1785 }
 0xbee   :  { %5882 = vpow2.f32 %v1804_v13  ;;  %v1798_v47 = vsub.f32 %v1710_v63, %v1786_v26 }
 0xbef   :  { %v1789_v31 = vpop.xlane.xlu1 %1788 }
 0xbf0   :  { %v1806_v29 = vmul.f32 1.442695, %v1798_v47  ;;  %v1799_v33 = vsub.f32 %v1765_v10, %v1789_v31 }
 0xbf1   :  { %v1792_v30 = vpop.xlane.xlu0 %1791 }
 0xbf2   :  { %5884 = vpow2.f32 %v1806_v29  ;;  %v1800_v57 = vsub.f32 %v1768_v7, %v1792_v30  ;;  %v1808_v53 = vmul.f32 1.442695, %v1799_v33  ;;  %v466_v33 = vld [vmem:[%s7483_s6 + $0xc] sm:$0xf] }
 0xbf3   :  { %v1795_v55 = vpop.xlane.xlu1 %1794  ;;  %5886 = vpow2.f32 %v1802_v43 }
 0xbf4   :  { %v1810_v38 = vmul.f32 1.442695, %v1800_v57  ;;  %v1801_v32 = vsub.f32 %v1773_v62, %v1795_v55  ;;  %v1985_v57 = vsel %vm474_vm4, %v466_v33, 0 }
 0xbf6   :  { %v1812_v36 = vmul.f32 1.442695, %v1801_v32  ;;  %5888 = vpow2.f32 %v1810_v38 }
 0xbf8   :  { %v5883_v54 = vpop.eup %5882  ;;  %5890 = vpow2.f32 %v1812_v36 }
 0xbf9   :  { %v1817_v3 = vsel %vm583_vm6, %v5883_v54, 0.0  ;;  %5892 = vpow2.f32 %v1808_v53 }
 0xbfa   :  { %1818 = vadd.xlane.f32.xlu1 %v1817_v3 }
 0xbfc   :  { %v5885_v58 = vpop.eup %5884 }
 0xbfd   :  { %v1820_v59 = vsel %vm583_vm6, %v5885_v58, 0.0  ;;  %v5887_v51 = vpop.eup %5886 }
 0xbfe   :  { %1821 = vadd.xlane.f32.xlu0 %v1820_v59  ;;  %v1814_v40 = vsel %vm583_vm6, %v5887_v51, 0.0 }
 0xc00   :  { %v6663_v45 = vpop.eup %5888 }
 0xc01   :  { %v1826_v2 = vsel %vm583_vm6, %v6663_v45, 0.0 }
 0xc02   :  { %v5891_v60 = vpop.eup %5890  ;;  %1815 = vadd.xlane.f32.xlu0 %v1814_v40 }
 0xc03   :  { %v1829_v0 = vsel %vm583_vm6, %v5891_v60, 0.0  ;;  %v5893_v56 = vpop.eup %5892 }
 0xc04   :  { %1830 = vadd.xlane.f32.xlu1 %v1829_v0  ;;  %v1823_v50 = vsel %vm583_vm6, %v5893_v56, 0.0 }
 0xc06   :  { %1827 = vadd.xlane.f32.xlu0 %v1826_v2 }
 0xc08   :  { %1824 = vadd.xlane.f32.xlu1 %v1823_v50 }
 0xc19   :  { %1850 = vrot.lane.b32.xlu1 %v6351_v48, %s6100_s27 }
 0xc1c   :  { %1848 = vrot.lane.b32.xlu0 %v6323_v8, %s6100_s27 }
 0xc1d   :  { %1910 = vrot.lane.b32.xlu1 %v6329_v24, %s6100_s27 }
 0xc21   :  { %1912 = vrot.lane.b32.xlu1 %v6345_v39, %s6100_s27 }
 0xc2c   :  { %v5370_v63 = vpop.f32.mrb[48].mxu1 }
 0xc2d   :  { %v1575_v5 = vpack.c.bf16 %v6632_v34, %v5370_v63  ;;  %v1498_v6 = vpop.f32.mrb[49].mxu1 }
 0xc2e   :  { %v5371_v4 = vpop.f32.mrb[50].mxu1 }
 0xc2f   :  { %v1501_v10 = vpop.f32.mrb[51].mxu1 }
 0xc30   :  { %v1574_v12 = vpack.c.bf16 %v1501_v10, %v1498_v6 }
 0xc32   :  { %5383 = vmatmul.mubr.msk.bf16.vlgmr.msra.gmra.mrb[52].mxu1 %vm467_vm3, %v1574_v12 }
 0xc33   :  { %5386 = vmatprep.mubr.msk.bf16.mxu1 %vm6091_vm0, %v6090_v1 }
 0xc3a   :  { %5387 = vmatmul.mubr.msk.bf16.gmra.mrb[56].mxu1 %vm467_vm3, %v1575_v5 }
 0xc3b   :  { %5390 = vmatprep.mubr.msk.bf16.mxu1 %vm6091_vm0, %v6090_v1 }
 0xc42   :  { %5391 = vmatmul.mubr.msk.bf16.gmra.mrb[60].mxu1 %vm467_vm3, %v1576_v49 }
 0xc87   :  { %v1819_v8 = vpop.xlane.xlu1 %1818 }
 0xc8b   :  { %v1822_v24 = vpop.xlane.xlu0 %1821 }
 0xc8c   :  { %5894 = vrcp.f32 %v1822_v24  ;;  %v4918_v24 = vld [vmem:[%s7484_s7] ss:$0 sm:$0xff] }
 0xc8d   :  { %5896 = vrcp.f32 %v1819_v8 }
 0xc8f   :  { %v1816_v39 = vpop.xlane.xlu0 %1815 }
 0xc90   :  { %5898 = vrcp.f32 %v1816_v39 }
 0xc91   :  { %v1831_v48 = vpop.xlane.xlu1 %1830 }
 0xc92   :  { %5900 = vrcp.f32 %v1831_v48 }
 0xc93   :  { %v1828_v34 = vpop.xlane.xlu0 %1827 }
 0xc94   :  { %5902 = vrcp.f32 %v1828_v34 }
 0xc95   :  { %v1825_v15 = vpop.xlane.xlu1 %1824 }
 0xc96   :  { %5904 = vrcp.f32 %v1825_v15  ;;  %v5895_v16 = vpop.eup %5894 }
 0xc97   :  { %v1849_v62 = vpop.permute.xlu0 %1848  ;;  %v5897_v7 = vpop.eup %5896  ;;  %v1840_v49 = vmul.f32 %v5895_v16, %v5885_v58 }
 0xc98   :  { %5406 = vmatprep.subr.bf16.mxu0 %v1849_v62  ;;  %v1839_v22 = vmul.f32 %v5897_v7, %v5883_v54 }
 0xc99   :  { %5407 = vmatpush3.bf16.msra.mxu0 %v1849_v62  ;;  %v1851_v21 = vpop.permute.xlu1 %1850  ;;  %v1845_v41 = vpack.c.bf16 %v1840_v49, %v1840_v49 }
 0xc9a   :  { %v5899_v46 = vpop.eup %5898  ;;  %5736 = vmatprep.subr.msk.bf16.mxu0 %vm474_vm4, %v1851_v21  ;;  %v1860_v23 = vsel %vm474_vm4, %v1851_v21, 0 }
 0xc9b   :  { %v1838_v20 = vmul.f32 %v5899_v46, %v5887_v51 }
 0xc9c   :  { %v5901_v25 = vpop.eup %5900 }
 0xc9d   :  { %5409 = vmatpush3.bf16.msra.mxu0 %v1860_v23  ;;  %v1911_v11 = vpop.permute.xlu1 %1910  ;;  %v1844_v37 = vpack.c.bf16 %v1839_v22, %v1838_v20  ;;  %v1843_v13 = vmul.f32 %v5901_v25, %v5891_v60 }
 0xc9e   :  { %v5903_v17 = vpop.eup %5902  ;;  %5414 = vmatprep.subr.bf16.mxu1 %v1911_v11  ;;  %5422 = vmatprep.subr.bf16.mxu0 %v6090_v1 }
 0xc9f   :  { %5410 = vmatprep.mubr.msk.bf16.mxu0 %vm583_vm6, %v1844_v37  ;;  %5415 = vmatpush3.bf16.msra.mxu1 %v1911_v11  ;;  %v1842_v31 = vmul.f32 %v5903_v17, %v6663_v45  ;;  %v1847_v30 = vpack.c.bf16 %v1843_v13, %v1843_v13 }
 0xca0   :  { %v5905_v42 = vpop.eup %5904  ;;  %5411 = vmatmul.mubr.msk.bf16.vlgmr.msra.gmra.mrb[52].mxu0 %vm583_vm6, %v1845_v41 }
 0xca1   :  { %v1913_v26 = vpop.permute.xlu1 %1912  ;;  %v1841_v47 = vmul.f32 %v5905_v42, %v5893_v56  ;;  %5424 = vmatprep.mubr.msk.bf16.mxu0 %vm6091_vm0, %v6090_v1  ;;  %5423 = vmatpush3.bf16.msra.mxu0 %v1985_v57 }
 0xca2   :  { %5737 = vmatprep.subr.msk.bf16.mxu1 %vm474_vm4, %v1913_v26  ;;  %v1922_v43 = vsel %vm474_vm4, %v1913_v26, 0  ;;  %5452 = vmatprep.subr.bf16.mxu0 %v6090_v1 }
 0xca3   :  { %5417 = vmatpush3.bf16.msra.mxu1 %v1922_v43  ;;  %v1846_v29 = vpack.c.bf16 %v1842_v31, %v1841_v47 }
 0xca4   :  { %5436 = vmatprep.subr.bf16.mxu1 %v6090_v1 }
 0xca5   :  { %5418 = vmatprep.mubr.msk.bf16.mxu1 %vm583_vm6, %v1846_v29 }
 0xca6   :  { %5419 = vmatmul.mubr.msk.bf16.vlgmr.msra.gmra.mrb[64].mxu1 %vm583_vm6, %v1847_v30 }
 0xca7   :  { %5440 = vmatprep.mubr.msk.bf16.mxu1 %vm6091_vm0, %v6090_v1 }
 0xd05   :  { %v1623_v55 = vpop.f32.mrb[52].mxu1 }
 0xd06   :  { %v1646_v38 = vadd.f32 %v1623_v55, %v6610_v44  ;;  %v5384_v32 = vpop.f32.mrb[53].mxu1 }
 0xd07   :  { %v1626_v53 = vpop.f32.mrb[54].mxu1 }
 0xd08   :  { %v1647_v36 = vadd.f32 %v1626_v53, %v6612_v18  ;;  %v5385_v54 = vpop.f32.mrb[55].mxu1 }
 0xd0d   :  { %v1631_v3 = vpop.f32.mrb[56].mxu1 }
 0xd0e   :  { %v1648_v58 = vadd.f32 %v1631_v3, %v6618_v61  ;;  %v5388_v59 = vpop.f32.mrb[57].mxu1 }
 0xd0f   :  { %v1634_v51 = vpop.f32.mrb[58].mxu1 }
 0xd10   :  { %v1649_v45 = vadd.f32 %v1634_v51, %v6620_v9  ;;  %v5389_v40 = vpop.f32.mrb[59].mxu1 }
 0xd15   :  { %v1639_v60 = vpop.f32.mrb[60].mxu1 }
 0xd16   :  { %v1650_v0 = vadd.f32 %v1639_v60, %v6626_v27  ;;  %v5392_v56 = vpop.f32.mrb[61].mxu1 }
 0xd17   :  { %v1642_v2 = vpop.f32.mrb[62].mxu1 }
 0xd18   :  { %v1651_v44 = vadd.f32 %v1642_v2, %v6628_v28  ;;  %v5393_v50 = vpop.f32.mrb[63].mxu1 }
 0xd73   :  { %v5412_v63 = vpop.f32.mrb[52].mxu0 }
 0xd74   :  { %v1896_v5 = vpop.f32.mrb[53].mxu0 }
 0xd75   :  { %v5413_v18 = vpop.f32.mrb[54].mxu0 }
 0xd76   :  { %v1899_v6 = vpop.f32.mrb[55].mxu0 }
 0xd77   :  { %v1972_v4 = vpack.c.bf16 %v1899_v6, %v1896_v5 }
 0xd79   :  { %v5420_v10 = vpop.f32.mrb[64].mxu1  ;;  %5425 = vmatmul.mubr.msk.bf16.vlgmr.msra.gmra.mrb[56].mxu0 %vm467_vm3, %v1972_v4 }
 0xd7a   :  { %v1958_v61 = vpop.f32.mrb[65].mxu1  ;;  %5428 = vmatprep.mubr.msk.bf16.mxu0 %vm6091_vm0, %v6090_v1 }
 0xd7b   :  { %v1973_v9 = vpack.c.bf16 %v1958_v61, %v5412_v63  ;;  %v5421_v12 = vpop.f32.mrb[66].mxu1 }
 0xd7c   :  { %v1961_v27 = vpop.f32.mrb[67].mxu1 }
 0xd7d   :  { %v1974_v8 = vpack.c.bf16 %v5420_v10, %v1961_v27 }
 0xd81   :  { %5429 = vmatmul.mubr.msk.bf16.gmra.mrb[60].mxu0 %vm467_vm3, %v1973_v9 }
 0xd82   :  { %5432 = vmatprep.mubr.msk.bf16.mxu0 %vm6091_vm0, %v6090_v1 }
 0xd89   :  { %5433 = vmatmul.mubr.msk.bf16.gmra.mrb[64].mxu0 %vm467_vm3, %v1974_v8 }
 0xd8a   :  { %5468 = vmatprep.mubr.msk.bf16.mxu0 %vm6091_vm0, %v6090_v1 }
 0xe4c   :  { %v2021_v28 = vpop.f32.mrb[56].mxu0 }
 0xe4d   :  { %v2044_v39 = vadd.f32 %v2021_v28, %v1646_v38  ;;  %v5426_v48 = vpop.f32.mrb[57].mxu0 }
 0xe4e   :  { %v2024_v34 = vpop.f32.mrb[58].mxu0  ;;  %v5775_v48 = vld [vmem:[%s7485_s8 + $0x8] sm:$0xff]  }
 0xe4f   :  { %v6727_v15 = vadd.f32 %v4918_v24, %v2044_v39  ;;  %v2045_v16 = vadd.f32 %v2024_v34, %v1647_v36  ;;  %v5427_v62 = vpop.f32.mrb[59].mxu0  ;;  %v5774_v39 = vld [vmem:[%s7485_s8] sm:$0xff]  }
 0xe50   :  { %5437 = vmatpush3.bf16.msra.mxu1 %v5774_v39 }
 0xe51   :  { %v6729_v7 = vadd.f32 %v4918_v24, %v2045_v16  ;;  %v2063_v21 = vsel %vm175_vm2, %v6727_v15, 0.0  ;;  %5438 = vmatprep.subr.bf16.mxu1 %v6090_v1 }
 0xe52   :  { %2064 = vadd.xlane.f32.xlu0 %v2063_v21 }
 0xe53   :  { %v2066_v46 = vsel %vm175_vm2, %v6729_v7, 0.0 }
 0xe54   :  { %2067 = vadd.xlane.f32.xlu1 %v2066_v46  ;;  %v2029_v49 = vpop.f32.mrb[60].mxu0  ;;  %5439 = vmatpush3.bf16.msra.mxu1 %v5775_v48  ;;  %v5778_v48 = vld [vmem:[%s7487_s10 + $0x10] sm:$0xff]  }
 0xe55   :  { %v2046_v20 = vadd.f32 %v2029_v49, %v1648_v58  ;;  %v5430_v22 = vpop.f32.mrb[61].mxu0  ;;  %5480 = vmatprep.subr.bf16.mxu1 %v6090_v1 }
 0xe56   :  { %v2032_v23 = vpop.f32.mrb[62].mxu0 }
 0xe57   :  { %v6735_v25 = vadd.f32 %v4918_v24, %v2046_v20  ;;  %v2047_v11 = vadd.f32 %v2032_v23, %v1649_v45  ;;  %v5431_v37 = vpop.f32.mrb[63].mxu0  ;;  %v2143_v23 = vsub.s32 2, %v6297_v14 }
 0xe59   :  { %v6737_v17 = vadd.f32 %v4918_v24, %v2047_v11  ;;  %v2069_v41 = vsel %vm175_vm2, %v6735_v25, 0.0 }
 0xe5a   :  { %2070 = vadd.xlane.f32.xlu0 %v2069_v41 }
 0xe5b   :  { %v2072_v47 = vsel %vm175_vm2, %v6737_v17, 0.0 }
 0xe5c   :  { %v2037_v42 = vpop.f32.mrb[64].mxu0 }
 0xe5d   :  { %v2048_v13 = vadd.f32 %v2037_v42, %v1650_v0  ;;  %v5434_v26 = vpop.f32.mrb[65].mxu0  ;;  %v6064_v42 = vld [vmem:[%s7480_s3] sm:$0xf] }
 0xe5e   :  { %2073 = vadd.xlane.f32.xlu0 %v2072_v47  ;;  %v2040_v31 = vpop.f32.mrb[66].mxu0  ;;  %v2153_v26 = vsub.s32 3, %v6297_v14 }
 0xe5f   :  { %v6743_v43 = vadd.f32 %v4918_v24, %v2048_v13  ;;  %v2049_v29 = vadd.f32 %v2040_v31, %v1651_v44  ;;  %v5435_v30 = vpop.f32.mrb[67].mxu0  ;;  %v2144_v13 = vrot.slane %v6064_v42, %v2143_v23 }
 0xe61   :  { %v6745_v33 = vadd.f32 %v4918_v24, %v2049_v29  ;;  %v2075_v57 = vsel %vm175_vm2, %v6743_v43, 0.0 }
 0xe62   :  { %2076 = vadd.xlane.f32.xlu0 %v2075_v57 }
 0xe63   :  { %v2078_v55 = vsel %vm175_vm2, %v6745_v33, 0.0 }
 0xe64   :  { %2079 = vadd.xlane.f32.xlu1 %v2078_v55 }
 0xedf   :  { %v2065_v38 = vpop.xlane.xlu0 %2064 }
 0xee0   :  { %v2081_v32 = vmul.f32 0.03125, %v2065_v38 }
 0xee1   :  { %v2068_v53 = vpop.xlane.xlu1 %2067 }
 0xee2   :  { %v2087_v36 = vsub.f32 %v6727_v15, %v2081_v32  ;;  %v2082_v54 = vmul.f32 0.03125, %v2068_v53 }
 0xee4   :  { %v6753_v3 = vsub.f32 %v6729_v7, %v2082_v54  ;;  %v2093_v58 = vmul.f32 %v2087_v36, %v2087_v36  ;;  %v2154_v54 = vrot.slane %v6064_v42, %v2153_v26 }
 0xee6   :  { %v2099_v59 = vsel %vm175_vm2, %v2093_v58, 0.0  ;;  %v2094_v51 = vmul.f32 %v6753_v3, %v6753_v3 }
 0xee7   :  { %v2071_v45 = vpop.xlane.xlu0 %2070  ;;  %2100 = vadd.xlane.f32.xlu0 %v2099_v59 }
 0xee8   :  { %v2083_v40 = vmul.f32 0.03125, %v2071_v45  ;;  %v2102_v60 = vsel %vm175_vm2, %v2094_v51, 0.0 }
 0xee9   :  { %2103 = vadd.xlane.f32.xlu1 %v2102_v60 }
 0xeea   :  { %v6760_v0 = vsub.f32 %v6735_v25, %v2083_v40 }
 0xeeb   :  { %v2074_v56 = vpop.xlane.xlu0 %2073 }
 0xeec   :  { %v2084_v2 = vmul.f32 0.03125, %v2074_v56  ;;  %v2095_v44 = vmul.f32 %v6760_v0, %v6760_v0 }
 0xeee   :  { %v6765_v50 = vsub.f32 %v6737_v17, %v2084_v2  ;;  %v2105_v63 = vsel %vm175_vm2, %v2095_v44, 0.0 }
 0xeef   :  { %2106 = vadd.xlane.f32.xlu0 %v2105_v63  ;;  %v2077_v5 = vpop.xlane.xlu0 %2076 }
 0xef0   :  { %v2085_v18 = vmul.f32 0.03125, %v2077_v5  ;;  %v2096_v6 = vmul.f32 %v6765_v50, %v6765_v50 }
 0xef1   :  { %v2080_v4 = vpop.xlane.xlu1 %2079 }
 0xef2   :  { %v6771_v10 = vsub.f32 %v6743_v43, %v2085_v18  ;;  %v2086_v61 = vmul.f32 0.03125, %v2080_v4  ;;  %v2108_v9 = vsel %vm175_vm2, %v2096_v6, 0.0 }
 0xef3   :  { %2109 = vadd.xlane.f32.xlu1 %v2108_v9 }
 0xef4   :  { %v6775_v12 = vsub.f32 %v6745_v33, %v2086_v61  ;;  %v2097_v27 = vmul.f32 %v6771_v10, %v6771_v10 }
 0xef6   :  { %v2111_v8 = vsel %vm175_vm2, %v2097_v27, 0.0  ;;  %v2098_v28 = vmul.f32 %v6775_v12, %v6775_v12 }
 0xef7   :  { %2112 = vadd.xlane.f32.xlu0 %v2111_v8 }
 0xef8   :  { %v2114_v24 = vsel %vm175_vm2, %v2098_v28, 0.0 }
 0xef9   :  { %2115 = vadd.xlane.f32.xlu1 %v2114_v24 }
 0xf74   :  { %v2101_v34 = vpop.xlane.xlu0 %2100 }
 0xf75   :  { %v2117_v16 = vmul.f32 0.03125, %v2101_v34  ;;  %v5779_v34 = vld [vmem:[%s7487_s10 + $0x18] sm:$0xff]  }
 0xf76   :  { %v2104_v62 = vpop.xlane.xlu1 %2103 }
 0xf77   :  { %v2123_v21 = vadd.f32 1e-06, %v2117_v16  ;;  %v2118_v46 = vmul.f32 0.03125, %v2104_v62  ;;  %v5780_v16 = vld [vmem:[%s7487_s10 + $0x20] sm:$0xff]   ;;  %v5781_v62 = vld [vmem:[%s7487_s10 + $0x28] sm:$0xff]  }
 0xf79   :  { %5906 = vrsqrt.f32 %v2123_v21  ;;  %v2124_v49 = vadd.f32 1e-06, %v2118_v46  ;;  %v5782_v21 = vld [vmem:[%s7487_s10 + $0x30] sm:$0xff]   ;;  %v5783_v46 = vld [vmem:[%s7487_s10 + $0x38] sm:$0xff]  }
 0xf7b   :  { %5908 = vrsqrt.f32 %v2124_v49  ;;  %v4919_v49 = vld [vmem:[%s7486_s9] ss:$0 sm:$0xff] }
 0xf7c   :  { %v2107_v20 = vpop.xlane.xlu0 %2106 }
 0xf7d   :  { %v2119_v22 = vmul.f32 0.03125, %v2107_v20 }
 0xf7f   :  { %v2125_v11 = vadd.f32 1e-06, %v2119_v22 }
 0xf80   :  { %v2110_v37 = vpop.xlane.xlu1 %2109 }
 0xf81   :  { %5910 = vrsqrt.f32 %v2125_v11  ;;  %v2120_v41 = vmul.f32 0.03125, %v2110_v37 }
 0xf83   :  { %v5907_v47 = vpop.eup %5906  ;;  %v2126_v31 = vadd.f32 1e-06, %v2120_v41 }
 0xf84   :  { %v2135_v29 = vmul.f32 %v5907_v47, %v2087_v36  ;;  %v2113_v30 = vpop.xlane.xlu0 %2112 }
 0xf85   :  { %v5909_v57 = vpop.eup %5908  ;;  %5912 = vrsqrt.f32 %v2126_v31  ;;  %v2121_v55 = vmul.f32 0.03125, %v2113_v30 }
 0xf86   :  { %v2145_v38 = vmul.f32 %v2144_v13, %v2135_v29  ;;  %v2136_v32 = vmul.f32 %v5909_v57, %v6753_v3  ;;  %v2116_v53 = vpop.xlane.xlu1 %2115 }
 0xf87   :  { %v2127_v58 = vadd.f32 1e-06, %v2121_v55  ;;  %v2122_v59 = vmul.f32 0.03125, %v2116_v53 }
 0xf88   :  { %v2146_v51 = vmul.f32 %v2144_v13, %v2136_v32  ;;  %v2155_v40 = vadd.f32 %v2154_v54, %v2145_v38 }
 0xf89   :  { %5914 = vrsqrt.f32 %v2127_v58  ;;  %v2128_v45 = vadd.f32 1e-06, %v2122_v59 }
 0xf8a   :  { %v2156_v60 = vadd.f32 %v2154_v54, %v2146_v51 }
 0xf8b   :  { %v5911_v56 = vpop.eup %5910  ;;  %5916 = vrsqrt.f32 %v2128_v45 }
 0xf8c   :  { %v2161_v36 = vpack.c.bf16 %v2156_v60, %v2155_v40  ;;  %v2137_v2 = vmul.f32 %v5911_v56, %v6760_v0 }
 0xf8e   :  { %5441 = vmatmul.mubr.msk.bf16.vlgmr.msra.gmra.mrb[68].mxu1 %vm175_vm2, %v2161_v36  ;;  %v2147_v63 = vmul.f32 %v2144_v13, %v2137_v2 }
 0xf8f   :  { %v5913_v44 = vpop.eup %5912  ;;  %5444 = vmatprep.mubr.msk.bf16.mxu1 %vm6091_vm0, %v6090_v1 }
 0xf90   :  { %v2138_v3 = vmul.f32 %v5913_v44, %v6765_v50  ;;  %v2157_v6 = vadd.f32 %v2154_v54, %v2147_v63 }
 0xf92   :  { %v2148_v5 = vmul.f32 %v2144_v13, %v2138_v3 }
 0xf93   :  { %v5915_v18 = vpop.eup %5914 }
 0xf94   :  { %v2158_v4 = vadd.f32 %v2154_v54, %v2148_v5  ;;  %v2139_v61 = vmul.f32 %v5915_v18, %v6771_v10  ;;  %v5776_v10 = vld [vmem:[%s7487_s10] sm:$0xff]  }
 0xf95   :  { %v5917_v9 = vpop.eup %5916  ;;  %5453 = vmatpush3.bf16.msra.mxu0 %v5776_v10 }
 0xf96   :  { %v2162_v27 = vpack.c.bf16 %v2158_v4, %v2157_v6  ;;  %v2140_v8 = vmul.f32 %v5917_v9, %v6775_v12  ;;  %v2149_v0 = vmul.f32 %v2144_v13, %v2139_v61  ;;  %5454 = vmatprep.subr.bf16.mxu0 %v6090_v1  ;;  %v5777_v12 = vld [vmem:[%s7487_s10 + $0x8] sm:$0xff]  }
 0xf98   :  { %5445 = vmatmul.mubr.msk.bf16.gmra.mrb[72].mxu1 %vm175_vm2, %v2162_v27  ;;  %v2150_v28 = vmul.f32 %v2144_v13, %v2140_v8  ;;  %v2159_v50 = vadd.f32 %v2154_v54, %v2149_v0 }
 0xf99   :  { %5448 = vmatprep.mubr.msk.bf16.mxu1 %vm6091_vm0, %v6090_v1  ;;  %5455 = vmatpush3.bf16.msra.mxu0 %v5777_v12 }
 0xf9a   :  { %v2160_v24 = vadd.f32 %v2154_v54, %v2150_v28  ;;  %5456 = vmatprep.subr.bf16.mxu0 %v6090_v1 }
 0xf9c   :  { %v2163_v39 = vpack.c.bf16 %v2160_v24, %v2159_v50 }
 0xf9d   :  { %5457 = vmatpush3.bf16.msra.mxu0 %v5778_v48 }
 0xf9e   :  { %5458 = vmatprep.subr.bf16.mxu0 %v6090_v1 }
 0xfa0   :  { %5449 = vmatmul.mubr.msk.bf16.gmra.mrb[76].mxu1 %vm175_vm2, %v2163_v39 }
 0xfa1   :  { %5484 = vmatprep.mubr.msk.bf16.mxu1 %vm6091_vm0, %v6090_v1  ;;  %5459 = vmatpush3.bf16.msra.mxu0 %v5779_v34 }
 0xfa2   :  { %5460 = vmatprep.subr.bf16.mxu0 %v6090_v1 }
 0xfa5   :  { %5461 = vmatpush3.bf16.msra.mxu0 %v5780_v16 }
 0xfa6   :  { %5462 = vmatprep.subr.bf16.mxu0 %v6090_v1 }
 0xfa9   :  { %5463 = vmatpush3.bf16.msra.mxu0 %v5781_v62 }
 0xfaa   :  { %5464 = vmatprep.subr.bf16.mxu0 %v6090_v1 }
 0xfad   :  { %5465 = vmatpush3.bf16.msra.mxu0 %v5782_v21 }
 0xfae   :  { %5466 = vmatprep.subr.bf16.mxu0 %v6090_v1 }
 0xfb1   :  { %5467 = vmatpush3.bf16.msra.mxu0 %v5783_v46 }
0x1061   :  { %v2230_v20 = vpop.f32.mrb[68].mxu1 }
0x1062   :  { %v2231_v22 = vadd.f32 %v4919_v49, %v2230_v20  ;;  %v5442_v11 = vpop.f32.mrb[69].mxu1 }
0x1063   :  { %v2233_v37 = vpop.f32.mrb[70].mxu1 }
0x1064   :  { %v2259_v41 = vmul.f32 0.044715, %v2231_v22  ;;  %v2234_v42 = vadd.f32 %v4919_v49, %v2233_v37  ;;  %v5443_v13 = vpop.f32.mrb[71].mxu1  ;;  %v2253_v16 = vmul.f32 0.5, %v2231_v22 }
0x1066   :  { %v2265_v47 = vmul.f32 %v2259_v41, %v2231_v22  ;;  %v2260_v31 = vmul.f32 0.044715, %v2234_v42  ;;  %v2254_v62 = vmul.f32 0.5, %v2234_v42 }
0x1068   :  { %v2271_v29 = vmul.f32 %v2265_v47, %v2231_v22  ;;  %v2266_v30 = vmul.f32 %v2260_v31, %v2234_v42 }
0x106a   :  { %v2277_v57 = vadd.f32 %v2271_v29, %v2231_v22  ;;  %v2272_v55 = vmul.f32 %v2266_v30, %v2234_v42 }
0x106b   :  { %v2238_v38 = vpop.f32.mrb[72].mxu1 }
0x106c   :  { %v2283_v32 = vmul.f32 0.7978846, %v2277_v57  ;;  %v2278_v53 = vadd.f32 %v2272_v55, %v2234_v42  ;;  %v2239_v54 = vadd.f32 %v4919_v49, %v2238_v38  ;;  %v5446_v58 = vpop.f32.mrb[73].mxu1 }
0x106d   :  { %v2241_v59 = vpop.f32.mrb[74].mxu1 }
0x106e   :  { %5918 = vtanh.f32 %v2283_v32  ;;  %v2284_v51 = vmul.f32 0.7978846, %v2278_v53  ;;  %v2261_v45 = vmul.f32 0.044715, %v2239_v54  ;;  %v2242_v40 = vadd.f32 %v4919_v49, %v2241_v59  ;;  %v5447_v60 = vpop.f32.mrb[75].mxu1 }
0x106f   :  { %v2255_v22 = vmul.f32 0.5, %v2239_v54 }
0x1070   :  { %5920 = vtanh.f32 %v2284_v51  ;;  %v2267_v56 = vmul.f32 %v2261_v45, %v2239_v54  ;;  %v2262_v36 = vmul.f32 0.044715, %v2242_v40  ;;  %v2256_v42 = vmul.f32 0.5, %v2242_v40 }
0x1072   :  { %v2273_v2 = vmul.f32 %v2267_v56, %v2239_v54  ;;  %v2268_v44 = vmul.f32 %v2262_v36, %v2242_v40 }
0x1073   :  { %v2246_v3 = vpop.f32.mrb[76].mxu1 }
0x1074   :  { %v2274_v63 = vmul.f32 %v2268_v44, %v2242_v40  ;;  %v2247_v5 = vadd.f32 %v4919_v49, %v2246_v3  ;;  %v5450_v18 = vpop.f32.mrb[77].mxu1  ;;  %v2279_v6 = vadd.f32 %v2273_v2, %v2239_v54 }
0x1075   :  { %v2249_v4 = vpop.f32.mrb[78].mxu1 }
0x1076   :  { %v2263_v61 = vmul.f32 0.044715, %v2247_v5  ;;  %v2250_v9 = vadd.f32 %v4919_v49, %v2249_v4  ;;  %v5451_v27 = vpop.f32.mrb[79].mxu1  ;;  %v2280_v8 = vadd.f32 %v2274_v63, %v2242_v40  ;;  %v2285_v0 = vmul.f32 0.7978846, %v2279_v6 }
0x1077   :  { %v2257_v51 = vmul.f32 0.5, %v2247_v5  ;;  %v4933_v40 = vld [vmem:[%s7488_s11] ss:$0 sm:$0xff] }
0x1078   :  { %v5919_v28 = vpop.eup %5918  ;;  %v2269_v24 = vmul.f32 %v2263_v61, %v2247_v5  ;;  %v2264_v50 = vmul.f32 0.044715, %v2250_v9  ;;  %v2286_v39 = vmul.f32 0.7978846, %v2280_v8  ;;  %5922 = vtanh.f32 %v2285_v0 }
0x1079   :  { %v2295_v10 = vadd.f32 1.0, %v5919_v28  ;;  %v2258_v45 = vmul.f32 0.5, %v2250_v9 }
0x107a   :  { %v5921_v12 = vpop.eup %5920  ;;  %v2275_v48 = vmul.f32 %v2269_v24, %v2247_v5  ;;  %v2270_v34 = vmul.f32 %v2264_v50, %v2250_v9  ;;  %5924 = vtanh.f32 %v2286_v39 }
0x107b   :  { %v2296_v21 = vadd.f32 1.0, %v5921_v12  ;;  %v2301_v11 = vmul.f32 %v2295_v10, %v2253_v16 }
0x107c   :  { %v2276_v46 = vmul.f32 %v2270_v34, %v2250_v9  ;;  %v2281_v20 = vadd.f32 %v2275_v48, %v2247_v5 }
0x107d   :  { %v2302_v49 = vmul.f32 %v2296_v21, %v2254_v62 }
0x107e   :  { %v2282_v37 = vadd.f32 %v2276_v46, %v2250_v9  ;;  %v2287_v41 = vmul.f32 0.7978846, %v2281_v20 }
0x107f   :  { %v2307_v13 = vpack.c.bf16 %v2302_v49, %v2301_v11 }
0x1080   :  { %v2288_v47 = vmul.f32 0.7978846, %v2282_v37  ;;  %5926 = vtanh.f32 %v2287_v41 }
0x1081   :  { %5469 = vmatmul.mubr.bf16.vlgmr.msra.gmra.mrb[68].mxu0 %v2307_v13 }
0x1082   :  { %v5923_v31 = vpop.eup %5922  ;;  %5472 = vmatprep.mubr.msk.bf16.mxu0 %vm6091_vm0, %v6090_v1  ;;  %5928 = vtanh.f32 %v2288_v47 }
0x1083   :  { %v2297_v29 = vadd.f32 1.0, %v5923_v31 }
0x1084   :  { %v5925_v30 = vpop.eup %5924 }
0x1085   :  { %v2298_v57 = vadd.f32 1.0, %v5925_v30  ;;  %v2303_v55 = vmul.f32 %v2297_v29, %v2255_v22 }
0x1087   :  { %v2304_v38 = vmul.f32 %v2298_v57, %v2256_v42 }
0x1089   :  { %v2308_v32 = vpack.c.bf16 %v2304_v38, %v2303_v55 }
0x108a   :  { %v5927_v53 = vpop.eup %5926 }
0x108b   :  { %5473 = vmatmul.mubr.bf16.gmra.mrb[72].mxu0 %v2308_v32  ;;  %v2299_v58 = vadd.f32 1.0, %v5927_v53 }
0x108c   :  { %v5929_v59 = vpop.eup %5928  ;;  %5476 = vmatprep.mubr.msk.bf16.mxu0 %vm6091_vm0, %v6090_v1 }
0x108d   :  { %v2300_v60 = vadd.f32 1.0, %v5929_v59  ;;  %v2305_v56 = vmul.f32 %v2299_v58, %v2257_v51 }
0x108f   :  { %v2306_v36 = vmul.f32 %v2300_v60, %v2258_v45 }
0x1091   :  { %v2309_v2 = vpack.c.bf16 %v2306_v36, %v2305_v56 }
0x1093   :  { %5477 = vmatmul.mubr.bf16.gmra.mrb[76].mxu0 %v2309_v2 }
0x1154   :  { %v2408_v54 = vpop.f32.mrb[68].mxu0 }
0x1155   :  { %v2431_v44 = vadd.f32 %v2408_v54, %v6727_v15  ;;  %v5470_v3 = vpop.f32.mrb[69].mxu0 }
0x1156   :  { %v2411_v63 = vpop.f32.mrb[70].mxu0 }
0x1157   :  { %v6856_v18 = vadd.f32 %v4933_v40, %v2431_v44  ;;  %v2432_v6 = vadd.f32 %v2411_v63, %v6729_v7  ;;  %v5471_v5 = vpop.f32.mrb[71].mxu0  ;;  %v5784_v63 = vld [vmem:[%s7481_s4 + $0x10] sm:$0xff]  }
0x1158   :  { %5481 = vmatpush3.bf16.msra.mxu1 %v5784_v63 }
0x1159   :  { %v6859_v4 = vadd.f32 %v4933_v40, %v2432_v6  ;;  %v2452_v61 = vsel %vm175_vm2, %v6856_v18, 0.0  ;;  %5482 = vmatprep.subr.bf16.mxu1 %v6090_v1  ;;  %v5785_v6 = vld [vmem:[%s7481_s4 + $0x18] sm:$0xff]  }
0x115a   :  { %2453 = vadd.xlane.f32.xlu0 %v2452_v61 }
0x115b   :  { %v2455_v9 = vsel %vm175_vm2, %v6859_v4, 0.0 }
0x115c   :  { %2456 = vadd.xlane.f32.xlu1 %v2455_v9  ;;  %5483 = vmatpush3.bf16.msra.mxu1 %v5785_v6 }
0x115e   :  { %v2416_v27 = vpop.f32.mrb[72].mxu0 }
0x115f   :  { %v2433_v15 = vadd.f32 %v2416_v27, %v6735_v25  ;;  %v5474_v8 = vpop.f32.mrb[73].mxu0 }
0x1160   :  { %v2419_v0 = vpop.f32.mrb[74].mxu0 }
0x1161   :  { %v6866_v28 = vadd.f32 %v4933_v40, %v2433_v15  ;;  %v2434_v7 = vadd.f32 %v2419_v0, %v6737_v17  ;;  %v5475_v24 = vpop.f32.mrb[75].mxu0 }
0x1163   :  { %v6869_v50 = vadd.f32 %v4933_v40, %v2434_v7  ;;  %v2458_v39 = vsel %vm175_vm2, %v6866_v28, 0.0  ;;  %v4934_v7 = vld [vmem:[%s7480_s3 + $0x4] sm:$0xf] }
0x1164   :  { %2459 = vadd.xlane.f32.xlu0 %v2458_v39 }
0x1165   :  { %v2461_v10 = vsel %vm175_vm2, %v6869_v50, 0.0 }
0x1166   :  { %2462 = vadd.xlane.f32.xlu1 %v2461_v10  ;;  %v2424_v12 = vpop.f32.mrb[76].mxu0 }
0x1167   :  { %v2435_v25 = vadd.f32 %v2424_v12, %v6743_v43  ;;  %v5478_v48 = vpop.f32.mrb[77].mxu0 }
0x1168   :  { %v2427_v34 = vpop.f32.mrb[78].mxu0 }
0x1169   :  { %v6876_v16 = vadd.f32 %v4933_v40, %v2435_v25  ;;  %v2436_v17 = vadd.f32 %v2427_v34, %v6745_v33  ;;  %v5479_v62 = vpop.f32.mrb[79].mxu0  ;;  %v2533_v25 = vrot.slane %v4934_v7, %v257_v19 }
0x116b   :  { %v6879_v21 = vadd.f32 %v4933_v40, %v2436_v17  ;;  %v2464_v46 = vsel %vm175_vm2, %v6876_v16, 0.0 }
0x116c   :  { %2465 = vadd.xlane.f32.xlu0 %v2464_v46  ;;  %v2543_v46 = vrot.slane %v4934_v7, %v267_v35 }
0x116d   :  { %v2467_v20 = vsel %vm175_vm2, %v6879_v21, 0.0 }
0x116e   :  { %2468 = vadd.xlane.f32.xlu1 %v2467_v20 }
0x11e7   :  { %v2454_v11 = vpop.xlane.xlu0 %2453 }
0x11e8   :  { %v2470_v49 = vmul.f32 0.03125, %v2454_v11 }
0x11e9   :  { %v2457_v43 = vpop.xlane.xlu1 %2456 }
0x11ea   :  { %v2476_v37 = vsub.f32 %v6856_v18, %v2470_v49  ;;  %v2471_v41 = vmul.f32 0.03125, %v2457_v43 }
0x11ec   :  { %v2477_v13 = vsub.f32 %v6859_v4, %v2471_v41  ;;  %v2482_v33 = vmul.f32 %v2476_v37, %v2476_v37 }
0x11ee   :  { %v2488_v47 = vsel %vm175_vm2, %v2482_v33, 0.0  ;;  %v2483_v31 = vmul.f32 %v2477_v13, %v2477_v13 }
0x11ef   :  { %2489 = vadd.xlane.f32.xlu0 %v2488_v47 }
0x11f0   :  { %v2491_v29 = vsel %vm175_vm2, %v2483_v31, 0.0 }
0x11f1   :  { %v2460_v30 = vpop.xlane.xlu0 %2459  ;;  %2492 = vadd.xlane.f32.xlu1 %v2491_v29 }
0x11f2   :  { %v2472_v22 = vmul.f32 0.03125, %v2460_v30 }
0x11f3   :  { %v2463_v42 = vpop.xlane.xlu1 %2462 }
0x11f4   :  { %v6890_v57 = vsub.f32 %v6866_v28, %v2472_v22  ;;  %v2473_v55 = vmul.f32 0.03125, %v2463_v42 }
0x11f6   :  { %v6893_v38 = vsub.f32 %v6869_v50, %v2473_v55  ;;  %v2484_v32 = vmul.f32 %v6890_v57, %v6890_v57 }
0x11f8   :  { %v2494_v53 = vsel %vm175_vm2, %v2484_v32, 0.0  ;;  %v2485_v58 = vmul.f32 %v6893_v38, %v6893_v38 }
0x11f9   :  { %2495 = vadd.xlane.f32.xlu0 %v2494_v53  ;;  %v2466_v59 = vpop.xlane.xlu0 %2465 }
0x11fa   :  { %v2474_v51 = vmul.f32 0.03125, %v2466_v59  ;;  %v2497_v45 = vsel %vm175_vm2, %v2485_v58, 0.0 }
0x11fb   :  { %2498 = vadd.xlane.f32.xlu1 %v2497_v45  ;;  %v2469_v60 = vpop.xlane.xlu1 %2468 }
0x11fc   :  { %v2480_v56 = vsub.f32 %v6876_v16, %v2474_v51  ;;  %v2475_v36 = vmul.f32 0.03125, %v2469_v60 }
0x11fe   :  { %v6903_v2 = vsub.f32 %v6879_v21, %v2475_v36  ;;  %v2486_v54 = vmul.f32 %v2480_v56, %v2480_v56 }
0x1200   :  { %v2500_v40 = vsel %vm175_vm2, %v2486_v54, 0.0  ;;  %v2487_v44 = vmul.f32 %v6903_v2, %v6903_v2 }
0x1201   :  { %2501 = vadd.xlane.f32.xlu0 %v2500_v40 }
0x1202   :  { %v2503_v3 = vsel %vm175_vm2, %v2487_v44, 0.0 }
0x1203   :  { %2504 = vadd.xlane.f32.xlu1 %v2503_v3  ;;  %v4940_v3 = vld [vmem:[%s7482_s5 + $0x1] ss:$0 sm:$0xff] }
0x127c   :  { %v2490_v5 = vpop.xlane.xlu0 %2489 }
0x127d   :  { %v2506_v61 = vmul.f32 0.03125, %v2490_v5 }
0x127e   :  { %v2493_v9 = vpop.xlane.xlu1 %2492 }
0x127f   :  { %v2512_v27 = vadd.f32 1e-06, %v2506_v61  ;;  %v2507_v15 = vmul.f32 0.03125, %v2493_v9 }
0x1281   :  { %5930 = vrsqrt.f32 %v2512_v27  ;;  %v2513_v8 = vadd.f32 1e-06, %v2507_v15 }
0x1283   :  { %5932 = vrsqrt.f32 %v2513_v8 }
0x1286   :  { %v2496_v0 = vpop.xlane.xlu0 %2495 }
0x1287   :  { %v2508_v24 = vmul.f32 0.03125, %v2496_v0 }
0x1288   :  { %v2499_v39 = vpop.xlane.xlu1 %2498 }
0x1289   :  { %v2514_v10 = vadd.f32 1e-06, %v2508_v24  ;;  %v2509_v12 = vmul.f32 0.03125, %v2499_v39 }
0x128b   :  { %v5931_v48 = vpop.eup %5930  ;;  %5934 = vrsqrt.f32 %v2514_v10  ;;  %v2515_v34 = vadd.f32 1e-06, %v2509_v12 }
0x128c   :  { %v2524_v17 = vmul.f32 %v5931_v48, %v2476_v37 }
0x128d   :  { %v5933_v62 = vpop.eup %5932  ;;  %5936 = vrsqrt.f32 %v2515_v34 }
0x128e   :  { %v2534_v20 = vmul.f32 %v2533_v25, %v2524_v17  ;;  %v2525_v11 = vmul.f32 %v5933_v62, %v2477_v13  ;;  %v2502_v49 = vpop.xlane.xlu0 %2501 }
0x128f   :  { %v2510_v43 = vmul.f32 0.03125, %v2502_v49 }
0x1290   :  { %v2535_v41 = vmul.f32 %v2533_v25, %v2525_v11  ;;  %v2505_v33 = vpop.xlane.xlu1 %2504  ;;  %v2544_v29 = vadd.f32 %v2543_v46, %v2534_v20 }
0x1291   :  { %v2516_v47 = vadd.f32 1e-06, %v2510_v43  ;;  %v2511_v31 = vmul.f32 0.03125, %v2505_v33 }
0x1292   :  { %v2545_v30 = vadd.f32 %v2543_v46, %v2535_v41 }
0x1293   :  { %5938 = vrsqrt.f32 %v2516_v47  ;;  %v2517_v19 = vadd.f32 1e-06, %v2511_v31 }
0x1294   :  { %v2550_v22 = vpack.c.bf16 %v2545_v30, %v2544_v29 }
0x1295   :  { %v5935_v42 = vpop.eup %5934  ;;  %5940 = vrsqrt.f32 %v2517_v19 }
0x1296   :  { %5485 = vmatmul.mubr.msk.bf16.vlgmr.msra.gmra.mrb[80].mxu1 %vm175_vm2, %v2550_v22  ;;  %v2526_v37 = vmul.f32 %v5935_v42, %v6890_v57 }
0x1297   :  { %v5937_v35 = vpop.eup %5936  ;;  %5488 = vmatprep.mubr.msk.bf16.mxu1 %vm6091_vm0, %v6090_v1 }
0x1298   :  { %v2527_v13 = vmul.f32 %v5937_v35, %v6893_v38  ;;  %v2536_v55 = vmul.f32 %v2533_v25, %v2526_v37 }
0x129a   :  { %v2537_v32 = vmul.f32 %v2533_v25, %v2527_v13  ;;  %v2546_v53 = vadd.f32 %v2543_v46, %v2536_v55 }
0x129c   :  { %v2547_v58 = vadd.f32 %v2543_v46, %v2537_v32 }
0x129d   :  { %v5939_v59 = vpop.eup %5938 }
0x129e   :  { %v2551_v51 = vpack.c.bf16 %v2547_v58, %v2546_v53  ;;  %v2528_v45 = vmul.f32 %v5939_v59, %v2480_v56 }
0x129f   :  { %v5941_v60 = vpop.eup %5940 }
0x12a0   :  { %5489 = vmatmul.mubr.msk.bf16.gmra.mrb[84].mxu1 %vm175_vm2, %v2551_v51  ;;  %v2529_v36 = vmul.f32 %v5941_v60, %v6903_v2  ;;  %v2538_v54 = vmul.f32 %v2533_v25, %v2528_v45 }
0x12a1   :  { %5492 = vmatprep.mubr.msk.bf16.mxu1 %vm6091_vm0, %v6090_v1 }
0x12a2   :  { %v2539_v57 = vmul.f32 %v2533_v25, %v2529_v36  ;;  %v2548_v40 = vadd.f32 %v2543_v46, %v2538_v54 }
0x12a4   :  { %v2549_v44 = vadd.f32 %v2543_v46, %v2539_v57 }
0x12a6   :  { %v2552_v38 = vpack.c.bf16 %v2549_v44, %v2548_v40 }
0x12a8   :  { %5493 = vmatmul.mubr.msk.bf16.gmra.mrb[88].mxu1 %vm175_vm2, %v2552_v38 }
0x1369   :  { %v2621_v56 = vpop.f32.mrb[80].mxu1 }
0x136a   :  { %v5486_v63 = vpop.f32.mrb[81].mxu1  ;;  %v2622_v5 = vadd.f32 %v4940_v3, %v2621_v56 }
0x136b   :  { %v2624_v6 = vpop.f32.mrb[82].mxu1 }
0x136c   :  { %v2625_v61 = vadd.f32 %v4940_v3, %v2624_v6  ;;  %v5487_v2 = vpop.f32.mrb[83].mxu1 }
0x136e   :  { %v6936_v9 = vpack.c.bf16 %v2625_v61, %v2622_v5 }
0x1370   :  { %5498 = vmatprep.mubr.msk.bf16.mxu1 %vm467_vm3, %v6936_v9 }
0x1373   :  { %v2629_v27 = vpop.f32.mrb[84].mxu1 }
0x1374   :  { %v5490_v15 = vpop.f32.mrb[85].mxu1  ;;  %v2630_v17 = vadd.f32 %v4940_v3, %v2629_v27 }
0x1375   :  { %v2632_v8 = vpop.f32.mrb[86].mxu1 }
0x1376   :  { %v2633_v0 = vadd.f32 %v4940_v3, %v2632_v8  ;;  %v5491_v7 = vpop.f32.mrb[87].mxu1  ;;  %v6964_v37 = vpack.c.bf16 %v2630_v17, %v2630_v17 }
0x1378   :  { %2656 = vrot.lane.b32.xlu0 %v2633_v0, %s6092_s16 }
0x137b   :  { %v2637_v24 = vpop.f32.mrb[88].mxu1 }
0x137c   :  { %v2638_v39 = vadd.f32 %v4940_v3, %v2637_v24  ;;  %2650 = vrot.lane.b32.xlu0 %v2622_v5, %s6092_s16  ;;  %v5494_v10 = vpop.f32.mrb[89].mxu1 }
0x137d   :  { %v2640_v12 = vpop.f32.mrb[90].mxu1 }
0x137e   :  { %v6942_v25 = vpack.c.bf16 %v2638_v39, %v2633_v0  ;;  %2658 = vrot.lane.b32.xlu1 %v2638_v39, %s6092_s16  ;;  %v5495_v48 = vpop.f32.mrb[91].mxu1  ;;  %v2641_v34 = vadd.f32 %v4940_v3, %v2640_v12 }
0x1380   :  { %2652 = vrot.lane.b32.xlu0 %v2625_v61, %s6092_s16  ;;  %5504 = vmatprep.mubr.msk.bf16.mxu0 %vm467_vm3, %v6942_v25  ;;  %v6958_v22 = vpack.c.bf16 %v2641_v34, %v2641_v34 }
0x1382   :  { %2660 = vrot.lane.b32.xlu1 %v2641_v34, %s6092_s16 }
0x1384   :  { %2654 = vrot.lane.b32.xlu0 %v2630_v17, %s6092_s16 }
0x13ea   :  { %v2657_v62 = vpop.permute.xlu0 %2656 }
0x13eb   :  { %2700 = vxpose.xlu1.b32.start [1/3] (short) (narrow) %v2657_v62, 32 }
0x13ee   :  { %v2651_v46 = vpop.permute.xlu0 %2650 }
0x13ef   :  { %2668 = vxpose.xlu0.b32.start [1/3] (short) (narrow) %v2651_v46, 32 }
0x13f0   :  { %v2659_v20 = vpop.permute.xlu1 %2658 }
0x13f1   :  { %2701 = vxpose.xlu1.b32.cont [2/3] (short) (narrow) %v2659_v20, 32 }
0x13f2   :  { %v2653_v11 = vpop.permute.xlu0 %2652 }
0x13f3   :  { %2669 = vxpose.xlu0.b32.cont [2/3] (short) (narrow) %v2653_v11, 32 }
0x13f4   :  { %v2661_v49 = vpop.permute.xlu1 %2660 }
0x13f5   :  { %2702 = vxpose.xlu1.b32.end [3/3] (short) (narrow) %v2661_v49, 32 }
0x13f6   :  { %v2655_v43 = vpop.permute.xlu0 %2654 }
0x13f7   :  { %2670 = vxpose.xlu0.b32.end [3/3] (short) (narrow) %v2655_v43, 32 }
0x146d   :  { %v2716_v41 = vpop.trf.xlu1 }
0x146f   :  { %v2684_v33 = vpop.trf.xlu0 }
0x1471   :  { %v2717_v47 = vpop.trf.xlu1 }
0x1472   :  { %v6950_v31 = vpack.c.bf16 %v2717_v47, %v2716_v41 }
0x1473   :  { %v2685_v29 = vpop.trf.xlu0 }
0x1474   :  { %v6952_v30 = vpack.c.bf16 %v2685_v29, %v2684_v33  ;;  %5739 = vmatprep.subr.msk.bf16.mxu0 %vm474_vm4, %v6950_v31  ;;  %v2809_v19 = vsel %vm474_vm4, %v6950_v31, 0 }
0x1475   :  { %5503 = vmatpush3.bf16.msra.mxu0 %v2809_v19  ;;  %v6976_v44 = vpop.trf.xlu1 }
0x1476   :  { %5738 = vmatprep.subr.msk.bf16.mxu1 %vm474_vm4, %v6952_v30  ;;  %v2752_v42 = vsel %vm474_vm4, %v6952_v30, 0  ;;  %v3140_v29 = vrot.slane %v6952_v30, 4 }
0x1477   :  { %5497 = vmatpush3.bf16.msra.mxu1 %v2752_v42  ;;  %v6978_v38 = vpop.trf.xlu0 }
0x1478   :  { %5505 = vmatmul.mubr.msk.bf16.vlgmr.msra.gmra.mrb[80].mxu0 %vm467_vm3, %v6958_v22 }
0x1479   :  { %v6980_v3 = vpop.trf.xlu1 }
0x147a   :  { %5499 = vmatmul.mubr.msk.bf16.vlgmr.msra.gmra.mrb[92].mxu1 %vm467_vm3, %v6964_v37 }
0x147b   :  { %v6982_v56 = vpop.trf.xlu0 }
0x154b   :  { %v5506_v35 = vpop.f32.mrb[80].mxu0 }
0x154c   :  { %v2845_v13 = vpop.f32.mrb[81].mxu0  ;;  %v2854_v51 = vadd.f32 %v5506_v35, %v6358_v52 }
0x154d   :  { %v2846_v55 = vadd.f32 %v2845_v13, %v6358_v52  ;;  %v5500_v32 = vpop.f32.mrb[92].mxu1  ;;  %v5507_v53 = vpop.f32.mrb[82].mxu0 }
0x154e   :  { %v2788_v58 = vpop.f32.mrb[93].mxu1  ;;  %v2848_v59 = vpop.f32.mrb[83].mxu0  ;;  %v2874_v40 = vsel %vm583_vm6, %v2854_v51, -inf  ;;  %v2797_v17 = vadd.f32 %v5500_v32, %v6358_v52 }
0x154f   :  { %v2849_v45 = vadd.f32 %v2848_v59, %v6358_v52  ;;  %v5501_v60 = vpop.f32.mrb[94].mxu1  ;;  %v2868_v36 = vsel %vm583_vm6, %v2846_v55, -inf  ;;  %v2789_v34 = vadd.f32 %v2788_v58, %v6358_v52 }
0x1550   :  { %2869 = vmax.xlane.f32.xlu1 %v2868_v36  ;;  %v2791_v54 = vpop.f32.mrb[95].mxu1  ;;  %v2865_v46 = vsel %vm583_vm6, %v2797_v17, -inf }
0x1551   :  { %v2871_v57 = vsel %vm583_vm6, %v2849_v45, -inf  ;;  %v2859_v62 = vsel %vm583_vm6, %v2789_v34, -inf  ;;  %v2792_v20 = vadd.f32 %v2791_v54, %v6358_v52 }
0x1552   :  { %2872 = vmax.xlane.f32.xlu0 %v2871_v57 }
0x1553   :  { %v2862_v11 = vsel %vm583_vm6, %v2792_v20, -inf }
0x1554   :  { %2875 = vmax.xlane.f32.xlu1 %v2874_v40 }
0x15dd   :  { %v2870_v63 = vpop.xlane.xlu1 %2869 }
0x15de   :  { %v2880_v5 = vsub.f32 %v2846_v55, %v2870_v63 }
0x15df   :  { %v2873_v6 = vpop.xlane.xlu0 %2872 }
0x15e0   :  { %v2881_v61 = vsub.f32 %v2849_v45, %v2873_v6  ;;  %v2889_v8 = vmul.f32 1.442695, %v2880_v5  ;;  %v3148_v45 = vsel %vm474_vm4, %v3140_v29, 0 }
0x15e1   :  { %v2876_v2 = vpop.xlane.xlu1 %2875 }
0x15e2   :  { %v2891_v27 = vmul.f32 1.442695, %v2881_v61  ;;  %v2882_v15 = vsub.f32 %v2854_v51, %v2876_v2  ;;  %v3203_v51 = vrot.slane %v6950_v31, 4 }
0x15e4   :  { %5942 = vpow2.f32 %v2891_v27  ;;  %v2893_v0 = vmul.f32 1.442695, %v2882_v15  ;;  %v3211_v54 = vsel %vm474_vm4, %v3203_v51, 0 }
0x15e6   :  { %5944 = vpow2.f32 %v2893_v0 }
0x15e7   :  { %5946 = vpow2.f32 %v2889_v8 }
0x15ee   :  { %v5943_v7 = vpop.eup %5942 }
0x15ef   :  { %v2907_v24 = vsel %vm583_vm6, %v5943_v7, 0.0 }
0x15f0   :  { %v5945_v39 = vpop.eup %5944  ;;  %2908 = vadd.xlane.f32.xlu0 %v2907_v24 }
0x15f1   :  { %v2910_v10 = vsel %vm583_vm6, %v5945_v39, 0.0  ;;  %v5947_v12 = vpop.eup %5946 }
0x15f2   :  { %2911 = vadd.xlane.f32.xlu1 %v2910_v10  ;;  %v2904_v48 = vsel %vm583_vm6, %v5947_v12, 0.0 }
0x15f6   :  { %2905 = vadd.xlane.f32.xlu1 %v2904_v48 }
0x1606   :  { %2995 = vrot.lane.b32.xlu0 %v6942_v25, %s6094_s17 }
0x1607   :  { %2997 = vrot.lane.b32.xlu1 %v6958_v22, %s6094_s17 }
0x160a   :  { %3198 = vrot.lane.b32.xlu0 %v6942_v25, %s6095_s18 }
0x160b   :  { %3135 = vrot.lane.b32.xlu1 %v6936_v9, %s6095_s18 }
0x160f   :  { %3137 = vrot.lane.b32.xlu1 %v6964_v37, %s6095_s18 }
0x1613   :  { %3200 = vrot.lane.b32.xlu1 %v6958_v22, %s6095_s18 }
0x1629   :  { %2860 = vmax.xlane.f32.xlu0 %v2859_v62 }
0x162d   :  { %2866 = vmax.xlane.f32.xlu0 %v2865_v46 }
0x1637   :  { %2863 = vmax.xlane.f32.xlu1 %v2862_v11 }
0x167d   :  { %v2909_v49 = vpop.xlane.xlu0 %2908 }
0x167f   :  { %v2912_v43 = vpop.xlane.xlu1 %2911 }
0x1680   :  { %5948 = vrcp.f32 %v2912_v43 }
0x1681   :  { %v2996_v41 = vpop.permute.xlu0 %2995  ;;  %5950 = vrcp.f32 %v2909_v49 }
0x1682   :  { %5516 = vmatprep.subr.bf16.mxu0 %v2996_v41 }
0x1683   :  { %5517 = vmatpush3.bf16.msra.mxu0 %v2996_v41  ;;  %v2906_v33 = vpop.xlane.xlu1 %2905 }
0x1684   :  { %5952 = vrcp.f32 %v2906_v33 }
0x1685   :  { %v3199_v36 = vpop.permute.xlu0 %3198 }
0x1687   :  { %v2998_v47 = vpop.permute.xlu1 %2997 }
0x1688   :  { %v3007_v19 = vsel %vm474_vm4, %v2998_v47, 0  ;;  %5741 = vmatprep.subr.msk.bf16.mxu0 %vm474_vm4, %v2998_v47 }
0x1689   :  { %5519 = vmatpush3.bf16.msra.mxu0 %v3007_v19 }
0x168a   :  { %5742 = vmatprep.subr.msk.bf16.mxu0 %vm474_vm4, %v3140_v29  ;;  %v5949_v42 = vpop.eup %5948 }
0x168b   :  { %v5951_v35 = vpop.eup %5950  ;;  %v2924_v55 = vmul.f32 %v5949_v42, %v5945_v39  ;;  %v3136_v30 = vpop.permute.xlu1 %3135 }
0x168c   :  { %v2923_v53 = vmul.f32 %v5951_v35, %v5943_v7 }
0x168d   :  { %v2928_v59 = vpack.c.bf16 %v2924_v55, %v2924_v55 }
0x168e   :  { %v5953_v13 = vpop.eup %5952 }
0x168f   :  { %v2922_v32 = vmul.f32 %v5953_v13, %v5947_v12  ;;  %v3138_v60 = vpop.permute.xlu1 %3137 }
0x1691   :  { %v2927_v58 = vpack.c.bf16 %v2923_v53, %v2922_v32 }
0x1693   :  { %5520 = vmatprep.mubr.msk.bf16.mxu0 %vm583_vm6, %v2927_v58  ;;  %v3201_v31 = vpop.permute.xlu1 %3200 }
0x1694   :  { %5521 = vmatmul.mubr.msk.bf16.vlgmr.msra.gmra.mrb[84].mxu0 %vm583_vm6, %v2928_v59 }
0x1695   :  { %5539 = vmatpush3.bf16.msra.mxu0 %v3148_v45  ;;  %5540 = vmatprep.mubr.msk.bf16.mxu0 %vm467_vm3, %v3136_v30 }
0x1696   :  { %5743 = vmatprep.subr.msk.bf16.mxu0 %vm474_vm4, %v3203_v51 }
0x169c   :  { %5541 = vmatmul.mubr.msk.bf16.vlgmr.msra.gmra.mrb[88].mxu0 %vm467_vm3, %v3138_v60 }
0x169d   :  { %5545 = vmatpush3.bf16.msra.mxu0 %v3211_v54  ;;  %5546 = vmatprep.mubr.msk.bf16.mxu0 %vm467_vm3, %v3199_v36 }
0x16a4   :  { %5547 = vmatmul.mubr.msk.bf16.vlgmr.msra.gmra.mrb[92].mxu0 %vm467_vm3, %v3201_v31 }
0x16b6   :  { %v2861_v57 = vpop.xlane.xlu0 %2860 }
0x16b7   :  { %v2877_v40 = vsub.f32 %v2789_v34, %v2861_v57 }
0x16b9   :  { %v2883_v63 = vmul.f32 1.442695, %v2877_v40 }
0x16ba   :  { %v2867_v6 = vpop.xlane.xlu0 %2866 }
0x16bb   :  { %5954 = vpow2.f32 %v2883_v63  ;;  %v2879_v5 = vsub.f32 %v2797_v17, %v2867_v6  ;;  %v4946_v6 = vld [vmem:[%s7483_s6 + $0x10] sm:$0xf] }
0x16bd   :  { %v2887_v61 = vmul.f32 1.442695, %v2879_v5  ;;  %v3070_v5 = vsel %vm474_vm4, %v4946_v6, 0 }
0x16bf   :  { %5956 = vpow2.f32 %v2887_v61 }
0x16c4   :  { %v2864_v2 = vpop.xlane.xlu1 %2863 }
0x16c5   :  { %v5955_v27 = vpop.eup %5954  ;;  %v2878_v15 = vsub.f32 %v2792_v20, %v2864_v2 }
0x16c6   :  { %v2895_v8 = vsel %vm583_vm6, %v5955_v27, 0.0 }
0x16c7   :  { %v2885_v0 = vmul.f32 1.442695, %v2878_v15  ;;  %2896 = vadd.xlane.f32.xlu0 %v2895_v8 }
0x16c9   :  { %v5957_v7 = vpop.eup %5956  ;;  %5958 = vpow2.f32 %v2885_v0 }
0x16ca   :  { %v2901_v24 = vsel %vm583_vm6, %v5957_v7, 0.0 }
0x16cb   :  { %2902 = vadd.xlane.f32.xlu1 %v2901_v24 }
0x16d3   :  { %v5959_v39 = vpop.eup %5958 }
0x16d4   :  { %v2898_v10 = vsel %vm583_vm6, %v5959_v39, 0.0 }
0x16d5   :  { %2899 = vadd.xlane.f32.xlu0 %v2898_v10 }
0x16dc   :  { %2933 = vrot.lane.b32.xlu1 %v6964_v37, %s6094_s17 }
0x16eb   :  { %2931 = vrot.lane.b32.xlu0 %v6936_v9, %s6094_s17 }
0x1754   :  { %v2897_v48 = vpop.xlane.xlu0 %2896 }
0x1758   :  { %v2903_v12 = vpop.xlane.xlu1 %2902 }
0x1759   :  { %5960 = vrcp.f32 %v2903_v12 }
0x175a   :  { %5962 = vrcp.f32 %v2897_v48 }
0x175c   :  { %v2934_v46 = vpop.permute.xlu1 %2933 }
0x175d   :  { %v2943_v33 = vsel %vm474_vm4, %v2934_v46, 0 }
0x1762   :  { %v2900_v34 = vpop.xlane.xlu0 %2899 }
0x1763   :  { %5964 = vrcp.f32 %v2900_v34  ;;  %v5961_v49 = vpop.eup %5960 }
0x1764   :  { %v5963_v41 = vpop.eup %5962  ;;  %v2921_v19 = vmul.f32 %v5961_v49, %v5957_v7 }
0x1765   :  { %v2919_v42 = vmul.f32 %v5963_v41, %v5955_v27 }
0x1766   :  { %v2932_v17 = vpop.permute.xlu0 %2931  ;;  %v2926_v58 = vpack.c.bf16 %v2921_v19, %v2921_v19 }
0x1767   :  { %5508 = vmatprep.subr.bf16.mxu1 %v2932_v17  ;;  %v7026_v62 = vpop.f32.mrb[84].mxu0 }
0x1768   :  { %5509 = vmatpush3.bf16.msra.mxu1 %v2932_v17  ;;  %v7028_v20 = vpop.f32.mrb[85].mxu0 }
0x1769   :  { %5740 = vmatprep.subr.msk.bf16.mxu1 %vm474_vm4, %v2934_v46  ;;  %v5523_v11 = vpop.f32.mrb[86].mxu0 }
0x176a   :  { %v7031_v43 = vpop.f32.mrb[87].mxu0 }
0x176b   :  { %v3059_v47 = vpack.c.bf16 %v7026_v62, %v7031_v43  ;;  %v7088_v62 = vpack.c.bf16 %v6982_v56, %v6978_v38  ;;  %v7097_v38 = vpack.c.bf16 %v6980_v3, %v6976_v44 }
0x176c   :  { %5511 = vmatpush3.bf16.msra.mxu1 %v2943_v33 }
0x176d   :  { %v5965_v29 = vpop.eup %5964  ;;  %5524 = vmatprep.subr.bf16.mxu1 %v6090_v1  ;;  %v3605_v44 = vsel %vm474_vm4, %v7097_v38, 0 }
0x176e   :  { %v2920_v35 = vmul.f32 %v5965_v29, %v5959_v39 }
0x176f   :  { %v5542_v13 = vpop.f32.mrb[88].mxu0 }
0x1770   :  { %v3184_v55 = vpop.f32.mrb[89].mxu0  ;;  %v2925_v32 = vpack.c.bf16 %v2920_v35, %v2919_v42  ;;  %v3193_v35 = vadd.f32 %v5542_v13, %v6358_v52 }
0x1771   :  { %v5543_v53 = vpop.f32.mrb[90].mxu0  ;;  %v3185_v42 = vadd.f32 %v3184_v55, %v6358_v52 }
0x1772   :  { %5512 = vmatprep.mubr.msk.bf16.mxu1 %vm583_vm6, %v2925_v32  ;;  %v7038_v59 = vpop.f32.mrb[91].mxu0 }
0x1773   :  { %5513 = vmatmul.mubr.msk.bf16.vlgmr.msra.gmra.mrb[96].mxu1 %vm583_vm6, %v2926_v58  ;;  %v3261_v32 = vsel %vm583_vm6, %v3185_v42, -inf  ;;  %v3188_v55 = vadd.f32 %v7038_v59, %v6358_v52 }
0x1774   :  { %5526 = vmatprep.mubr.msk.bf16.mxu1 %vm6091_vm0, %v6090_v1  ;;  %5525 = vmatpush3.bf16.msra.mxu1 %v3070_v5 }
0x1775   :  { %v3264_v13 = vsel %vm583_vm6, %v3188_v55, -inf }
0x1777   :  { %v5548_v51 = vpop.f32.mrb[92].mxu0 }
0x1778   :  { %v3247_v30 = vpop.f32.mrb[93].mxu0  ;;  %v3256_v57 = vadd.f32 %v5548_v51, %v6358_v52 }
0x1779   :  { %v3248_v45 = vadd.f32 %v3247_v30, %v6358_v52  ;;  %v5549_v60 = vpop.f32.mrb[94].mxu0 }
0x177a   :  { %v3250_v36 = vpop.f32.mrb[95].mxu0  ;;  %v3276_v63 = vsel %vm583_vm6, %v3256_v57, -inf }
0x177b   :  { %v3251_v54 = vadd.f32 %v3250_v36, %v6358_v52  ;;  %v3270_v31 = vsel %vm583_vm6, %v3248_v45, -inf }
0x177c   :  { %3271 = vmax.xlane.f32.xlu1 %v3270_v31 }
0x177d   :  { %v3273_v40 = vsel %vm583_vm6, %v3251_v54, -inf }
0x177e   :  { %3274 = vmax.xlane.f32.xlu0 %v3273_v40 }
0x1782   :  { %3277 = vmax.xlane.f32.xlu0 %v3276_v63  ;;  %v3544_v63 = vsel %vm474_vm4, %v7088_v62, 0 }
0x1809   :  { %v3272_v61 = vpop.xlane.xlu1 %3271 }
0x180a   :  { %v3282_v15 = vsub.f32 %v3248_v45, %v3272_v61 }
0x180b   :  { %v3275_v2 = vpop.xlane.xlu0 %3274 }
0x180c   :  { %v3283_v27 = vsub.f32 %v3251_v54, %v3275_v2  ;;  %v3291_v24 = vmul.f32 1.442695, %v3282_v15 }
0x180e   :  { %v3293_v8 = vmul.f32 1.442695, %v3283_v27 }
0x180f   :  { %v3278_v0 = vpop.xlane.xlu0 %3277 }
0x1810   :  { %5966 = vpow2.f32 %v3293_v8  ;;  %v3284_v7 = vsub.f32 %v3256_v57, %v3278_v0 }
0x1812   :  { %v3295_v39 = vmul.f32 1.442695, %v3284_v7 }
0x1814   :  { %5968 = vpow2.f32 %v3295_v39 }
0x1815   :  { %5970 = vpow2.f32 %v3291_v24 }
0x181a   :  { %v5967_v10 = vpop.eup %5966 }
0x181b   :  { %v3309_v12 = vsel %vm583_vm6, %v5967_v10, 0.0 }
0x181c   :  { %3310 = vadd.xlane.f32.xlu0 %v3309_v12 }
0x181e   :  { %v5969_v48 = vpop.eup %5968 }
0x181f   :  { %v3312_v34 = vsel %vm583_vm6, %v5969_v48, 0.0  ;;  %v5971_v17 = vpop.eup %5970 }
0x1820   :  { %3313 = vadd.xlane.f32.xlu1 %v3312_v34  ;;  %v3306_v46 = vsel %vm583_vm6, %v5971_v17, 0.0 }
0x1824   :  { %3307 = vadd.xlane.f32.xlu1 %v3306_v46 }
0x1832   :  { %3393 = vrot.lane.b32.xlu0 %v6942_v25, %s6096_s20 }
0x1835   :  { %3395 = vrot.lane.b32.xlu1 %v6958_v22, %s6096_s20 }
0x1836   :  { %3594 = vrot.lane.b32.xlu0 %v6942_v25, %s6097_s21 }
0x1839   :  { %3533 = vrot.lane.b32.xlu1 %v6936_v9, %s6097_s21 }
0x183d   :  { %3535 = vrot.lane.b32.xlu1 %v6964_v37, %s6097_s21 }
0x1841   :  { %3596 = vrot.lane.b32.xlu1 %v6958_v22, %s6097_s21 }
0x1846   :  { %v5514_v11 = vpop.f32.mrb[96].mxu1 }
0x1847   :  { %v3058_v49 = vpack.c.bf16 %v7028_v20, %v5514_v11  ;;  %v2979_v41 = vpop.f32.mrb[97].mxu1  ;;  %v3267_v20 = vsel %vm583_vm6, %v3193_v35, -inf }
0x1848   :  { %v5515_v33 = vpop.f32.mrb[98].mxu1 }
0x1849   :  { %v2982_v29 = vpop.f32.mrb[99].mxu1 }
0x184a   :  { %v3057_v19 = vpack.c.bf16 %v2982_v29, %v2979_v41 }
0x184c   :  { %5527 = vmatmul.mubr.msk.bf16.vlgmr.msra.gmra.mrb[100].mxu1 %vm467_vm3, %v3057_v19 }
0x184d   :  { %5530 = vmatprep.mubr.msk.bf16.mxu1 %vm6091_vm0, %v6090_v1 }
0x1854   :  { %5531 = vmatmul.mubr.msk.bf16.gmra.mrb[104].mxu1 %vm467_vm3, %v3058_v49 }
0x1855   :  { %3262 = vmax.xlane.f32.xlu0 %v3261_v32  ;;  %5534 = vmatprep.mubr.msk.bf16.mxu1 %vm6091_vm0, %v6090_v1 }
0x1859   :  { %3268 = vmax.xlane.f32.xlu0 %v3267_v20 }
0x185c   :  { %5535 = vmatmul.mubr.msk.bf16.gmra.mrb[108].mxu1 %vm467_vm3, %v3059_v47 }
0x1865   :  { %3265 = vmax.xlane.f32.xlu1 %v3264_v13 }
0x18a9   :  { %v3311_v53 = vpop.xlane.xlu0 %3310 }
0x18ad   :  { %v3314_v58 = vpop.xlane.xlu1 %3313  ;;  %v3394_v51 = vpop.permute.xlu0 %3393 }
0x18ae   :  { %5558 = vmatprep.subr.bf16.mxu1 %v3394_v51  ;;  %5972 = vrcp.f32 %v3314_v58 }
0x18af   :  { %5559 = vmatpush3.bf16.msra.mxu1 %v3394_v51  ;;  %5974 = vrcp.f32 %v3311_v53 }
0x18b1   :  { %v3308_v30 = vpop.xlane.xlu1 %3307  ;;  %v3595_v5 = vpop.permute.xlu0 %3594 }
0x18b2   :  { %5976 = vrcp.f32 %v3308_v30 }
0x18b5   :  { %v3396_v45 = vpop.permute.xlu1 %3395 }
0x18b6   :  { %v3405_v43 = vsel %vm474_vm4, %v3396_v45, 0  ;;  %5745 = vmatprep.subr.msk.bf16.mxu1 %vm474_vm4, %v3396_v45 }
0x18b7   :  { %5561 = vmatpush3.bf16.msra.mxu1 %v3405_v43 }
0x18b8   :  { %5746 = vmatprep.subr.msk.bf16.mxu1 %vm474_vm4, %v7088_v62  ;;  %v5973_v47 = vpop.eup %5972 }
0x18b9   :  { %v5975_v59 = vpop.eup %5974  ;;  %v3326_v36 = vmul.f32 %v5973_v47, %v5969_v48  ;;  %v3534_v56 = vpop.permute.xlu1 %3533 }
0x18ba   :  { %v3325_v31 = vmul.f32 %v5975_v59, %v5967_v10 }
0x18bb   :  { %v3330_v40 = vpack.c.bf16 %v3326_v36, %v3326_v36 }
0x18bc   :  { %v5977_v60 = vpop.eup %5976 }
0x18bd   :  { %v3324_v54 = vmul.f32 %v5977_v60, %v5971_v17  ;;  %v3536_v6 = vpop.permute.xlu1 %3535 }
0x18bf   :  { %v3329_v57 = vpack.c.bf16 %v3325_v31, %v3324_v54 }
0x18c1   :  { %5562 = vmatprep.mubr.msk.bf16.mxu1 %vm583_vm6, %v3329_v57  ;;  %v3597_v3 = vpop.permute.xlu1 %3596 }
0x18c2   :  { %5563 = vmatmul.mubr.msk.bf16.vlgmr.msra.gmra.mrb[112].mxu1 %vm583_vm6, %v3330_v40 }
0x18c3   :  { %5581 = vmatpush3.bf16.msra.mxu1 %v3544_v63  ;;  %5582 = vmatprep.mubr.msk.bf16.mxu1 %vm467_vm3, %v3534_v56 }
0x18c4   :  { %5747 = vmatprep.subr.msk.bf16.mxu1 %vm474_vm4, %v7097_v38 }
0x18ca   :  { %5583 = vmatmul.mubr.msk.bf16.vlgmr.msra.gmra.mrb[116].mxu1 %vm467_vm3, %v3536_v6 }
0x18cb   :  { %5587 = vmatpush3.bf16.msra.mxu1 %v3605_v44  ;;  %5588 = vmatprep.mubr.msk.bf16.mxu1 %vm467_vm3, %v3595_v5 }
0x18d2   :  { %5589 = vmatmul.mubr.msk.bf16.vlgmr.msra.gmra.mrb[120].mxu1 %vm467_vm3, %v3597_v3 }
0x18e2   :  { %v3263_v61 = vpop.xlane.xlu0 %3262 }
0x18e3   :  { %v3279_v2 = vsub.f32 %v3185_v42, %v3263_v61 }
0x18e5   :  { %v3285_v27 = vmul.f32 1.442695, %v3279_v2 }
0x18e6   :  { %v3269_v15 = vpop.xlane.xlu0 %3268 }
0x18e7   :  { %5978 = vpow2.f32 %v3285_v27  ;;  %v3281_v8 = vsub.f32 %v3193_v35, %v3269_v15 }
0x18e9   :  { %v3289_v0 = vmul.f32 1.442695, %v3281_v8 }
0x18eb   :  { %5980 = vpow2.f32 %v3289_v0 }
0x18f1   :  { %v5979_v7 = vpop.eup %5978 }
0x18f2   :  { %v3266_v24 = vpop.xlane.xlu1 %3265  ;;  %v3297_v39 = vsel %vm583_vm6, %v5979_v7, 0.0 }
0x18f3   :  { %v3280_v10 = vsub.f32 %v3188_v55, %v3266_v24  ;;  %3298 = vadd.xlane.f32.xlu0 %v3297_v39 }
0x18f5   :  { %v5981_v12 = vpop.eup %5980  ;;  %v3287_v48 = vmul.f32 1.442695, %v3280_v10 }
0x18f6   :  { %v3303_v34 = vsel %vm583_vm6, %v5981_v12, 0.0 }
0x18f7   :  { %5982 = vpow2.f32 %v3287_v48  ;;  %3304 = vadd.xlane.f32.xlu1 %v3303_v34 }
0x1901   :  { %v5983_v17 = vpop.eup %5982 }
0x1902   :  { %v3300_v46 = vsel %vm583_vm6, %v5983_v17, 0.0 }
0x1903   :  { %3301 = vadd.xlane.f32.xlu0 %v3300_v46 }
0x1908   :  { %3333 = vrot.lane.b32.xlu1 %v6964_v37, %s6096_s20 }
0x1919   :  { %3331 = vrot.lane.b32.xlu0 %v6936_v9, %s6096_s20 }
0x191f   :  { %v7117_v11 = vpop.f32.mrb[100].mxu1 }
0x1920   :  { %v5528_v49 = vpop.f32.mrb[101].mxu1 }
0x1921   :  { %v7119_v41 = vpop.f32.mrb[102].mxu1 }
0x1922   :  { %v5529_v33 = vpop.f32.mrb[103].mxu1 }
0x1927   :  { %v7121_v29 = vpop.f32.mrb[104].mxu1 }
0x1928   :  { %v5532_v19 = vpop.f32.mrb[105].mxu1 }
0x1929   :  { %v7123_v42 = vpop.f32.mrb[106].mxu1 }
0x192a   :  { %v5533_v35 = vpop.f32.mrb[107].mxu1 }
0x192f   :  { %v7125_v32 = vpop.f32.mrb[108].mxu1 }
0x1930   :  { %v5536_v20 = vpop.f32.mrb[109].mxu1 }
0x1931   :  { %v7127_v55 = vpop.f32.mrb[110].mxu1 }
0x1932   :  { %v5537_v13 = vpop.f32.mrb[111].mxu1 }
0x1980   :  { %v3299_v58 = vpop.xlane.xlu0 %3298 }
0x1984   :  { %v3305_v53 = vpop.xlane.xlu1 %3304 }
0x1985   :  { %5984 = vrcp.f32 %v3305_v53 }
0x1986   :  { %5986 = vrcp.f32 %v3299_v58 }
0x1988   :  { %v3334_v43 = vpop.permute.xlu1 %3333 }
0x1989   :  { %v3343_v31 = vsel %vm474_vm4, %v3334_v43, 0 }
0x198f   :  { %v5985_v60 = vpop.eup %5984 }
0x1990   :  { %v3302_v51 = vpop.xlane.xlu0 %3301  ;;  %v5987_v54 = vpop.eup %5986  ;;  %v3323_v56 = vmul.f32 %v5985_v60, %v5981_v12 }
0x1991   :  { %5988 = vrcp.f32 %v3302_v51  ;;  %v3321_v63 = vmul.f32 %v5987_v54, %v5979_v7 }
0x1992   :  { %v3328_v2 = vpack.c.bf16 %v3323_v56, %v3323_v56 }
0x1994   :  { %v3332_v30 = vpop.permute.xlu0 %3331 }
0x1995   :  { %5550 = vmatprep.subr.bf16.mxu0 %v3332_v30  ;;  %v7129_v45 = vpop.f32.mrb[112].mxu1 }
0x1996   :  { %5551 = vmatpush3.bf16.msra.mxu0 %v3332_v30  ;;  %v7131_v47 = vpop.f32.mrb[113].mxu1 }
0x1997   :  { %5744 = vmatprep.subr.msk.bf16.mxu0 %vm474_vm4, %v3334_v43  ;;  %v5565_v59 = vpop.f32.mrb[114].mxu1 }
0x1998   :  { %v7134_v36 = vpop.f32.mrb[115].mxu1 }
0x1999   :  { %v3457_v57 = vpack.c.bf16 %v7129_v45, %v7134_v36  ;;  %v3932_v45 = vrot.slane %v7088_v62, 4 }
0x199a   :  { %5553 = vmatpush3.bf16.msra.mxu0 %v3343_v31 }
0x199b   :  { %v5989_v40 = vpop.eup %5988  ;;  %5566 = vmatprep.subr.bf16.mxu0 %v6090_v1 }
0x199c   :  { %v3322_v6 = vmul.f32 %v5989_v40, %v5983_v17  ;;  %v4947_v17 = vld [vmem:[%s7483_s6 + $0x14] sm:$0xf] }
0x199d   :  { %v5584_v5 = vpop.f32.mrb[116].mxu1  ;;  %v3468_v46 = vsel %vm474_vm4, %v4947_v17, 0 }
0x199e   :  { %v3580_v44 = vpop.f32.mrb[117].mxu1  ;;  %v3327_v3 = vpack.c.bf16 %v3322_v6, %v3321_v63 }
0x199f   :  { %v5585_v61 = vpop.f32.mrb[118].mxu1 }
0x19a0   :  { %5554 = vmatprep.mubr.msk.bf16.mxu0 %vm583_vm6, %v3327_v3  ;;  %v7141_v27 = vpop.f32.mrb[119].mxu1 }
0x19a1   :  { %5555 = vmatmul.mubr.msk.bf16.vlgmr.msra.gmra.mrb[96].mxu0 %vm583_vm6, %v3328_v2  ;;  %v3581_v2 = vadd.f32 %v3580_v44, %v6358_v52  ;;  %v3584_v44 = vadd.f32 %v7141_v27, %v6358_v52 }
0x19a2   :  { %5568 = vmatprep.mubr.msk.bf16.mxu0 %vm6091_vm0, %v6090_v1  ;;  %5567 = vmatpush3.bf16.msra.mxu0 %v3468_v46 }
0x19a5   :  { %v5590_v15 = vpop.f32.mrb[120].mxu1 }
0x19a6   :  { %v3641_v8 = vpop.f32.mrb[121].mxu1  ;;  %v3650_v12 = vadd.f32 %v5590_v15, %v6358_v52  ;;  %v3589_v15 = vadd.f32 %v5584_v5, %v6358_v52  ;;  %v3658_v5 = vsel %vm583_vm6, %v3584_v44, -inf }
0x19a7   :  { %v3642_v0 = vadd.f32 %v3641_v8, %v6358_v52  ;;  %v5591_v7 = vpop.f32.mrb[122].mxu1  ;;  %v3655_v8 = vsel %vm583_vm6, %v3581_v2, -inf }
0x19a8   :  { %v3644_v24 = vpop.f32.mrb[123].mxu1  ;;  %v3670_v34 = vsel %vm583_vm6, %v3650_v12, -inf }
0x19a9   :  { %v3645_v39 = vadd.f32 %v3644_v24, %v6358_v52  ;;  %v3664_v10 = vsel %vm583_vm6, %v3642_v0, -inf }
0x19aa   :  { %3665 = vmax.xlane.f32.xlu1 %v3664_v10 }
0x19ab   :  { %v3667_v48 = vsel %vm583_vm6, %v3645_v39, -inf }
0x19ac   :  { %3668 = vmax.xlane.f32.xlu0 %v3667_v48 }
0x19b0   :  { %3671 = vmax.xlane.f32.xlu0 %v3670_v34 }
0x1a37   :  { %v3666_v49 = vpop.xlane.xlu1 %3665 }
0x1a38   :  { %v3676_v35 = vsub.f32 %v3642_v0, %v3666_v49 }
0x1a39   :  { %v3669_v33 = vpop.xlane.xlu0 %3668 }
0x1a3a   :  { %v3677_v19 = vsub.f32 %v3645_v39, %v3669_v33  ;;  %v3685_v58 = vmul.f32 1.442695, %v3676_v35  ;;  %v3995_v33 = vrot.slane %v7097_v38, 4 }
0x1a3c   :  { %v3687_v20 = vmul.f32 1.442695, %v3677_v19  ;;  %v3940_v19 = vsel %vm474_vm4, %v3932_v45, 0 }
0x1a3d   :  { %v3672_v13 = vpop.xlane.xlu0 %3671 }
0x1a3e   :  { %5990 = vpow2.f32 %v3687_v20  ;;  %v3678_v53 = vsub.f32 %v3650_v12, %v3672_v13  ;;  %v4003_v13 = vsel %vm474_vm4, %v3995_v33, 0 }
0x1a40   :  { %v3689_v51 = vmul.f32 1.442695, %v3678_v53 }
0x1a42   :  { %5992 = vpow2.f32 %v3689_v51 }
0x1a43   :  { %5994 = vpow2.f32 %v3685_v58 }
0x1a48   :  { %v5991_v30 = vpop.eup %5990 }
0x1a49   :  { %v3703_v43 = vsel %vm583_vm6, %v5991_v30, 0.0 }
0x1a4a   :  { %3704 = vadd.xlane.f32.xlu0 %v3703_v43 }
0x1a4c   :  { %v5993_v59 = vpop.eup %5992 }
0x1a4d   :  { %v3706_v60 = vsel %vm583_vm6, %v5993_v59, 0.0  ;;  %v5995_v54 = vpop.eup %5994 }
0x1a4e   :  { %3707 = vadd.xlane.f32.xlu1 %v3706_v60  ;;  %v3700_v31 = vsel %vm583_vm6, %v5995_v54, 0.0 }
0x1a52   :  { %3701 = vadd.xlane.f32.xlu1 %v3700_v31 }
0x1a60   :  { %3787 = vrot.lane.b32.xlu0 %v6942_v25, %s6098_s24 }
0x1a63   :  { %3789 = vrot.lane.b32.xlu1 %v6958_v22, %s6098_s24 }
0x1a64   :  { %3990 = vrot.lane.b32.xlu0 %v6942_v25, %s6099_s1 }
0x1a67   :  { %3927 = vrot.lane.b32.xlu1 %v6936_v9, %s6099_s1 }
0x1a6b   :  { %3929 = vrot.lane.b32.xlu1 %v6964_v37, %s6099_s1 }
0x1a6f   :  { %3992 = vrot.lane.b32.xlu1 %v6958_v22, %s6099_s1 }
0x1a74   :  { %v5556_v40 = vpop.f32.mrb[96].mxu0 }
0x1a75   :  { %v3456_v56 = vpack.c.bf16 %v7131_v47, %v5556_v40  ;;  %v3379_v63 = vpop.f32.mrb[97].mxu0  ;;  %v3661_v47 = vsel %vm583_vm6, %v3589_v15, -inf }
0x1a76   :  { %v5557_v6 = vpop.f32.mrb[98].mxu0 }
0x1a77   :  { %v3382_v3 = vpop.f32.mrb[99].mxu0 }
0x1a78   :  { %v3455_v61 = vpack.c.bf16 %v3382_v3, %v3379_v63 }
0x1a7a   :  { %5569 = vmatmul.mubr.msk.bf16.vlgmr.msra.gmra.mrb[100].mxu0 %vm467_vm3, %v3455_v61 }
0x1a7b   :  { %5572 = vmatprep.mubr.msk.bf16.mxu0 %vm6091_vm0, %v6090_v1 }
0x1a82   :  { %5573 = vmatmul.mubr.msk.bf16.gmra.mrb[104].mxu0 %vm467_vm3, %v3456_v56 }
0x1a83   :  { %3656 = vmax.xlane.f32.xlu0 %v3655_v8  ;;  %5576 = vmatprep.mubr.msk.bf16.mxu0 %vm6091_vm0, %v6090_v1  ;;  %v3130_v8 = vadd.f32 %v7119_v41, %v6859_v4  ;;  %v3133_v41 = vadd.f32 %v7125_v32, %v6876_v16 }
0x1a87   :  { %3662 = vmax.xlane.f32.xlu0 %v3661_v47 }
0x1a8a   :  { %5577 = vmatmul.mubr.msk.bf16.gmra.mrb[108].mxu0 %vm467_vm3, %v3457_v57 }
0x1a93   :  { %3659 = vmax.xlane.f32.xlu1 %v3658_v5 }
0x1ad7   :  { %v3705_v0 = vpop.xlane.xlu0 %3704 }
0x1adb   :  { %v3708_v7 = vpop.xlane.xlu1 %3707  ;;  %v3788_v24 = vpop.permute.xlu0 %3787 }
0x1adc   :  { %5600 = vmatprep.subr.bf16.mxu0 %v3788_v24  ;;  %5996 = vrcp.f32 %v3708_v7 }
0x1add   :  { %5601 = vmatpush3.bf16.msra.mxu0 %v3788_v24  ;;  %5998 = vrcp.f32 %v3705_v0  ;;  %v3131_v24 = vadd.f32 %v7121_v29, %v6866_v28 }
0x1adf   :  { %v3702_v39 = vpop.xlane.xlu1 %3701  ;;  %v3991_v20 = vpop.permute.xlu0 %3990 }
0x1ae0   :  { %6000 = vrcp.f32 %v3702_v39 }
0x1ae3   :  { %v3790_v10 = vpop.permute.xlu1 %3789 }
0x1ae4   :  { %v3799_v36 = vsel %vm474_vm4, %v3790_v10, 0  ;;  %5749 = vmatprep.subr.msk.bf16.mxu0 %vm474_vm4, %v3790_v10  ;;  %v3132_v10 = vadd.f32 %v7123_v42, %v6869_v50 }
0x1ae5   :  { %5603 = vmatpush3.bf16.msra.mxu0 %v3799_v36 }
0x1ae6   :  { %5750 = vmatprep.subr.msk.bf16.mxu0 %vm474_vm4, %v3932_v45  ;;  %v5997_v57 = vpop.eup %5996 }
0x1ae7   :  { %v5999_v27 = vpop.eup %5998  ;;  %v3720_v48 = vmul.f32 %v5997_v57, %v5993_v59  ;;  %v3928_v62 = vpop.permute.xlu1 %3927 }
0x1ae8   :  { %v3719_v17 = vmul.f32 %v5999_v27, %v5991_v30  ;;  %v3134_v27 = vadd.f32 %v7127_v55, %v6879_v21 }
0x1ae9   :  { %v3724_v49 = vpack.c.bf16 %v3720_v48, %v3720_v48 }
0x1aea   :  { %v6001_v12 = vpop.eup %6000 }
0x1aeb   :  { %v3718_v34 = vmul.f32 %v6001_v12, %v5995_v54  ;;  %v3930_v35 = vpop.permute.xlu1 %3929 }
0x1aed   :  { %v3723_v46 = vpack.c.bf16 %v3719_v17, %v3718_v34 }
0x1aef   :  { %5604 = vmatprep.mubr.msk.bf16.mxu0 %vm583_vm6, %v3723_v46  ;;  %v3993_v38 = vpop.permute.xlu1 %3992 }
0x1af0   :  { %5605 = vmatmul.mubr.msk.bf16.vlgmr.msra.gmra.mrb[112].mxu0 %vm583_vm6, %v3724_v49 }
0x1af1   :  { %5623 = vmatpush3.bf16.msra.mxu0 %v3940_v19  ;;  %5624 = vmatprep.mubr.msk.bf16.mxu0 %vm467_vm3, %v3928_v62 }
0x1af2   :  { %5751 = vmatprep.subr.msk.bf16.mxu0 %vm474_vm4, %v3995_v33 }
0x1af8   :  { %5625 = vmatmul.mubr.msk.bf16.vlgmr.msra.gmra.mrb[116].mxu0 %vm467_vm3, %v3930_v35 }
0x1af9   :  { %5629 = vmatpush3.bf16.msra.mxu0 %v4003_v13  ;;  %5630 = vmatprep.mubr.msk.bf16.mxu0 %vm467_vm3, %v3991_v20 }
0x1b00   :  { %5631 = vmatmul.mubr.msk.bf16.vlgmr.msra.gmra.mrb[120].mxu0 %vm467_vm3, %v3993_v38 }
0x1b10   :  { %v3657_v53 = vpop.xlane.xlu0 %3656 }
0x1b11   :  { %v3673_v58 = vsub.f32 %v3581_v2, %v3657_v53  ;;  %v3129_v2 = vadd.f32 %v7117_v11, %v6856_v18 }
0x1b13   :  { %v3679_v51 = vmul.f32 1.442695, %v3673_v58 }
0x1b14   :  { %v3663_v30 = vpop.xlane.xlu0 %3662 }
0x1b15   :  { %6002 = vpow2.f32 %v3679_v51  ;;  %v3675_v43 = vsub.f32 %v3589_v15, %v3663_v30 }
0x1b17   :  { %v3683_v59 = vmul.f32 1.442695, %v3675_v43 }
0x1b19   :  { %6004 = vpow2.f32 %v3683_v59 }
0x1b1f   :  { %v6003_v60 = vpop.eup %6002 }
0x1b20   :  { %v3660_v54 = vpop.xlane.xlu1 %3659  ;;  %v3691_v31 = vsel %vm583_vm6, %v6003_v60, 0.0 }
0x1b21   :  { %v3674_v40 = vsub.f32 %v3584_v44, %v3660_v54  ;;  %3692 = vadd.xlane.f32.xlu0 %v3691_v31 }
0x1b23   :  { %v6005_v56 = vpop.eup %6004  ;;  %v3681_v63 = vmul.f32 1.442695, %v3674_v40 }
0x1b24   :  { %v3697_v6 = vsel %vm583_vm6, %v6005_v56, 0.0 }
0x1b25   :  { %6006 = vpow2.f32 %v3681_v63  ;;  %3698 = vadd.xlane.f32.xlu1 %v3697_v6 }
0x1b2f   :  { %v6007_v3 = vpop.eup %6006 }
0x1b30   :  { %v3694_v61 = vsel %vm583_vm6, %v6007_v3, 0.0 }
0x1b31   :  { %3695 = vadd.xlane.f32.xlu0 %v3694_v61 }
0x1b36   :  { %3727 = vrot.lane.b32.xlu1 %v6964_v37, %s6098_s24 }
0x1b47   :  { %3725 = vrot.lane.b32.xlu0 %v6936_v9, %s6098_s24 }
0x1b4d   :  { %v3504_v15 = vpop.f32.mrb[100].mxu0 }
0x1b4e   :  { %v7214_v47 = vadd.f32 %v3504_v15, %v3129_v2  ;;  %v5570_v44 = vpop.f32.mrb[101].mxu0 }
0x1b4f   :  { %v3507_v5 = vpop.f32.mrb[102].mxu0 }
0x1b50   :  { %v7216_v0 = vadd.f32 %v3507_v5, %v3130_v8  ;;  %v5571_v7 = vpop.f32.mrb[103].mxu0 }
0x1b55   :  { %v3512_v39 = vpop.f32.mrb[104].mxu0 }
0x1b56   :  { %v7222_v45 = vadd.f32 %v3512_v39, %v3131_v24  ;;  %v5574_v18 = vpop.f32.mrb[105].mxu0 }
0x1b57   :  { %v3515_v11 = vpop.f32.mrb[106].mxu0 }
0x1b58   :  { %v7224_v36 = vadd.f32 %v3515_v11, %v3132_v10  ;;  %v5575_v4 = vpop.f32.mrb[107].mxu0  ;;  %v4948_v10 = vld [vmem:[%s7483_s6 + $0x18] sm:$0xf] }
0x1b59   :  { %v3862_v18 = vsel %vm474_vm4, %v4948_v10, 0 }
0x1b5d   :  { %v3520_v57 = vpop.f32.mrb[108].mxu0 }
0x1b5e   :  { %v7230_v12 = vadd.f32 %v3520_v57, %v3133_v41  ;;  %v5578_v28 = vpop.f32.mrb[109].mxu0 }
0x1b5f   :  { %v3523_v29 = vpop.f32.mrb[110].mxu0 }
0x1b60   :  { %v7232_v48 = vadd.f32 %v3523_v29, %v3134_v27  ;;  %v5579_v50 = vpop.f32.mrb[111].mxu0 }
0x1bae   :  { %v3693_v34 = vpop.xlane.xlu0 %3692 }
0x1bb2   :  { %v3699_v42 = vpop.xlane.xlu1 %3698 }
0x1bb3   :  { %6008 = vrcp.f32 %v3699_v42 }
0x1bb4   :  { %6010 = vrcp.f32 %v3693_v34 }
0x1bb6   :  { %v3728_v32 = vpop.permute.xlu1 %3727 }
0x1bb7   :  { %v3737_v19 = vsel %vm474_vm4, %v3728_v32, 0 }
0x1bbd   :  { %v6009_v49 = vpop.eup %6008 }
0x1bbe   :  { %v3696_v17 = vpop.xlane.xlu0 %3695  ;;  %v6011_v62 = vpop.eup %6010  ;;  %v3717_v13 = vmul.f32 %v6009_v49, %v6005_v56 }
0x1bbf   :  { %6012 = vrcp.f32 %v3696_v17  ;;  %v3715_v38 = vmul.f32 %v6011_v62, %v6003_v60 }
0x1bc0   :  { %v3722_v54 = vpack.c.bf16 %v3717_v13, %v3717_v13 }
0x1bc2   :  { %v3726_v46 = vpop.permute.xlu0 %3725 }
0x1bc3   :  { %5592 = vmatprep.subr.bf16.mxu1 %v3726_v46  ;;  %v7234_v16 = vpop.f32.mrb[112].mxu0 }
0x1bc4   :  { %5593 = vmatpush3.bf16.msra.mxu1 %v3726_v46  ;;  %v7236_v21 = vpop.f32.mrb[113].mxu0 }
0x1bc5   :  { %5748 = vmatprep.subr.msk.bf16.mxu1 %vm474_vm4, %v3728_v32  ;;  %v5607_v55 = vpop.f32.mrb[114].mxu0 }
0x1bc6   :  { %v7239_v33 = vpop.f32.mrb[115].mxu0 }
0x1bc7   :  { %v3851_v35 = vpack.c.bf16 %v7234_v16, %v7239_v33 }
0x1bc8   :  { %5595 = vmatpush3.bf16.msra.mxu1 %v3737_v19 }
0x1bc9   :  { %v6013_v20 = vpop.eup %6012  ;;  %5608 = vmatprep.subr.bf16.mxu1 %v6090_v1 }
0x1bca   :  { %v3716_v53 = vmul.f32 %v6013_v20, %v6007_v3 }
0x1bcb   :  { %v5626_v58 = vpop.f32.mrb[116].mxu0 }
0x1bcc   :  { %v3976_v51 = vpop.f32.mrb[117].mxu0  ;;  %v3721_v30 = vpack.c.bf16 %v3716_v53, %v3715_v38  ;;  %v3985_v60 = vadd.f32 %v5626_v58, %v6358_v52 }
0x1bcd   :  { %v3977_v43 = vadd.f32 %v3976_v51, %v6358_v52  ;;  %v5627_v59 = vpop.f32.mrb[118].mxu0 }
0x1bce   :  { %5596 = vmatprep.mubr.msk.bf16.mxu1 %vm583_vm6, %v3721_v30  ;;  %v3979_v31 = vpop.f32.mrb[119].mxu0  ;;  %v4059_v15 = vsel %vm583_vm6, %v3985_v60, -inf }
0x1bcf   :  { %v3980_v40 = vadd.f32 %v3979_v31, %v6358_v52  ;;  %5597 = vmatmul.mubr.msk.bf16.vlgmr.msra.gmra.mrb[124].mxu1 %vm583_vm6, %v3722_v54  ;;  %v4053_v56 = vsel %vm583_vm6, %v3977_v43, -inf }
0x1bd0   :  { %4054 = vmax.xlane.f32.xlu1 %v4053_v56  ;;  %5610 = vmatprep.mubr.msk.bf16.mxu1 %vm6091_vm0, %v6090_v1 }
0x1bd1   :  { %v4056_v63 = vsel %vm583_vm6, %v3980_v40, -inf  ;;  %5609 = vmatpush3.bf16.msra.mxu1 %v3862_v18 }
0x1bd2   :  { %4057 = vmax.xlane.f32.xlu0 %v4056_v63 }
0x1bd3   :  { %v5632_v6 = vpop.f32.mrb[120].mxu0 }
0x1bd4   :  { %v4039_v3 = vpop.f32.mrb[121].mxu0  ;;  %v4048_v44 = vadd.f32 %v5632_v6, %v6358_v52 }
0x1bd5   :  { %v4040_v61 = vadd.f32 %v4039_v3, %v6358_v52  ;;  %v5633_v2 = vpop.f32.mrb[122].mxu0 }
0x1bd6   :  { %v4042_v8 = vpop.f32.mrb[123].mxu0  ;;  %4060 = vmax.xlane.f32.xlu0 %v4059_v15  ;;  %v4068_v39 = vsel %vm583_vm6, %v4048_v44, -inf }
0x1bd7   :  { %v4043_v5 = vadd.f32 %v4042_v8, %v6358_v52  ;;  %v4062_v7 = vsel %vm583_vm6, %v4040_v61, -inf }
0x1bd8   :  { %4063 = vmax.xlane.f32.xlu1 %v4062_v7 }
0x1bd9   :  { %v4065_v24 = vsel %vm583_vm6, %v4043_v5, -inf }
0x1bda   :  { %4066 = vmax.xlane.f32.xlu0 %v4065_v24 }
0x1bdc   :  { %4069 = vmax.xlane.f32.xlu1 %v4068_v39 }
0x1c5d   :  { %v4055_v11 = vpop.xlane.xlu1 %4054 }
0x1c5e   :  { %v4071_v52 = vsub.f32 %v3977_v43, %v4055_v11 }
0x1c5f   :  { %v4058_v4 = vpop.xlane.xlu0 %4057 }
0x1c60   :  { %v4072_v41 = vsub.f32 %v3980_v40, %v4058_v4  ;;  %v4077_v50 = vmul.f32 1.442695, %v4071_v52 }
0x1c62   :  { %v4079_v57 = vmul.f32 1.442695, %v4072_v41 }
0x1c63   :  { %v4061_v27 = vpop.xlane.xlu0 %4060 }
0x1c64   :  { %6014 = vpow2.f32 %v4079_v57  ;;  %v4073_v28 = vsub.f32 %v3985_v60, %v4061_v27 }
0x1c65   :  { %v4064_v29 = vpop.xlane.xlu1 %4063 }
0x1c66   :  { %v4081_v42 = vmul.f32 1.442695, %v4073_v28  ;;  %v4074_v17 = vsub.f32 %v4040_v61, %v4064_v29 }
0x1c67   :  { %v4067_v34 = vpop.xlane.xlu0 %4066 }
0x1c68   :  { %6016 = vpow2.f32 %v4081_v42  ;;  %v4075_v46 = vsub.f32 %v4043_v5, %v4067_v34  ;;  %v4083_v62 = vmul.f32 1.442695, %v4074_v17  ;;  %v4949_v34 = vld [vmem:[%s7483_s6 + $0x1c] sm:$0xf] }
0x1c69   :  { %v4070_v32 = vpop.xlane.xlu1 %4069  ;;  %6018 = vpow2.f32 %v4077_v50  ;;  %v4260_v17 = vsel %vm474_vm4, %v4949_v34, 0 }
0x1c6a   :  { %v4085_v55 = vmul.f32 1.442695, %v4075_v46  ;;  %v4076_v49 = vsub.f32 %v4048_v44, %v4070_v32 }
0x1c6c   :  { %v4087_v19 = vmul.f32 1.442695, %v4076_v49  ;;  %6020 = vpow2.f32 %v4085_v55 }
0x1c6e   :  { %v6015_v20 = vpop.eup %6014  ;;  %6022 = vpow2.f32 %v4087_v19 }
0x1c6f   :  { %v4092_v13 = vsel %vm583_vm6, %v6015_v20, 0.0  ;;  %6024 = vpow2.f32 %v4083_v62 }
0x1c70   :  { %4093 = vadd.xlane.f32.xlu1 %v4092_v13 }
0x1c72   :  { %v6017_v38 = vpop.eup %6016 }
0x1c73   :  { %v4095_v53 = vsel %vm583_vm6, %v6017_v38, 0.0  ;;  %v6019_v58 = vpop.eup %6018 }
0x1c74   :  { %4096 = vadd.xlane.f32.xlu0 %v4095_v53  ;;  %v4089_v30 = vsel %vm583_vm6, %v6019_v58, 0.0 }
0x1c76   :  { %v7267_v51 = vpop.eup %6020 }
0x1c77   :  { %v4101_v31 = vsel %vm583_vm6, %v7267_v51, 0.0 }
0x1c78   :  { %v6023_v43 = vpop.eup %6022  ;;  %4090 = vadd.xlane.f32.xlu0 %v4089_v30 }
0x1c79   :  { %v4104_v59 = vsel %vm583_vm6, %v6023_v43, 0.0  ;;  %v6025_v54 = vpop.eup %6024 }
0x1c7a   :  { %4105 = vadd.xlane.f32.xlu1 %v4104_v59  ;;  %v4098_v40 = vsel %vm583_vm6, %v6025_v54, 0.0 }
0x1c7c   :  { %4102 = vadd.xlane.f32.xlu0 %v4101_v31 }
0x1c7e   :  { %4099 = vadd.xlane.f32.xlu1 %v4098_v40 }
0x1c8f   :  { %4125 = vrot.lane.b32.xlu1 %v6964_v37, %s6100_s27 }
0x1c92   :  { %4123 = vrot.lane.b32.xlu0 %v6936_v9, %s6100_s27 }
0x1c93   :  { %4185 = vrot.lane.b32.xlu1 %v6942_v25, %s6100_s27 }
0x1c97   :  { %4187 = vrot.lane.b32.xlu1 %v6958_v22, %s6100_s27 }
0x1ca2   :  { %v5598_v56 = vpop.f32.mrb[124].mxu1 }
0x1ca3   :  { %v3850_v60 = vpack.c.bf16 %v7236_v21, %v5598_v56  ;;  %v3773_v63 = vpop.f32.mrb[125].mxu1 }
0x1ca4   :  { %v5599_v6 = vpop.f32.mrb[126].mxu1 }
0x1ca5   :  { %v3776_v3 = vpop.f32.mrb[127].mxu1 }
0x1ca6   :  { %v3849_v61 = vpack.c.bf16 %v3776_v3, %v3773_v63 }
0x1ca8   :  { %5611 = vmatmul.mubr.msk.bf16.vlgmr.msra.gmra.mrb[128].mxu1 %vm467_vm3, %v3849_v61 }
0x1ca9   :  { %5614 = vmatprep.mubr.msk.bf16.mxu1 %vm6091_vm0, %v6090_v1 }
0x1cb0   :  { %5615 = vmatmul.mubr.msk.bf16.gmra.mrb[132].mxu1 %vm467_vm3, %v3850_v60 }
0x1cb1   :  { %5618 = vmatprep.mubr.msk.bf16.mxu1 %vm6091_vm0, %v6090_v1 }
0x1cb8   :  { %5619 = vmatmul.mubr.msk.bf16.gmra.mrb[136].mxu1 %vm467_vm3, %v3851_v35 }
0x1cfd   :  { %v4094_v9 = vpop.xlane.xlu1 %4093 }
0x1d01   :  { %v4097_v25 = vpop.xlane.xlu0 %4096 }
0x1d02   :  { %6026 = vrcp.f32 %v4097_v25 }
0x1d03   :  { %6028 = vrcp.f32 %v4094_v9  ;;  %v4995_v9 = vld [vmem:[%s7484_s7 + $0x1] ss:$0 sm:$0xff] }
0x1d05   :  { %v4091_v22 = vpop.xlane.xlu0 %4090 }
0x1d06   :  { %6030 = vrcp.f32 %v4091_v22 }
0x1d07   :  { %v4106_v37 = vpop.xlane.xlu1 %4105 }
0x1d08   :  { %6032 = vrcp.f32 %v4106_v37 }
0x1d09   :  { %v4103_v21 = vpop.xlane.xlu0 %4102 }
0x1d0a   :  { %6034 = vrcp.f32 %v4103_v21 }
0x1d0b   :  { %v4100_v2 = vpop.xlane.xlu1 %4099 }
0x1d0c   :  { %6036 = vrcp.f32 %v4100_v2  ;;  %v6027_v15 = vpop.eup %6026 }
0x1d0d   :  { %v4124_v8 = vpop.permute.xlu0 %4123  ;;  %v6029_v44 = vpop.eup %6028  ;;  %v4115_v33 = vmul.f32 %v6027_v15, %v6017_v38 }
0x1d0e   :  { %5634 = vmatprep.subr.bf16.mxu0 %v4124_v8  ;;  %v4114_v7 = vmul.f32 %v6029_v44, %v6015_v20 }
0x1d0f   :  { %v4126_v5 = vpop.permute.xlu1 %4125  ;;  %5635 = vmatpush3.bf16.msra.mxu0 %v4124_v8  ;;  %v4120_v4 = vpack.c.bf16 %v4115_v33, %v4115_v33 }
0x1d10   :  { %v6031_v16 = vpop.eup %6030  ;;  %5752 = vmatprep.subr.msk.bf16.mxu0 %vm474_vm4, %v4126_v5  ;;  %v4135_v24 = vsel %vm474_vm4, %v4126_v5, 0 }
0x1d11   :  { %v4113_v35 = vmul.f32 %v6031_v16, %v6019_v58 }
0x1d12   :  { %v6033_v39 = vpop.eup %6032 }
0x1d13   :  { %v4186_v10 = vpop.permute.xlu1 %4185  ;;  %5637 = vmatpush3.bf16.msra.mxu0 %v4135_v24  ;;  %v4119_v18 = vpack.c.bf16 %v4114_v7, %v4113_v35  ;;  %v4118_v52 = vmul.f32 %v6033_v39, %v6023_v43 }
0x1d14   :  { %v6035_v11 = vpop.eup %6034  ;;  %5642 = vmatprep.subr.bf16.mxu1 %v4186_v10  ;;  %5650 = vmatprep.subr.bf16.mxu0 %v6090_v1 }
0x1d15   :  { %5638 = vmatprep.mubr.msk.bf16.mxu0 %vm583_vm6, %v4119_v18  ;;  %5643 = vmatpush3.bf16.msra.mxu1 %v4186_v10  ;;  %v4117_v28 = vmul.f32 %v6035_v11, %v7267_v51  ;;  %v4122_v42 = vpack.c.bf16 %v4118_v52, %v4118_v52 }
0x1d16   :  { %v6037_v41 = vpop.eup %6036  ;;  %5639 = vmatmul.mubr.msk.bf16.vlgmr.msra.gmra.mrb[124].mxu0 %vm583_vm6, %v4120_v4 }
0x1d17   :  { %v4188_v57 = vpop.permute.xlu1 %4187  ;;  %v4116_v27 = vmul.f32 %v6037_v41, %v6025_v54  ;;  %5652 = vmatprep.mubr.msk.bf16.mxu0 %vm6091_vm0, %v6090_v1  ;;  %5651 = vmatpush3.bf16.msra.mxu0 %v4260_v17 }
0x1d18   :  { %v4197_v29 = vsel %vm474_vm4, %v4188_v57, 0  ;;  %5753 = vmatprep.subr.msk.bf16.mxu1 %vm474_vm4, %v4188_v57  ;;  %5680 = vmatprep.subr.bf16.mxu0 %v6090_v1 }
0x1d19   :  { %5645 = vmatpush3.bf16.msra.mxu1 %v4197_v29  ;;  %v4121_v50 = vpack.c.bf16 %v4117_v28, %v4116_v27 }
0x1d1a   :  { %5664 = vmatprep.subr.bf16.mxu1 %v6090_v1 }
0x1d1b   :  { %5646 = vmatprep.mubr.msk.bf16.mxu1 %vm583_vm6, %v4121_v50 }
0x1d1c   :  { %5647 = vmatmul.mubr.msk.bf16.vlgmr.msra.gmra.mrb[140].mxu1 %vm583_vm6, %v4122_v42 }
0x1d1d   :  { %5668 = vmatprep.mubr.msk.bf16.mxu1 %vm6091_vm0, %v6090_v1 }
0x1d7b   :  { %v3898_v46 = vpop.f32.mrb[128].mxu1 }
0x1d7c   :  { %v3921_v32 = vadd.f32 %v3898_v46, %v7214_v47  ;;  %v5612_v55 = vpop.f32.mrb[129].mxu1 }
0x1d7d   :  { %v3901_v49 = vpop.f32.mrb[130].mxu1 }
0x1d7e   :  { %v3922_v62 = vadd.f32 %v3901_v49, %v7216_v0  ;;  %v5613_v19 = vpop.f32.mrb[131].mxu1 }
0x1d83   :  { %v3906_v20 = vpop.f32.mrb[132].mxu1 }
0x1d84   :  { %v3923_v13 = vadd.f32 %v3906_v20, %v7222_v45  ;;  %v5616_v38 = vpop.f32.mrb[133].mxu1 }
0x1d85   :  { %v3909_v53 = vpop.f32.mrb[134].mxu1 }
0x1d86   :  { %v3924_v58 = vadd.f32 %v3909_v53, %v7224_v36  ;;  %v5617_v51 = vpop.f32.mrb[135].mxu1 }
0x1d8b   :  { %v3914_v30 = vpop.f32.mrb[136].mxu1 }
0x1d8c   :  { %v3925_v43 = vadd.f32 %v3914_v30, %v7230_v12  ;;  %v5620_v59 = vpop.f32.mrb[137].mxu1 }
0x1d8d   :  { %v3917_v54 = vpop.f32.mrb[138].mxu1 }
0x1d8e   :  { %v3926_v47 = vadd.f32 %v3917_v54, %v7232_v48  ;;  %v5621_v31 = vpop.f32.mrb[139].mxu1 }
0x1de9   :  { %v5640_v40 = vpop.f32.mrb[124].mxu0 }
0x1dea   :  { %v4171_v56 = vpop.f32.mrb[125].mxu0 }
0x1deb   :  { %v5641_v0 = vpop.f32.mrb[126].mxu0 }
0x1dec   :  { %v4174_v60 = vpop.f32.mrb[127].mxu0  ;;  %v5786_v0 = vld [vmem:[%s7485_s8 + $0x10] sm:$0xff]  }
0x1ded   :  { %v4247_v63 = vpack.c.bf16 %v4174_v60, %v4171_v56  ;;  %5665 = vmatpush3.bf16.msra.mxu1 %v5786_v0  ;;  %v5787_v60 = vld [vmem:[%s7485_s8 + $0x18] sm:$0xff]  }
0x1dee   :  { %5666 = vmatprep.subr.bf16.mxu1 %v6090_v1 }
0x1def   :  { %v5648_v6 = vpop.f32.mrb[140].mxu1  ;;  %5653 = vmatmul.mubr.msk.bf16.vlgmr.msra.gmra.mrb[128].mxu0 %vm467_vm3, %v4247_v63 }
0x1df0   :  { %v4233_v45 = vpop.f32.mrb[141].mxu1  ;;  %5656 = vmatprep.mubr.msk.bf16.mxu0 %vm6091_vm0, %v6090_v1 }
0x1df1   :  { %v4248_v36 = vpack.c.bf16 %v4233_v45, %v5640_v40  ;;  %v5649_v3 = vpop.f32.mrb[142].mxu1  ;;  %5667 = vmatpush3.bf16.msra.mxu1 %v5787_v60 }
0x1df2   :  { %v4236_v12 = vpop.f32.mrb[143].mxu1  ;;  %5708 = vmatprep.subr.bf16.mxu1 %v6090_v1 }
0x1df3   :  { %v4249_v61 = vpack.c.bf16 %v5648_v6, %v4236_v12 }
0x1df7   :  { %5657 = vmatmul.mubr.msk.bf16.gmra.mrb[132].mxu0 %vm467_vm3, %v4248_v36 }
0x1df8   :  { %5660 = vmatprep.mubr.msk.bf16.mxu0 %vm6091_vm0, %v6090_v1 }
0x1dff   :  { %5661 = vmatmul.mubr.msk.bf16.gmra.mrb[136].mxu0 %vm467_vm3, %v4249_v61 }
0x1e00   :  { %5696 = vmatprep.mubr.msk.bf16.mxu0 %vm6091_vm0, %v6090_v1 }
0x1ec2   :  { %v4296_v48 = vpop.f32.mrb[128].mxu0 }
0x1ec3   :  { %v4319_v25 = vadd.f32 %v4296_v48, %v3921_v32  ;;  %v5654_v22 = vpop.f32.mrb[129].mxu0 }
0x1ec4   :  { %v4299_v37 = vpop.f32.mrb[130].mxu0 }
0x1ec5   :  { %v7331_v21 = vadd.f32 %v4995_v9, %v4319_v25  ;;  %v4320_v2 = vadd.f32 %v4299_v37, %v3922_v62  ;;  %v5655_v15 = vpop.f32.mrb[131].mxu0 }
0x1ec6   :  { %v6065_v15 = vld [vmem:[%s7480_s3 + $0x4] sm:$0xf] }
0x1ec7   :  { %v4334_v8 = vadd.f32 %v4995_v9, %v4320_v2  ;;  %v4339_v44 = vsel %vm175_vm2, %v7331_v21, 0.0 }
0x1ec8   :  { %4340 = vadd.xlane.f32.xlu0 %v4339_v44 }
0x1ec9   :  { %v4342_v5 = vsel %vm175_vm2, %v4334_v8, 0.0 }
0x1eca   :  { %4343 = vadd.xlane.f32.xlu1 %v4342_v5  ;;  %v4304_v16 = vpop.f32.mrb[132].mxu0 }
0x1ecb   :  { %v4321_v33 = vadd.f32 %v4304_v16, %v3923_v13  ;;  %v5658_v35 = vpop.f32.mrb[133].mxu0 }
0x1ecc   :  { %v4307_v7 = vpop.f32.mrb[134].mxu0 }
0x1ecd   :  { %v4335_v24 = vadd.f32 %v4995_v9, %v4321_v33  ;;  %v4322_v39 = vadd.f32 %v4307_v7, %v3924_v58  ;;  %v5659_v10 = vpop.f32.mrb[135].mxu0 }
0x1ecf   :  { %v7336_v18 = vadd.f32 %v4995_v9, %v4322_v39  ;;  %v4345_v11 = vsel %vm175_vm2, %v4335_v24, 0.0 }
0x1ed0   :  { %4346 = vadd.xlane.f32.xlu0 %v4345_v11 }
0x1ed1   :  { %v4348_v57 = vsel %vm175_vm2, %v7336_v18, 0.0 }
0x1ed2   :  { %v4312_v4 = vpop.f32.mrb[136].mxu0 }
0x1ed3   :  { %v4323_v41 = vadd.f32 %v4312_v4, %v3925_v43  ;;  %v5662_v52 = vpop.f32.mrb[137].mxu0  ;;  %v4430_v4 = vrot.slane %v6065_v15, %v2153_v26 }
0x1ed4   :  { %4349 = vadd.xlane.f32.xlu0 %v4348_v57  ;;  %v4315_v27 = vpop.f32.mrb[138].mxu0 }
0x1ed5   :  { %v4337_v28 = vadd.f32 %v4995_v9, %v4323_v41  ;;  %v4324_v29 = vadd.f32 %v4315_v27, %v3926_v47  ;;  %v5663_v50 = vpop.f32.mrb[139].mxu0 }
0x1ed7   :  { %v7341_v42 = vadd.f32 %v4995_v9, %v4324_v29  ;;  %v4351_v40 = vsel %vm175_vm2, %v4337_v28, 0.0 }
0x1ed9   :  { %v4354_v56 = vsel %vm175_vm2, %v7341_v42, 0.0 }
0x1f55   :  { %v4341_v34 = vpop.xlane.xlu0 %4340 }
0x1f56   :  { %v4357_v17 = vmul.f32 0.03125, %v4341_v34 }
0x1f57   :  { %v4344_v46 = vpop.xlane.xlu1 %4343 }
0x1f58   :  { %v4363_v32 = vsub.f32 %v7331_v21, %v4357_v17  ;;  %v4358_v55 = vmul.f32 0.03125, %v4344_v46 }
0x1f5a   :  { %v4364_v49 = vsub.f32 %v4334_v8, %v4358_v55  ;;  %v4369_v62 = vmul.f32 %v4363_v32, %v4363_v32  ;;  %v7365_v8 = vrot.slane %v6065_v15, %v2143_v23 }
0x1f5c   :  { %v4375_v19 = vsel %vm175_vm2, %v4369_v62, 0.0  ;;  %v4370_v20 = vmul.f32 %v4364_v49, %v4364_v49  ;;  %v5788_v62 = vld [vmem:[%s7487_s10 + $0x40] sm:$0xff]  }
0x1f5d   :  { %v4347_v13 = vpop.xlane.xlu0 %4346  ;;  %4376 = vadd.xlane.f32.xlu0 %v4375_v19  ;;  %5681 = vmatpush3.bf16.msra.mxu0 %v5788_v62  ;;  %v5789_v19 = vld [vmem:[%s7487_s10 + $0x48] sm:$0xff]  }
0x1f5e   :  { %v4359_v38 = vmul.f32 0.03125, %v4347_v13  ;;  %v4378_v53 = vsel %vm175_vm2, %v4370_v20, 0.0  ;;  %5682 = vmatprep.subr.bf16.mxu0 %v6090_v1  ;;  %v5790_v20 = vld [vmem:[%s7487_s10 + $0x50] sm:$0xff]   ;;  %v5791_v13 = vld [vmem:[%s7487_s10 + $0x58] sm:$0xff]  }
0x1f5f   :  { %4379 = vadd.xlane.f32.xlu1 %v4378_v53  ;;  %v5793_v53 = vld [vmem:[%s7487_s10 + $0x68] sm:$0xff]  }
0x1f60   :  { %v4365_v58 = vsub.f32 %v4335_v24, %v4359_v38  ;;  %v5792_v38 = vld [vmem:[%s7487_s10 + $0x60] sm:$0xff]  }
0x1f61   :  { %v4350_v51 = vpop.xlane.xlu0 %4349  ;;  %5683 = vmatpush3.bf16.msra.mxu0 %v5789_v19 }
0x1f62   :  { %v4360_v30 = vmul.f32 0.03125, %v4350_v51  ;;  %v4371_v43 = vmul.f32 %v4365_v58, %v4365_v58  ;;  %5684 = vmatprep.subr.bf16.mxu0 %v6090_v1  ;;  %v5795_v51 = vld [vmem:[%s7487_s10 + $0x78] sm:$0xff]  }
0x1f64   :  { %v4366_v59 = vsub.f32 %v7336_v18, %v4360_v30  ;;  %v4381_v54 = vsel %vm175_vm2, %v4371_v43, 0.0 }
0x1f65   :  { %4382 = vadd.xlane.f32.xlu0 %v4381_v54  ;;  %5685 = vmatpush3.bf16.msra.mxu0 %v5790_v20 }
0x1f66   :  { %v4372_v47 = vmul.f32 %v4366_v59, %v4366_v59  ;;  %5686 = vmatprep.subr.bf16.mxu0 %v6090_v1 }
0x1f68   :  { %v4384_v31 = vsel %vm175_vm2, %v4372_v47, 0.0 }
0x1f69   :  { %4385 = vadd.xlane.f32.xlu1 %v4384_v31  ;;  %4352 = vadd.xlane.f32.xlu0 %v4351_v40 }
0x1f6a   :  { %5687 = vmatpush3.bf16.msra.mxu0 %v5791_v13 }
0x1f6b   :  { %5688 = vmatprep.subr.bf16.mxu0 %v6090_v1 }
0x1f6d   :  { %4355 = vadd.xlane.f32.xlu1 %v4354_v56 }
0x1f6e   :  { %5689 = vmatpush3.bf16.msra.mxu0 %v5792_v38 }
0x1f6f   :  { %5690 = vmatprep.subr.bf16.mxu0 %v6090_v1 }
0x1f72   :  { %5691 = vmatpush3.bf16.msra.mxu0 %v5793_v53 }
0x1f73   :  { %5692 = vmatprep.subr.bf16.mxu0 %v6090_v1 }
0x1fea   :  { %v4377_v63 = vpop.xlane.xlu0 %4376 }
0x1feb   :  { %v4393_v6 = vmul.f32 0.03125, %v4377_v63 }
0x1fec   :  { %v4380_v45 = vpop.xlane.xlu1 %4379 }
0x1fed   :  { %v4399_v36 = vadd.f32 1e-06, %v4393_v6  ;;  %v4394_v3 = vmul.f32 0.03125, %v4380_v45 }
0x1fef   :  { %6038 = vrsqrt.f32 %v4399_v36  ;;  %v4400_v12 = vadd.f32 1e-06, %v4394_v3 }
0x1ff1   :  { %6040 = vrsqrt.f32 %v4400_v12  ;;  %v7426_v12 = vld [vmem:[%s7486_s9 + $0x1] ss:$0 sm:$0xff] }
0x1ff2   :  { %v4383_v61 = vpop.xlane.xlu0 %4382 }
0x1ff3   :  { %v4395_v48 = vmul.f32 0.03125, %v4383_v61 }
0x1ff5   :  { %v4401_v9 = vadd.f32 1e-06, %v4395_v48 }
0x1ff6   :  { %v4386_v25 = vpop.xlane.xlu1 %4385  ;;  %v4353_v22 = vpop.xlane.xlu0 %4352 }
0x1ff7   :  { %6042 = vrsqrt.f32 %v4401_v9  ;;  %v4396_v37 = vmul.f32 0.03125, %v4386_v25  ;;  %v4361_v2 = vmul.f32 0.03125, %v4353_v22 }
0x1ff9   :  { %v6039_v44 = vpop.eup %6038  ;;  %v4402_v5 = vadd.f32 1e-06, %v4396_v37  ;;  %v7367_v16 = vsub.f32 %v4337_v28, %v4361_v2 }
0x1ffa   :  { %v4411_v33 = vmul.f32 %v6039_v44, %v4363_v32  ;;  %v4356_v35 = vpop.xlane.xlu1 %4355 }
0x1ffb   :  { %v6041_v7 = vpop.eup %6040  ;;  %6044 = vrsqrt.f32 %v4402_v5  ;;  %v4362_v24 = vmul.f32 0.03125, %v4356_v35  ;;  %v4373_v39 = vmul.f32 %v7367_v16, %v7367_v16 }
0x1ffc   :  { %v4421_v10 = vmul.f32 %v7365_v8, %v4411_v33  ;;  %v4412_v11 = vmul.f32 %v6041_v7, %v4364_v49 }
0x1ffd   :  { %v4368_v23 = vsub.f32 %v7341_v42, %v4362_v24  ;;  %v4387_v41 = vsel %vm175_vm2, %v4373_v39, 0.0 }
0x1ffe   :  { %v4422_v52 = vmul.f32 %v7365_v8, %v4412_v11  ;;  %4388 = vadd.xlane.f32.xlu0 %v4387_v41  ;;  %v4431_v27 = vadd.f32 %v4430_v4, %v4421_v10 }
0x1fff   :  { %v4374_v57 = vmul.f32 %v4368_v23, %v4368_v23 }
0x2000   :  { %v4432_v28 = vadd.f32 %v4430_v4, %v4422_v52 }
0x2001   :  { %v6043_v29 = vpop.eup %6042  ;;  %v4390_v50 = vsel %vm175_vm2, %v4374_v57, 0.0 }
0x2002   :  { %v4413_v34 = vmul.f32 %v6043_v29, %v4365_v58  ;;  %4391 = vadd.xlane.f32.xlu1 %v4390_v50  ;;  %v4437_v17 = vpack.c.bf16 %v4432_v28, %v4431_v27  ;;  %v5794_v58 = vld [vmem:[%s7487_s10 + $0x70] sm:$0xff]  }
0x2003   :  { %5693 = vmatpush3.bf16.msra.mxu0 %v5794_v58 }
0x2004   :  { %5669 = vmatmul.mubr.msk.bf16.vlgmr.msra.gmra.mrb[144].mxu1 %vm175_vm2, %v4437_v17  ;;  %v4423_v42 = vmul.f32 %v7365_v8, %v4413_v34  ;;  %5694 = vmatprep.subr.bf16.mxu0 %v6090_v1 }
0x2005   :  { %v6045_v14 = vpop.eup %6044  ;;  %5672 = vmatprep.mubr.msk.bf16.mxu1 %vm6091_vm0, %v6090_v1 }
0x2006   :  { %v4414_v26 = vmul.f32 %v6045_v14, %v4366_v59  ;;  %v4433_v32 = vadd.f32 %v4430_v4, %v4423_v42 }
0x2007   :  { %5695 = vmatpush3.bf16.msra.mxu0 %v5795_v51 }
0x2008   :  { %v4424_v46 = vmul.f32 %v7365_v8, %v4414_v26 }
0x200a   :  { %v4434_v55 = vadd.f32 %v4430_v4, %v4424_v46 }
0x200c   :  { %v4438_v49 = vpack.c.bf16 %v4434_v55, %v4433_v32 }
0x200e   :  { %5673 = vmatmul.mubr.msk.bf16.gmra.mrb[148].mxu1 %vm175_vm2, %v4438_v49 }
0x200f   :  { %5676 = vmatprep.mubr.msk.bf16.mxu1 %vm6091_vm0, %v6090_v1 }
0x208b   :  { %v4389_v30 = vpop.xlane.xlu0 %4388 }
0x208c   :  { %v4397_v43 = vmul.f32 0.03125, %v4389_v30 }
0x208e   :  { %v4403_v59 = vadd.f32 1e-06, %v4397_v43 }
0x208f   :  { %v4392_v54 = vpop.xlane.xlu1 %4391 }
0x2090   :  { %6046 = vrsqrt.f32 %v4403_v59  ;;  %v4398_v47 = vmul.f32 0.03125, %v4392_v54 }
0x2092   :  { %v4404_v31 = vadd.f32 1e-06, %v4398_v47 }
0x2094   :  { %6048 = vrsqrt.f32 %v4404_v31 }
0x209a   :  { %v6047_v40 = vpop.eup %6046 }
0x209b   :  { %v4415_v56 = vmul.f32 %v6047_v40, %v7367_v16 }
0x209d   :  { %v4425_v63 = vmul.f32 %v7365_v8, %v4415_v56 }
0x209e   :  { %v6049_v0 = vpop.eup %6048 }
0x209f   :  { %v4416_v60 = vmul.f32 %v6049_v0, %v4368_v23  ;;  %v4435_v45 = vadd.f32 %v4430_v4, %v4425_v63 }
0x20a1   :  { %v4426_v6 = vmul.f32 %v7365_v8, %v4416_v60 }
0x20a3   :  { %v4436_v36 = vadd.f32 %v4430_v4, %v4426_v6 }
0x20a5   :  { %v4439_v3 = vpack.c.bf16 %v4436_v36, %v4435_v45 }
0x20a7   :  { %5677 = vmatmul.mubr.msk.bf16.gmra.mrb[152].mxu1 %vm175_vm2, %v4439_v3 }
0x20a8   :  { %5712 = vmatprep.mubr.msk.bf16.mxu1 %vm6091_vm0, %v6090_v1 }
0x20d7   :  { %v4508_v61 = vpop.f32.mrb[144].mxu1 }
0x20d8   :  { %v4509_v48 = vadd.f32 %v7426_v12, %v4508_v61  ;;  %v5670_v9 = vpop.f32.mrb[145].mxu1 }
0x20d9   :  { %v4511_v25 = vpop.f32.mrb[146].mxu1 }
0x20da   :  { %v4537_v22 = vmul.f32 0.044715, %v4509_v48  ;;  %v4512_v37 = vadd.f32 %v7426_v12, %v4511_v25  ;;  %v5671_v2 = vpop.f32.mrb[147].mxu1  ;;  %v4531_v55 = vmul.f32 0.5, %v4509_v48 }
0x20dc   :  { %v4543_v15 = vmul.f32 %v4537_v22, %v4509_v48  ;;  %v4538_v8 = vmul.f32 0.044715, %v4512_v37  ;;  %v4532_v49 = vmul.f32 0.5, %v4512_v37 }
0x20de   :  { %v4549_v44 = vmul.f32 %v4543_v15, %v4509_v48  ;;  %v4544_v5 = vmul.f32 %v4538_v8, %v4512_v37 }
0x20e0   :  { %v4555_v16 = vadd.f32 %v4549_v44, %v4509_v48  ;;  %v4550_v33 = vmul.f32 %v4544_v5, %v4512_v37 }
0x20e1   :  { %v4516_v35 = vpop.f32.mrb[148].mxu1 }
0x20e2   :  { %v4561_v7 = vmul.f32 0.7978846, %v4555_v16  ;;  %v4556_v24 = vadd.f32 %v4550_v33, %v4512_v37  ;;  %v4517_v39 = vadd.f32 %v7426_v12, %v4516_v35  ;;  %v5674_v10 = vpop.f32.mrb[149].mxu1 }
0x20e3   :  { %v4519_v11 = vpop.f32.mrb[150].mxu1 }
0x20e4   :  { %6050 = vtanh.f32 %v4561_v7  ;;  %v4562_v4 = vmul.f32 0.7978846, %v4556_v24  ;;  %v4539_v23 = vmul.f32 0.044715, %v4517_v39  ;;  %v4520_v41 = vadd.f32 %v7426_v12, %v4519_v11  ;;  %v5675_v52 = vpop.f32.mrb[151].mxu1 }
0x20e5   :  { %v4533_v51 = vmul.f32 0.5, %v4517_v39 }
0x20e6   :  { %6052 = vtanh.f32 %v4562_v4  ;;  %v4545_v57 = vmul.f32 %v4539_v23, %v4517_v39  ;;  %v4540_v27 = vmul.f32 0.044715, %v4520_v41  ;;  %v4534_v30 = vmul.f32 0.5, %v4520_v41 }
0x20e8   :  { %v4551_v28 = vmul.f32 %v4545_v57, %v4517_v39  ;;  %v4546_v29 = vmul.f32 %v4540_v27, %v4520_v41  ;;  %v5032_v27 = vld [vmem:[%s7488_s11 + $0x1] ss:$0 sm:$0xff] }
0x20ea   :  { %v4552_v50 = vmul.f32 %v4546_v29, %v4520_v41  ;;  %v4557_v34 = vadd.f32 %v4551_v28, %v4517_v39 }
0x20ec   :  { %v4558_v17 = vadd.f32 %v4552_v50, %v4520_v41  ;;  %v4563_v14 = vmul.f32 0.7978846, %v4557_v34 }
0x20ee   :  { %v6051_v26 = vpop.eup %6050  ;;  %v4564_v42 = vmul.f32 0.7978846, %v4558_v17  ;;  %6054 = vtanh.f32 %v4563_v14 }
0x20ef   :  { %v4573_v46 = vadd.f32 1.0, %v6051_v26 }
0x20f0   :  { %v6053_v32 = vpop.eup %6052  ;;  %6056 = vtanh.f32 %v4564_v42 }
0x20f1   :  { %v4574_v62 = vadd.f32 1.0, %v6053_v32  ;;  %v4579_v19 = vmul.f32 %v4573_v46, %v4531_v55 }
0x20f3   :  { %v4580_v20 = vmul.f32 %v4574_v62, %v4532_v49 }
0x20f5   :  { %v4585_v13 = vpack.c.bf16 %v4580_v20, %v4579_v19 }
0x20f7   :  { %5697 = vmatmul.mubr.bf16.vlgmr.msra.gmra.mrb[140].mxu0 %v4585_v13 }
0x20f8   :  { %v6055_v38 = vpop.eup %6054  ;;  %5700 = vmatprep.mubr.msk.bf16.mxu0 %vm6091_vm0, %v6090_v1 }
0x20f9   :  { %v4575_v53 = vadd.f32 1.0, %v6055_v38 }
0x20fa   :  { %v6057_v58 = vpop.eup %6056 }
0x20fb   :  { %v4576_v43 = vadd.f32 1.0, %v6057_v58  ;;  %v4581_v59 = vmul.f32 %v4575_v53, %v4533_v51  ;;  %v5796_v53 = vld [vmem:[%s7490_s13] sm:$0xff]   ;;  %v5797_v58 = vld [vmem:[%s7490_s13 + $0x8] sm:$0xff]  }
0x20fc   :  { %5709 = vmatpush3.bf16.msra.mxu1 %v5796_v53 }
0x20fd   :  { %v4582_v54 = vmul.f32 %v4576_v43, %v4534_v30  ;;  %5710 = vmatprep.subr.bf16.mxu1 %v6090_v1 }
0x20ff   :  { %v4586_v47 = vpack.c.bf16 %v4582_v54, %v4581_v59  ;;  %v5033_v54 = vld [vmem:[%s7489_s12] ss:$0 sm:$0xff] }
0x2100   :  { %5711 = vmatpush3.bf16.msra.mxu1 %v5797_v58 }
0x2101   :  { %5701 = vmatmul.mubr.bf16.gmra.mrb[144].mxu0 %v4586_v47 }
0x2102   :  { %5704 = vmatprep.mubr.msk.bf16.mxu0 %vm6091_vm0, %v6090_v1  ;;  %v5034_v1 = vld [vmem:[%s7489_s12 + $0x1] ss:$0 sm:$0xff]  ;;  %s6101_s12 = smov [#allocation2]  }
0x2103   :  { %s4851_s29 = sshll.u32 %s6101_s12, 4  ;;  %s4852_s29 = int_to_ptr.vmem [resolvable:$true] %s4851_s29 }
0x2104   :  { %s6066_s30 = scalar_lea.vmem %s4852_s29, 32  ;;  %p6071_p1 = scmp.lt.s32.totalorder %s4852_s29, %s4852_s29 }
0x2105   :  { %p6067_p0 = scmp.ne.s32.totalorder %s4852_s29, %s6066_s30  ;;  %p6072_p2 = scmp.lt.s32.totalorder %s6066_s30, %s6066_s30 }
0x2107   :  { %p6073_p3 = por %p6072_p2, %p6071_p1 }
0x2109   :  { %p6074_p4 = pnand %p6073_p3, %p6067_p0 }
0x217a   :  { %v4524_v31 = vpop.f32.mrb[152].mxu1 }
0x217b   :  { %v4525_v40 = vadd.f32 %v7426_v12, %v4524_v31  ;;  %v5678_v56 = vpop.f32.mrb[153].mxu1 }
0x217c   :  { %v4527_v0 = vpop.f32.mrb[154].mxu1 }
0x217d   :  { %v4541_v60 = vmul.f32 0.044715, %v4525_v40  ;;  %v4528_v63 = vadd.f32 %v7426_v12, %v4527_v0  ;;  %v5679_v6 = vpop.f32.mrb[155].mxu1  ;;  %v4535_v44 = vmul.f32 0.5, %v4525_v40 }
0x217f   :  { %v4547_v45 = vmul.f32 %v4541_v60, %v4525_v40  ;;  %v4542_v36 = vmul.f32 0.044715, %v4528_v63  ;;  %v4536_v5 = vmul.f32 0.5, %v4528_v63 }
0x2181   :  { %v4553_v3 = vmul.f32 %v4547_v45, %v4525_v40  ;;  %v4548_v61 = vmul.f32 %v4542_v36, %v4528_v63 }
0x2183   :  { %v4554_v48 = vmul.f32 %v4548_v61, %v4528_v63  ;;  %v4559_v9 = vadd.f32 %v4553_v3, %v4525_v40 }
0x2185   :  { %v4560_v25 = vadd.f32 %v4554_v48, %v4528_v63  ;;  %v4565_v22 = vmul.f32 0.7978846, %v4559_v9 }
0x2187   :  { %v4566_v37 = vmul.f32 0.7978846, %v4560_v25  ;;  %6058 = vtanh.f32 %v4565_v22  ;;  %v5035_v25 = vld [vmem:[%s7491_s14] ss:$0 sm:$0xff] }
0x2189   :  { %6060 = vtanh.f32 %v4566_v37 }
0x2191   :  { %v6059_v2 = vpop.eup %6058 }
0x2192   :  { %v4577_v15 = vadd.f32 1.0, %v6059_v2 }
0x2193   :  { %v6061_v8 = vpop.eup %6060 }
0x2194   :  { %v4578_v16 = vadd.f32 1.0, %v6061_v8  ;;  %v4583_v33 = vmul.f32 %v4577_v15, %v4535_v44 }
0x2196   :  { %v4584_v12 = vmul.f32 %v4578_v16, %v4536_v5 }
0x2198   :  { %v4587_v35 = vpack.c.bf16 %v4584_v12, %v4583_v33 }
0x219a   :  { %5705 = vmatmul.mubr.bf16.gmra.mrb[148].mxu0 %v4587_v35 }
0x21ca   :  { %v4687_v7 = vpop.f32.mrb[140].mxu0 }
0x21cb   :  { %v5698_v24 = vpop.f32.mrb[141].mxu0  ;;  %v4706_v41 = vadd.f32 %v4687_v7, %v7331_v21 }
0x21cc   :  { %v4690_v39 = vpop.f32.mrb[142].mxu0 }
0x21cd   :  { %v5699_v10 = vpop.f32.mrb[143].mxu0  ;;  %v4716_v29 = vadd.f32 %v5032_v27, %v4706_v41 }
0x21d4   :  { %v4694_v11 = vpop.f32.mrb[144].mxu0 }
0x21d5   :  { %v5702_v4 = vpop.f32.mrb[145].mxu0 }
0x21d6   :  { %v4696_v23 = vpop.f32.mrb[146].mxu0 }
0x21d7   :  { %v4707_v52 = vadd.f32 %v4696_v23, %v7336_v18  ;;  %v5703_v57 = vpop.f32.mrb[147].mxu0 }
0x21d9   :  { %v4717_v28 = vadd.f32 %v5032_v27, %v4707_v52 }
0x21db   :  { %v4722_v50 = vrot.slane %v4717_v28, 7 }
0x21dd   :  { %v4724_v34 = vsel %vm4723_vm7, %v4722_v50, %v4716_v29 }
0x21de   :  { %v4727_v17 = vsel %vm4726_vm8, %v4724_v34, 0.0 }
0x21df   :  { %4728 = vadd.xlane.f32.xlu0 %v4727_v17 }
0x226c   :  { %v4729_v14 = vpop.xlane.xlu0 %4728 }
0x226d   :  { %v4730_v26 = vmul.f32 0.03125, %v4729_v14  ;;  %v4701_v21 = vpop.f32.mrb[148].mxu0 }
0x226e   :  { %v5706_v42 = vpop.f32.mrb[149].mxu0 }
0x226f   :  { %v4732_v18 = vrot.slane %v4730_v26, 1  ;;  %v4703_v46 = vpop.f32.mrb[150].mxu0  ;;  %v4735_v55 = vsub.f32 %v4716_v29, %v4730_v26 }
0x2270   :  { %v5707_v32 = vpop.f32.mrb[151].mxu0 }
0x2271   :  { %v4736_v49 = vsub.f32 %v4717_v28, %v4732_v18  ;;  %v4737_v19 = vmul.f32 %v4735_v55, %v4735_v55 }
0x2273   :  { %v4738_v62 = vmul.f32 %v4736_v49, %v4736_v49 }
0x2275   :  { %v4741_v20 = vrot.slane %v4738_v62, 7 }
0x2277   :  { %v4742_v13 = vsel %vm4723_vm7, %v4741_v20, %v4737_v19 }
0x2278   :  { %v4744_v38 = vsel %vm4726_vm8, %v4742_v13, 0.0 }
0x2279   :  { %4745 = vadd.xlane.f32.xlu1 %v4744_v38 }
0x2306   :  { %v4746_v51 = vpop.xlane.xlu1 %4745 }
0x2307   :  { %v4747_v30 = vmul.f32 0.03125, %v4746_v51 }
0x2309   :  { %v4748_v43 = vadd.f32 1e-06, %v4747_v30 }
0x230b   :  { %6062 = vrsqrt.f32 %v4748_v43 }
0x2315   :  { %v6063_v59 = vpop.eup %6062 }
0x2316   :  { %v4751_v47 = vrot.slane %v6063_v59, 1  ;;  %v4754_v31 = vmul.f32 %v6063_v59, %v4735_v55 }
0x2318   :  { %v4755_v40 = vmul.f32 %v4751_v47, %v4736_v49  ;;  %v4760_v56 = vmul.f32 %v5033_v54, %v4754_v31 }
0x231a   :  { %v4761_v0 = vmul.f32 %v5033_v54, %v4755_v40  ;;  %v4766_v60 = vadd.f32 %v5034_v1, %v4760_v56 }
0x231c   :  { %v4767_v63 = vadd.f32 %v5034_v1, %v4761_v0  ;;  %v4768_v6 = vpack.c.bf16 %v4766_v60, %v4766_v60 }
0x231e   :  { %v4769_v45 = vpack.c.bf16 %v4767_v63, %v4767_v63  ;;  %v4783_v3 = vunpack.c.l.b16 %v4768_v6 }
0x2320   :  { %v4784_v36 = vunpack.c.l.b16 %v4769_v45 }
0x2322   :  { %v4785_v61 = vrot.slane %v4784_v36, 7 }
0x2324   :  { %v4786_v48 = vsel %vm4723_vm7, %v4785_v61, %v4783_v3 }
0x2325   :  { %v4787_v9 = vpack.c.b16 %v4786_v48, %v4786_v48 }
0x2327   :  { %5713 = vmatmul.mubr.msk.bf16.vlgmr.msra.gmra.mrb[156].mxu1 %vm175_vm2, %v4787_v9 }
0x23fa   :  { %v4837_v22 = vpop.f32.mrb[156].mxu1 }
0x23fb   :  { %v4838_v37 = vadd.f32 %v5035_v25, %v4837_v22  ;;  %v5714_v2 = vpop.f32.mrb[157].mxu1 }
0x23fc   :  { %v4840_v15 = vpop.f32.mrb[158].mxu1 }
0x23fd   :  { %v5715_v8 = vpop.f32.mrb[159].mxu1  ;;  %4844 = vst.msk [vmem:[#allocation2] sm:$0x3] %vm4843_vm9, %v4838_v37 }
0x23fe   :  { %6077 = shalt.err (!%p6074_p4)
}
0x23ff   :  { %s6078_s14 = scalar_lea.hbm %s7492_s15, 32 }
0x2400   :  { %p6079_p5 = scmp.ne.s32.totalorder %s7492_s15, %s6078_s14  ;;  %p6082_p6 = scmp.lt.u32.totalorder %s6078_s14, %s7492_s15 }
0x2402   :  { %p6084_p7 = pnand %p6082_p6, %p6079_p5 }
0x2404   :  { %6087 = shalt.err (!%p6084_p7)
}
0x2405   :  { %4854 = dma.vmem_to_hbm [thread:$0]  %s4852_s29, 32, %s7492_s15, [#allocation3]  }
0x2406   :  { %6088 = dma.done.wait [#allocation3], 32  }
0x2407   :  { %6089 = vsyncadd [#allocation3], 4294967264 }
0x2408   :  { %4858 = vsyncpa [#allocation3], 1 }

</bundles_post_ra>
